<compile_context>
chip_gen: v7x
topology: tpu7x:2x2x1
jax: 0.10.0
libtpu: 0.0.40
codegen_flags: <defaults>
</compile_context>

<pallas_src>
import jax
import jax.numpy as jnp
from jax.experimental import pallas as pl
from jax.experimental.pallas import tpu as pltpu

KH = KW = 3  # all layers use 3x3 kernels


def _conv_step(planes, w_ref, b_ref, Cin, Cout, Ho, Wo):
    """One valid (no-pad, stride-1) 3x3 conv on per-channel 2-D planes.

    planes: list of Cin jnp arrays (Hin, Win) already in registers/VMEM values.
    w_ref:  flat SMEM ref of Cout*Cin*KH*KW f32 weights (OIHW order).
    b_ref:  SMEM ref of Cout f32 biases.
    Returns a list of Cout (Ho, Wo) f32 arrays.
    """
    # init accumulators with bias
    accs = [jnp.full((Ho, Wo), b_ref[co], dtype=jnp.float32) for co in range(Cout)]
    # window hoisted: one slice per (ci, kh, kw), reused across all Cout
    for ci in range(Cin):
        plane = planes[ci]
        for kh in range(KH):
            for kw in range(KW):
                window = plane[kh:kh + Ho, kw:kw + Wo]
                for co in range(Cout):
                    widx = ((co * Cin + ci) * KH + kh) * KW + kw
                    accs[co] = accs[co] + window * w_ref[widx]
    return accs


def _make_fused_kernel(layer_shapes):
    """layer_shapes: list of (Cin, Cout, Hin, Win) per conv layer."""

    def kernel(x_ref, *rest):
        # rest = (w0, b0, w1, b1, w2, b2, o_ref)
        o_ref = rest[-1]
        wb_refs = rest[:-1]

        # Load each input plane from VMEM exactly once.
        Cin0 = layer_shapes[0][0]
        planes = [x_ref[ci] for ci in range(Cin0)]

        # Run all layers back-to-back on in-register values (fused).
        for layer, (Cin, Cout, Hin, Win) in enumerate(layer_shapes):
            Ho, Wo = Hin - KH + 1, Win - KW + 1
            w_ref = wb_refs[2 * layer]
            b_ref = wb_refs[2 * layer + 1]
            planes = _conv_step(planes, w_ref, b_ref, Cin, Cout, Ho, Wo)

        # Final layer has a single output channel; store it.
        o_ref[0, :, :] = planes[0]

    return kernel


def example_conv_forward(x, params):
    """Fused 3-layer valid conv. x: (N, 3, H, W) f32; returns (N, 1, H-6, W-6) f32."""
    N, Cin, H, W = x.shape

    layer_shapes = []
    flat_inputs = []
    in_specs = [pl.BlockSpec((pl.Squeezed(), Cin, H, W), lambda n: (n, 0, 0, 0))]
    h, w_, cin = H, W, Cin
    for wgt, bias in params:
        cout = wgt.shape[0]
        layer_shapes.append((cin, cout, h, w_))
        wf = wgt.reshape(-1).astype(jnp.float32)
        bf = bias.astype(jnp.float32)
        flat_inputs.extend([wf, bf])
        in_specs.append(pl.BlockSpec((wf.shape[0],), lambda n: (0,),
                                     memory_space=pltpu.MemorySpace.SMEM))
        in_specs.append(pl.BlockSpec((bf.shape[0],), lambda n: (0,),
                                     memory_space=pltpu.MemorySpace.SMEM))
        h, w_, cin = h - KH + 1, w_ - KW + 1, cout

    Ho_f, Wo_f, Cout_f = h, w_, cin  # final output extents

    kernel = _make_fused_kernel(layer_shapes)
    return pl.pallas_call(
        kernel,
        out_shape=jax.ShapeDtypeStruct((N, Cout_f, Ho_f, Wo_f), jnp.float32),
        grid=(N,),
        in_specs=in_specs,
        out_specs=pl.BlockSpec((pl.Squeezed(), Cout_f, Ho_f, Wo_f),
                               lambda n: (n, 0, 0, 0)),
        compiler_params=pltpu.CompilerParams(dimension_semantics=("parallel",)),
    )(x.astype(jnp.float32), *flat_inputs)


def init_params(key):
    """Deterministic init mirroring PyTorch Conv2d shapes (uniform ±1/sqrt(fan_in))."""
    shapes = [((3, 3, 3, 3), (3,)),   # layer0: Conv2d(3, 3, 3)
              ((3, 3, 3, 3), (3,)),   # layer1: Conv2d(3, 3, 3)
              ((1, 3, 3, 3), (1,))]   # layer2: Conv2d(3, 1, 3)
    params = []
    for i, (wshape, bshape) in enumerate(shapes):
        kw_key, kb_key = jax.random.split(jax.random.fold_in(key, i))
        fan_in = wshape[1] * wshape[2] * wshape[3]
        bound = 1.0 / jnp.sqrt(fan_in)
        w = jax.random.uniform(kw_key, wshape, jnp.float32, -bound, bound)
        b = jax.random.uniform(kb_key, bshape, jnp.float32, -bound, bound)
        params.append((w, b))
    return params


def _ref_conv(x, w, b):
    y = jax.lax.conv_general_dilated(
        x, w, window_strides=(1, 1), padding="VALID",
        dimension_numbers=("NCHW", "OIHW", "NCHW"))
    return y + b.reshape(1, -1, 1, 1)


def _ref_forward(x, params):
    for w, b in params:
        x = _ref_conv(x, w, b)
    return x


if __name__ == "__main__":
    key = jax.random.PRNGKey(0)
    x = jax.random.normal(jax.random.fold_in(key, 100), (2, 3, 16, 16), jnp.float32)
    params = init_params(key)

    out = example_conv_forward(x, params)
    out = jax.block_until_ready(out)

    assert out.shape == (2, 1, 10, 10), out.shape
    ref = _ref_forward(x, params)
    assert jnp.allclose(out, ref, atol=1e-4, rtol=1e-4), "mismatch vs lax reference"

    print("KERNEL_OK")
</pallas_src>

<mosaic_0001>
module attributes {stable_mosaic.version = 11 : i64} {
  func.func @kernel(%arg0: i32, %arg1: memref<1x3x16x16xf32, #tpu.memory_space<vmem>>, %arg2: memref<81xf32, #tpu.memory_space<smem>>, %arg3: memref<3xf32, #tpu.memory_space<smem>>, %arg4: memref<81xf32, #tpu.memory_space<smem>>, %arg5: memref<3xf32, #tpu.memory_space<smem>>, %arg6: memref<27xf32, #tpu.memory_space<smem>>, %arg7: memref<1xf32, #tpu.memory_space<smem>>, %arg8: memref<1x1x10x10xf32, #tpu.memory_space<vmem>>) attributes {dimension_semantics = [#tpu.dimension_semantics<parallel>], iteration_bounds = array<i64: 2>, scalar_prefetch = 0 : i64, scratch_operands = 0 : i64, tpu.core_type = #tpu.core_type<tc>, window_params = [{transform_indices = @transform_0, window_bounds = array<i64: 1, 3, 16, 16>}, {transform_indices = @transform_1, window_bounds = array<i64: 81>}, {transform_indices = @transform_2, window_bounds = array<i64: 3>}, {transform_indices = @transform_3, window_bounds = array<i64: 81>}, {transform_indices = @transform_4, window_bounds = array<i64: 3>}, {transform_indices = @transform_5, window_bounds = array<i64: 27>}, {transform_indices = @transform_6, window_bounds = array<i64: 1>}, {transform_indices = @transform_7, window_bounds = array<i64: 1, 1, 10, 10>}]} {
    %c0 = arith.constant 0 : index
    %c0_0 = arith.constant 0 : index
    %c0_1 = arith.constant 0 : index
    %c0_2 = arith.constant 0 : index
    %0 = vector.load %arg1[%c0, %c0_0, %c0_1, %c0_2] : memref<1x3x16x16xf32, #tpu.memory_space<vmem>>, vector<1x1x16x16xf32>
    %1 = vector.shape_cast %0 : vector<1x1x16x16xf32> to vector<16x16xf32>
    %c0_3 = arith.constant 0 : index
    %c1 = arith.constant 1 : index
    %c0_4 = arith.constant 0 : index
    %c0_5 = arith.constant 0 : index
    %2 = vector.load %arg1[%c0_3, %c1, %c0_4, %c0_5] : memref<1x3x16x16xf32, #tpu.memory_space<vmem>>, vector<1x1x16x16xf32>
    %3 = vector.shape_cast %2 : vector<1x1x16x16xf32> to vector<16x16xf32>
    %c0_6 = arith.constant 0 : index
    %c2 = arith.constant 2 : index
    %c0_7 = arith.constant 0 : index
    %c0_8 = arith.constant 0 : index
    %4 = vector.load %arg1[%c0_6, %c2, %c0_7, %c0_8] : memref<1x3x16x16xf32, #tpu.memory_space<vmem>>, vector<1x1x16x16xf32>
    %5 = vector.shape_cast %4 : vector<1x1x16x16xf32> to vector<16x16xf32>
    %c0_9 = arith.constant 0 : index
    %6 = memref.load %arg3[%c0_9] : memref<3xf32, #tpu.memory_space<smem>>
    %7 = vector.broadcast %6 : f32 to vector<14x14xf32>
    %c1_10 = arith.constant 1 : index
    %8 = memref.load %arg3[%c1_10] : memref<3xf32, #tpu.memory_space<smem>>
    %9 = vector.broadcast %8 : f32 to vector<14x14xf32>
    %c2_11 = arith.constant 2 : index
    %10 = memref.load %arg3[%c2_11] : memref<3xf32, #tpu.memory_space<smem>>
    %11 = vector.broadcast %10 : f32 to vector<14x14xf32>
    %12 = vector.extract_strided_slice %1 {offsets = [0, 0], sizes = [14, 14], strides = [1, 1]} : vector<16x16xf32> to vector<14x14xf32>
    %c0_12 = arith.constant 0 : index
    %13 = memref.load %arg2[%c0_12] : memref<81xf32, #tpu.memory_space<smem>>
    %14 = vector.broadcast %13 : f32 to vector<14x14xf32>
    %15 = arith.mulf %12, %14 : vector<14x14xf32>
    %16 = arith.addf %7, %15 : vector<14x14xf32>
    %c27 = arith.constant 27 : index
    %17 = memref.load %arg2[%c27] : memref<81xf32, #tpu.memory_space<smem>>
    %18 = vector.broadcast %17 : f32 to vector<14x14xf32>
    %19 = arith.mulf %12, %18 : vector<14x14xf32>
    %20 = arith.addf %9, %19 : vector<14x14xf32>
    %c54 = arith.constant 54 : index
    %21 = memref.load %arg2[%c54] : memref<81xf32, #tpu.memory_space<smem>>
    %22 = vector.broadcast %21 : f32 to vector<14x14xf32>
    %23 = arith.mulf %12, %22 : vector<14x14xf32>
    %24 = arith.addf %11, %23 : vector<14x14xf32>
    %25 = vector.extract_strided_slice %1 {offsets = [0, 1], sizes = [14, 14], strides = [1, 1]} : vector<16x16xf32> to vector<14x14xf32>
    %c1_13 = arith.constant 1 : index
    %26 = memref.load %arg2[%c1_13] : memref<81xf32, #tpu.memory_space<smem>>
    %27 = vector.broadcast %26 : f32 to vector<14x14xf32>
    %28 = arith.mulf %25, %27 : vector<14x14xf32>
    %29 = arith.addf %16, %28 : vector<14x14xf32>
    %c28 = arith.constant 28 : index
    %30 = memref.load %arg2[%c28] : memref<81xf32, #tpu.memory_space<smem>>
    %31 = vector.broadcast %30 : f32 to vector<14x14xf32>
    %32 = arith.mulf %25, %31 : vector<14x14xf32>
    %33 = arith.addf %20, %32 : vector<14x14xf32>
    %c55 = arith.constant 55 : index
    %34 = memref.load %arg2[%c55] : memref<81xf32, #tpu.memory_space<smem>>
    %35 = vector.broadcast %34 : f32 to vector<14x14xf32>
    %36 = arith.mulf %25, %35 : vector<14x14xf32>
    %37 = arith.addf %24, %36 : vector<14x14xf32>
    %38 = vector.extract_strided_slice %1 {offsets = [0, 2], sizes = [14, 14], strides = [1, 1]} : vector<16x16xf32> to vector<14x14xf32>
    %c2_14 = arith.constant 2 : index
    %39 = memref.load %arg2[%c2_14] : memref<81xf32, #tpu.memory_space<smem>>
    %40 = vector.broadcast %39 : f32 to vector<14x14xf32>
    %41 = arith.mulf %38, %40 : vector<14x14xf32>
    %42 = arith.addf %29, %41 : vector<14x14xf32>
    %c29 = arith.constant 29 : index
    %43 = memref.load %arg2[%c29] : memref<81xf32, #tpu.memory_space<smem>>
    %44 = vector.broadcast %43 : f32 to vector<14x14xf32>
    %45 = arith.mulf %38, %44 : vector<14x14xf32>
    %46 = arith.addf %33, %45 : vector<14x14xf32>
    %c56 = arith.constant 56 : index
    %47 = memref.load %arg2[%c56] : memref<81xf32, #tpu.memory_space<smem>>
    %48 = vector.broadcast %47 : f32 to vector<14x14xf32>
    %49 = arith.mulf %38, %48 : vector<14x14xf32>
    %50 = arith.addf %37, %49 : vector<14x14xf32>
    %51 = vector.extract_strided_slice %1 {offsets = [1, 0], sizes = [14, 14], strides = [1, 1]} : vector<16x16xf32> to vector<14x14xf32>
    %c3 = arith.constant 3 : index
    %52 = memref.load %arg2[%c3] : memref<81xf32, #tpu.memory_space<smem>>
    %53 = vector.broadcast %52 : f32 to vector<14x14xf32>
    %54 = arith.mulf %51, %53 : vector<14x14xf32>
    %55 = arith.addf %42, %54 : vector<14x14xf32>
    %c30 = arith.constant 30 : index
    %56 = memref.load %arg2[%c30] : memref<81xf32, #tpu.memory_space<smem>>
    %57 = vector.broadcast %56 : f32 to vector<14x14xf32>
    %58 = arith.mulf %51, %57 : vector<14x14xf32>
    %59 = arith.addf %46, %58 : vector<14x14xf32>
    %c57 = arith.constant 57 : index
    %60 = memref.load %arg2[%c57] : memref<81xf32, #tpu.memory_space<smem>>
    %61 = vector.broadcast %60 : f32 to vector<14x14xf32>
    %62 = arith.mulf %51, %61 : vector<14x14xf32>
    %63 = arith.addf %50, %62 : vector<14x14xf32>
    %64 = vector.extract_strided_slice %1 {offsets = [1, 1], sizes = [14, 14], strides = [1, 1]} : vector<16x16xf32> to vector<14x14xf32>
    %c4 = arith.constant 4 : index
    %65 = memref.load %arg2[%c4] : memref<81xf32, #tpu.memory_space<smem>>
    %66 = vector.broadcast %65 : f32 to vector<14x14xf32>
    %67 = arith.mulf %64, %66 : vector<14x14xf32>
    %68 = arith.addf %55, %67 : vector<14x14xf32>
    %c31 = arith.constant 31 : index
    %69 = memref.load %arg2[%c31] : memref<81xf32, #tpu.memory_space<smem>>
    %70 = vector.broadcast %69 : f32 to vector<14x14xf32>
    %71 = arith.mulf %64, %70 : vector<14x14xf32>
    %72 = arith.addf %59, %71 : vector<14x14xf32>
    %c58 = arith.constant 58 : index
    %73 = memref.load %arg2[%c58] : memref<81xf32, #tpu.memory_space<smem>>
    %74 = vector.broadcast %73 : f32 to vector<14x14xf32>
    %75 = arith.mulf %64, %74 : vector<14x14xf32>
    %76 = arith.addf %63, %75 : vector<14x14xf32>
    %77 = vector.extract_strided_slice %1 {offsets = [1, 2], sizes = [14, 14], strides = [1, 1]} : vector<16x16xf32> to vector<14x14xf32>
    %c5 = arith.constant 5 : index
    %78 = memref.load %arg2[%c5] : memref<81xf32, #tpu.memory_space<smem>>
    %79 = vector.broadcast %78 : f32 to vector<14x14xf32>
    %80 = arith.mulf %77, %79 : vector<14x14xf32>
    %81 = arith.addf %68, %80 : vector<14x14xf32>
    %c32 = arith.constant 32 : index
    %82 = memref.load %arg2[%c32] : memref<81xf32, #tpu.memory_space<smem>>
    %83 = vector.broadcast %82 : f32 to vector<14x14xf32>
    %84 = arith.mulf %77, %83 : vector<14x14xf32>
    %85 = arith.addf %72, %84 : vector<14x14xf32>
    %c59 = arith.constant 59 : index
    %86 = memref.load %arg2[%c59] : memref<81xf32, #tpu.memory_space<smem>>
    %87 = vector.broadcast %86 : f32 to vector<14x14xf32>
    %88 = arith.mulf %77, %87 : vector<14x14xf32>
    %89 = arith.addf %76, %88 : vector<14x14xf32>
    %90 = vector.extract_strided_slice %1 {offsets = [2, 0], sizes = [14, 14], strides = [1, 1]} : vector<16x16xf32> to vector<14x14xf32>
    %c6 = arith.constant 6 : index
    %91 = memref.load %arg2[%c6] : memref<81xf32, #tpu.memory_space<smem>>
    %92 = vector.broadcast %91 : f32 to vector<14x14xf32>
    %93 = arith.mulf %90, %92 : vector<14x14xf32>
    %94 = arith.addf %81, %93 : vector<14x14xf32>
    %c33 = arith.constant 33 : index
    %95 = memref.load %arg2[%c33] : memref<81xf32, #tpu.memory_space<smem>>
    %96 = vector.broadcast %95 : f32 to vector<14x14xf32>
    %97 = arith.mulf %90, %96 : vector<14x14xf32>
    %98 = arith.addf %85, %97 : vector<14x14xf32>
    %c60 = arith.constant 60 : index
    %99 = memref.load %arg2[%c60] : memref<81xf32, #tpu.memory_space<smem>>
    %100 = vector.broadcast %99 : f32 to vector<14x14xf32>
    %101 = arith.mulf %90, %100 : vector<14x14xf32>
    %102 = arith.addf %89, %101 : vector<14x14xf32>
    %103 = vector.extract_strided_slice %1 {offsets = [2, 1], sizes = [14, 14], strides = [1, 1]} : vector<16x16xf32> to vector<14x14xf32>
    %c7 = arith.constant 7 : index
    %104 = memref.load %arg2[%c7] : memref<81xf32, #tpu.memory_space<smem>>
    %105 = vector.broadcast %104 : f32 to vector<14x14xf32>
    %106 = arith.mulf %103, %105 : vector<14x14xf32>
    %107 = arith.addf %94, %106 : vector<14x14xf32>
    %c34 = arith.constant 34 : index
    %108 = memref.load %arg2[%c34] : memref<81xf32, #tpu.memory_space<smem>>
    %109 = vector.broadcast %108 : f32 to vector<14x14xf32>
    %110 = arith.mulf %103, %109 : vector<14x14xf32>
    %111 = arith.addf %98, %110 : vector<14x14xf32>
    %c61 = arith.constant 61 : index
    %112 = memref.load %arg2[%c61] : memref<81xf32, #tpu.memory_space<smem>>
    %113 = vector.broadcast %112 : f32 to vector<14x14xf32>
    %114 = arith.mulf %103, %113 : vector<14x14xf32>
    %115 = arith.addf %102, %114 : vector<14x14xf32>
    %116 = vector.extract_strided_slice %1 {offsets = [2, 2], sizes = [14, 14], strides = [1, 1]} : vector<16x16xf32> to vector<14x14xf32>
    %c8 = arith.constant 8 : index
    %117 = memref.load %arg2[%c8] : memref<81xf32, #tpu.memory_space<smem>>
    %118 = vector.broadcast %117 : f32 to vector<14x14xf32>
    %119 = arith.mulf %116, %118 : vector<14x14xf32>
    %120 = arith.addf %107, %119 : vector<14x14xf32>
    %c35 = arith.constant 35 : index
    %121 = memref.load %arg2[%c35] : memref<81xf32, #tpu.memory_space<smem>>
    %122 = vector.broadcast %121 : f32 to vector<14x14xf32>
    %123 = arith.mulf %116, %122 : vector<14x14xf32>
    %124 = arith.addf %111, %123 : vector<14x14xf32>
    %c62 = arith.constant 62 : index
    %125 = memref.load %arg2[%c62] : memref<81xf32, #tpu.memory_space<smem>>
    %126 = vector.broadcast %125 : f32 to vector<14x14xf32>
    %127 = arith.mulf %116, %126 : vector<14x14xf32>
    %128 = arith.addf %115, %127 : vector<14x14xf32>
    %129 = vector.extract_strided_slice %3 {offsets = [0, 0], sizes = [14, 14], strides = [1, 1]} : vector<16x16xf32> to vector<14x14xf32>
    %c9 = arith.constant 9 : index
    %130 = memref.load %arg2[%c9] : memref<81xf32, #tpu.memory_space<smem>>
    %131 = vector.broadcast %130 : f32 to vector<14x14xf32>
    %132 = arith.mulf %129, %131 : vector<14x14xf32>
    %133 = arith.addf %120, %132 : vector<14x14xf32>
    %c36 = arith.constant 36 : index
    %134 = memref.load %arg2[%c36] : memref<81xf32, #tpu.memory_space<smem>>
    %135 = vector.broadcast %134 : f32 to vector<14x14xf32>
    %136 = arith.mulf %129, %135 : vector<14x14xf32>
    %137 = arith.addf %124, %136 : vector<14x14xf32>
    %c63 = arith.constant 63 : index
    %138 = memref.load %arg2[%c63] : memref<81xf32, #tpu.memory_space<smem>>
    %139 = vector.broadcast %138 : f32 to vector<14x14xf32>
    %140 = arith.mulf %129, %139 : vector<14x14xf32>
    %141 = arith.addf %128, %140 : vector<14x14xf32>
    %142 = vector.extract_strided_slice %3 {offsets = [0, 1], sizes = [14, 14], strides = [1, 1]} : vector<16x16xf32> to vector<14x14xf32>
    %c10 = arith.constant 10 : index
    %143 = memref.load %arg2[%c10] : memref<81xf32, #tpu.memory_space<smem>>
    %144 = vector.broadcast %143 : f32 to vector<14x14xf32>
    %145 = arith.mulf %142, %144 : vector<14x14xf32>
    %146 = arith.addf %133, %145 : vector<14x14xf32>
    %c37 = arith.constant 37 : index
    %147 = memref.load %arg2[%c37] : memref<81xf32, #tpu.memory_space<smem>>
    %148 = vector.broadcast %147 : f32 to vector<14x14xf32>
    %149 = arith.mulf %142, %148 : vector<14x14xf32>
    %150 = arith.addf %137, %149 : vector<14x14xf32>
    %c64 = arith.constant 64 : index
    %151 = memref.load %arg2[%c64] : memref<81xf32, #tpu.memory_space<smem>>
    %152 = vector.broadcast %151 : f32 to vector<14x14xf32>
    %153 = arith.mulf %142, %152 : vector<14x14xf32>
    %154 = arith.addf %141, %153 : vector<14x14xf32>
    %155 = vector.extract_strided_slice %3 {offsets = [0, 2], sizes = [14, 14], strides = [1, 1]} : vector<16x16xf32> to vector<14x14xf32>
    %c11 = arith.constant 11 : index
    %156 = memref.load %arg2[%c11] : memref<81xf32, #tpu.memory_space<smem>>
    %157 = vector.broadcast %156 : f32 to vector<14x14xf32>
    %158 = arith.mulf %155, %157 : vector<14x14xf32>
    %159 = arith.addf %146, %158 : vector<14x14xf32>
    %c38 = arith.constant 38 : index
    %160 = memref.load %arg2[%c38] : memref<81xf32, #tpu.memory_space<smem>>
    %161 = vector.broadcast %160 : f32 to vector<14x14xf32>
    %162 = arith.mulf %155, %161 : vector<14x14xf32>
    %163 = arith.addf %150, %162 : vector<14x14xf32>
    %c65 = arith.constant 65 : index
    %164 = memref.load %arg2[%c65] : memref<81xf32, #tpu.memory_space<smem>>
    %165 = vector.broadcast %164 : f32 to vector<14x14xf32>
    %166 = arith.mulf %155, %165 : vector<14x14xf32>
    %167 = arith.addf %154, %166 : vector<14x14xf32>
    %168 = vector.extract_strided_slice %3 {offsets = [1, 0], sizes = [14, 14], strides = [1, 1]} : vector<16x16xf32> to vector<14x14xf32>
    %c12 = arith.constant 12 : index
    %169 = memref.load %arg2[%c12] : memref<81xf32, #tpu.memory_space<smem>>
    %170 = vector.broadcast %169 : f32 to vector<14x14xf32>
    %171 = arith.mulf %168, %170 : vector<14x14xf32>
    %172 = arith.addf %159, %171 : vector<14x14xf32>
    %c39 = arith.constant 39 : index
    %173 = memref.load %arg2[%c39] : memref<81xf32, #tpu.memory_space<smem>>
    %174 = vector.broadcast %173 : f32 to vector<14x14xf32>
    %175 = arith.mulf %168, %174 : vector<14x14xf32>
    %176 = arith.addf %163, %175 : vector<14x14xf32>
    %c66 = arith.constant 66 : index
    %177 = memref.load %arg2[%c66] : memref<81xf32, #tpu.memory_space<smem>>
    %178 = vector.broadcast %177 : f32 to vector<14x14xf32>
    %179 = arith.mulf %168, %178 : vector<14x14xf32>
    %180 = arith.addf %167, %179 : vector<14x14xf32>
    %181 = vector.extract_strided_slice %3 {offsets = [1, 1], sizes = [14, 14], strides = [1, 1]} : vector<16x16xf32> to vector<14x14xf32>
    %c13 = arith.constant 13 : index
    %182 = memref.load %arg2[%c13] : memref<81xf32, #tpu.memory_space<smem>>
    %183 = vector.broadcast %182 : f32 to vector<14x14xf32>
    %184 = arith.mulf %181, %183 : vector<14x14xf32>
    %185 = arith.addf %172, %184 : vector<14x14xf32>
    %c40 = arith.constant 40 : index
    %186 = memref.load %arg2[%c40] : memref<81xf32, #tpu.memory_space<smem>>
    %187 = vector.broadcast %186 : f32 to vector<14x14xf32>
    %188 = arith.mulf %181, %187 : vector<14x14xf32>
    %189 = arith.addf %176, %188 : vector<14x14xf32>
    %c67 = arith.constant 67 : index
    %190 = memref.load %arg2[%c67] : memref<81xf32, #tpu.memory_space<smem>>
    %191 = vector.broadcast %190 : f32 to vector<14x14xf32>
    %192 = arith.mulf %181, %191 : vector<14x14xf32>
    %193 = arith.addf %180, %192 : vector<14x14xf32>
    %194 = vector.extract_strided_slice %3 {offsets = [1, 2], sizes = [14, 14], strides = [1, 1]} : vector<16x16xf32> to vector<14x14xf32>
    %c14 = arith.constant 14 : index
    %195 = memref.load %arg2[%c14] : memref<81xf32, #tpu.memory_space<smem>>
    %196 = vector.broadcast %195 : f32 to vector<14x14xf32>
    %197 = arith.mulf %194, %196 : vector<14x14xf32>
    %198 = arith.addf %185, %197 : vector<14x14xf32>
    %c41 = arith.constant 41 : index
    %199 = memref.load %arg2[%c41] : memref<81xf32, #tpu.memory_space<smem>>
    %200 = vector.broadcast %199 : f32 to vector<14x14xf32>
    %201 = arith.mulf %194, %200 : vector<14x14xf32>
    %202 = arith.addf %189, %201 : vector<14x14xf32>
    %c68 = arith.constant 68 : index
    %203 = memref.load %arg2[%c68] : memref<81xf32, #tpu.memory_space<smem>>
    %204 = vector.broadcast %203 : f32 to vector<14x14xf32>
    %205 = arith.mulf %194, %204 : vector<14x14xf32>
    %206 = arith.addf %193, %205 : vector<14x14xf32>
    %207 = vector.extract_strided_slice %3 {offsets = [2, 0], sizes = [14, 14], strides = [1, 1]} : vector<16x16xf32> to vector<14x14xf32>
    %c15 = arith.constant 15 : index
    %208 = memref.load %arg2[%c15] : memref<81xf32, #tpu.memory_space<smem>>
    %209 = vector.broadcast %208 : f32 to vector<14x14xf32>
    %210 = arith.mulf %207, %209 : vector<14x14xf32>
    %211 = arith.addf %198, %210 : vector<14x14xf32>
    %c42 = arith.constant 42 : index
    %212 = memref.load %arg2[%c42] : memref<81xf32, #tpu.memory_space<smem>>
    %213 = vector.broadcast %212 : f32 to vector<14x14xf32>
    %214 = arith.mulf %207, %213 : vector<14x14xf32>
    %215 = arith.addf %202, %214 : vector<14x14xf32>
    %c69 = arith.constant 69 : index
    %216 = memref.load %arg2[%c69] : memref<81xf32, #tpu.memory_space<smem>>
    %217 = vector.broadcast %216 : f32 to vector<14x14xf32>
    %218 = arith.mulf %207, %217 : vector<14x14xf32>
    %219 = arith.addf %206, %218 : vector<14x14xf32>
    %220 = vector.extract_strided_slice %3 {offsets = [2, 1], sizes = [14, 14], strides = [1, 1]} : vector<16x16xf32> to vector<14x14xf32>
    %c16 = arith.constant 16 : index
    %221 = memref.load %arg2[%c16] : memref<81xf32, #tpu.memory_space<smem>>
    %222 = vector.broadcast %221 : f32 to vector<14x14xf32>
    %223 = arith.mulf %220, %222 : vector<14x14xf32>
    %224 = arith.addf %211, %223 : vector<14x14xf32>
    %c43 = arith.constant 43 : index
    %225 = memref.load %arg2[%c43] : memref<81xf32, #tpu.memory_space<smem>>
    %226 = vector.broadcast %225 : f32 to vector<14x14xf32>
    %227 = arith.mulf %220, %226 : vector<14x14xf32>
    %228 = arith.addf %215, %227 : vector<14x14xf32>
    %c70 = arith.constant 70 : index
    %229 = memref.load %arg2[%c70] : memref<81xf32, #tpu.memory_space<smem>>
    %230 = vector.broadcast %229 : f32 to vector<14x14xf32>
    %231 = arith.mulf %220, %230 : vector<14x14xf32>
    %232 = arith.addf %219, %231 : vector<14x14xf32>
    %233 = vector.extract_strided_slice %3 {offsets = [2, 2], sizes = [14, 14], strides = [1, 1]} : vector<16x16xf32> to vector<14x14xf32>
    %c17 = arith.constant 17 : index
    %234 = memref.load %arg2[%c17] : memref<81xf32, #tpu.memory_space<smem>>
    %235 = vector.broadcast %234 : f32 to vector<14x14xf32>
    %236 = arith.mulf %233, %235 : vector<14x14xf32>
    %237 = arith.addf %224, %236 : vector<14x14xf32>
    %c44 = arith.constant 44 : index
    %238 = memref.load %arg2[%c44] : memref<81xf32, #tpu.memory_space<smem>>
    %239 = vector.broadcast %238 : f32 to vector<14x14xf32>
    %240 = arith.mulf %233, %239 : vector<14x14xf32>
    %241 = arith.addf %228, %240 : vector<14x14xf32>
    %c71 = arith.constant 71 : index
    %242 = memref.load %arg2[%c71] : memref<81xf32, #tpu.memory_space<smem>>
    %243 = vector.broadcast %242 : f32 to vector<14x14xf32>
    %244 = arith.mulf %233, %243 : vector<14x14xf32>
    %245 = arith.addf %232, %244 : vector<14x14xf32>
    %246 = vector.extract_strided_slice %5 {offsets = [0, 0], sizes = [14, 14], strides = [1, 1]} : vector<16x16xf32> to vector<14x14xf32>
    %c18 = arith.constant 18 : index
    %247 = memref.load %arg2[%c18] : memref<81xf32, #tpu.memory_space<smem>>
    %248 = vector.broadcast %247 : f32 to vector<14x14xf32>
    %249 = arith.mulf %246, %248 : vector<14x14xf32>
    %250 = arith.addf %237, %249 : vector<14x14xf32>
    %c45 = arith.constant 45 : index
    %251 = memref.load %arg2[%c45] : memref<81xf32, #tpu.memory_space<smem>>
    %252 = vector.broadcast %251 : f32 to vector<14x14xf32>
    %253 = arith.mulf %246, %252 : vector<14x14xf32>
    %254 = arith.addf %241, %253 : vector<14x14xf32>
    %c72 = arith.constant 72 : index
    %255 = memref.load %arg2[%c72] : memref<81xf32, #tpu.memory_space<smem>>
    %256 = vector.broadcast %255 : f32 to vector<14x14xf32>
    %257 = arith.mulf %246, %256 : vector<14x14xf32>
    %258 = arith.addf %245, %257 : vector<14x14xf32>
    %259 = vector.extract_strided_slice %5 {offsets = [0, 1], sizes = [14, 14], strides = [1, 1]} : vector<16x16xf32> to vector<14x14xf32>
    %c19 = arith.constant 19 : index
    %260 = memref.load %arg2[%c19] : memref<81xf32, #tpu.memory_space<smem>>
    %261 = vector.broadcast %260 : f32 to vector<14x14xf32>
    %262 = arith.mulf %259, %261 : vector<14x14xf32>
    %263 = arith.addf %250, %262 : vector<14x14xf32>
    %c46 = arith.constant 46 : index
    %264 = memref.load %arg2[%c46] : memref<81xf32, #tpu.memory_space<smem>>
    %265 = vector.broadcast %264 : f32 to vector<14x14xf32>
    %266 = arith.mulf %259, %265 : vector<14x14xf32>
    %267 = arith.addf %254, %266 : vector<14x14xf32>
    %c73 = arith.constant 73 : index
    %268 = memref.load %arg2[%c73] : memref<81xf32, #tpu.memory_space<smem>>
    %269 = vector.broadcast %268 : f32 to vector<14x14xf32>
    %270 = arith.mulf %259, %269 : vector<14x14xf32>
    %271 = arith.addf %258, %270 : vector<14x14xf32>
    %272 = vector.extract_strided_slice %5 {offsets = [0, 2], sizes = [14, 14], strides = [1, 1]} : vector<16x16xf32> to vector<14x14xf32>
    %c20 = arith.constant 20 : index
    %273 = memref.load %arg2[%c20] : memref<81xf32, #tpu.memory_space<smem>>
    %274 = vector.broadcast %273 : f32 to vector<14x14xf32>
    %275 = arith.mulf %272, %274 : vector<14x14xf32>
    %276 = arith.addf %263, %275 : vector<14x14xf32>
    %c47 = arith.constant 47 : index
    %277 = memref.load %arg2[%c47] : memref<81xf32, #tpu.memory_space<smem>>
    %278 = vector.broadcast %277 : f32 to vector<14x14xf32>
    %279 = arith.mulf %272, %278 : vector<14x14xf32>
    %280 = arith.addf %267, %279 : vector<14x14xf32>
    %c74 = arith.constant 74 : index
    %281 = memref.load %arg2[%c74] : memref<81xf32, #tpu.memory_space<smem>>
    %282 = vector.broadcast %281 : f32 to vector<14x14xf32>
    %283 = arith.mulf %272, %282 : vector<14x14xf32>
    %284 = arith.addf %271, %283 : vector<14x14xf32>
    %285 = vector.extract_strided_slice %5 {offsets = [1, 0], sizes = [14, 14], strides = [1, 1]} : vector<16x16xf32> to vector<14x14xf32>
    %c21 = arith.constant 21 : index
    %286 = memref.load %arg2[%c21] : memref<81xf32, #tpu.memory_space<smem>>
    %287 = vector.broadcast %286 : f32 to vector<14x14xf32>
    %288 = arith.mulf %285, %287 : vector<14x14xf32>
    %289 = arith.addf %276, %288 : vector<14x14xf32>
    %c48 = arith.constant 48 : index
    %290 = memref.load %arg2[%c48] : memref<81xf32, #tpu.memory_space<smem>>
    %291 = vector.broadcast %290 : f32 to vector<14x14xf32>
    %292 = arith.mulf %285, %291 : vector<14x14xf32>
    %293 = arith.addf %280, %292 : vector<14x14xf32>
    %c75 = arith.constant 75 : index
    %294 = memref.load %arg2[%c75] : memref<81xf32, #tpu.memory_space<smem>>
    %295 = vector.broadcast %294 : f32 to vector<14x14xf32>
    %296 = arith.mulf %285, %295 : vector<14x14xf32>
    %297 = arith.addf %284, %296 : vector<14x14xf32>
    %298 = vector.extract_strided_slice %5 {offsets = [1, 1], sizes = [14, 14], strides = [1, 1]} : vector<16x16xf32> to vector<14x14xf32>
    %c22 = arith.constant 22 : index
    %299 = memref.load %arg2[%c22] : memref<81xf32, #tpu.memory_space<smem>>
    %300 = vector.broadcast %299 : f32 to vector<14x14xf32>
    %301 = arith.mulf %298, %300 : vector<14x14xf32>
    %302 = arith.addf %289, %301 : vector<14x14xf32>
    %c49 = arith.constant 49 : index
    %303 = memref.load %arg2[%c49] : memref<81xf32, #tpu.memory_space<smem>>
    %304 = vector.broadcast %303 : f32 to vector<14x14xf32>
    %305 = arith.mulf %298, %304 : vector<14x14xf32>
    %306 = arith.addf %293, %305 : vector<14x14xf32>
    %c76 = arith.constant 76 : index
    %307 = memref.load %arg2[%c76] : memref<81xf32, #tpu.memory_space<smem>>
    %308 = vector.broadcast %307 : f32 to vector<14x14xf32>
    %309 = arith.mulf %298, %308 : vector<14x14xf32>
    %310 = arith.addf %297, %309 : vector<14x14xf32>
    %311 = vector.extract_strided_slice %5 {offsets = [1, 2], sizes = [14, 14], strides = [1, 1]} : vector<16x16xf32> to vector<14x14xf32>
    %c23 = arith.constant 23 : index
    %312 = memref.load %arg2[%c23] : memref<81xf32, #tpu.memory_space<smem>>
    %313 = vector.broadcast %312 : f32 to vector<14x14xf32>
    %314 = arith.mulf %311, %313 : vector<14x14xf32>
    %315 = arith.addf %302, %314 : vector<14x14xf32>
    %c50 = arith.constant 50 : index
    %316 = memref.load %arg2[%c50] : memref<81xf32, #tpu.memory_space<smem>>
    %317 = vector.broadcast %316 : f32 to vector<14x14xf32>
    %318 = arith.mulf %311, %317 : vector<14x14xf32>
    %319 = arith.addf %306, %318 : vector<14x14xf32>
    %c77 = arith.constant 77 : index
    %320 = memref.load %arg2[%c77] : memref<81xf32, #tpu.memory_space<smem>>
    %321 = vector.broadcast %320 : f32 to vector<14x14xf32>
    %322 = arith.mulf %311, %321 : vector<14x14xf32>
    %323 = arith.addf %310, %322 : vector<14x14xf32>
    %324 = vector.extract_strided_slice %5 {offsets = [2, 0], sizes = [14, 14], strides = [1, 1]} : vector<16x16xf32> to vector<14x14xf32>
    %c24 = arith.constant 24 : index
    %325 = memref.load %arg2[%c24] : memref<81xf32, #tpu.memory_space<smem>>
    %326 = vector.broadcast %325 : f32 to vector<14x14xf32>
    %327 = arith.mulf %324, %326 : vector<14x14xf32>
    %328 = arith.addf %315, %327 : vector<14x14xf32>
    %c51 = arith.constant 51 : index
    %329 = memref.load %arg2[%c51] : memref<81xf32, #tpu.memory_space<smem>>
    %330 = vector.broadcast %329 : f32 to vector<14x14xf32>
    %331 = arith.mulf %324, %330 : vector<14x14xf32>
    %332 = arith.addf %319, %331 : vector<14x14xf32>
    %c78 = arith.constant 78 : index
    %333 = memref.load %arg2[%c78] : memref<81xf32, #tpu.memory_space<smem>>
    %334 = vector.broadcast %333 : f32 to vector<14x14xf32>
    %335 = arith.mulf %324, %334 : vector<14x14xf32>
    %336 = arith.addf %323, %335 : vector<14x14xf32>
    %337 = vector.extract_strided_slice %5 {offsets = [2, 1], sizes = [14, 14], strides = [1, 1]} : vector<16x16xf32> to vector<14x14xf32>
    %c25 = arith.constant 25 : index
    %338 = memref.load %arg2[%c25] : memref<81xf32, #tpu.memory_space<smem>>
    %339 = vector.broadcast %338 : f32 to vector<14x14xf32>
    %340 = arith.mulf %337, %339 : vector<14x14xf32>
    %341 = arith.addf %328, %340 : vector<14x14xf32>
    %c52 = arith.constant 52 : index
    %342 = memref.load %arg2[%c52] : memref<81xf32, #tpu.memory_space<smem>>
    %343 = vector.broadcast %342 : f32 to vector<14x14xf32>
    %344 = arith.mulf %337, %343 : vector<14x14xf32>
    %345 = arith.addf %332, %344 : vector<14x14xf32>
    %c79 = arith.constant 79 : index
    %346 = memref.load %arg2[%c79] : memref<81xf32, #tpu.memory_space<smem>>
    %347 = vector.broadcast %346 : f32 to vector<14x14xf32>
    %348 = arith.mulf %337, %347 : vector<14x14xf32>
    %349 = arith.addf %336, %348 : vector<14x14xf32>
    %350 = vector.extract_strided_slice %5 {offsets = [2, 2], sizes = [14, 14], strides = [1, 1]} : vector<16x16xf32> to vector<14x14xf32>
    %c26 = arith.constant 26 : index
    %351 = memref.load %arg2[%c26] : memref<81xf32, #tpu.memory_space<smem>>
    %352 = vector.broadcast %351 : f32 to vector<14x14xf32>
    %353 = arith.mulf %350, %352 : vector<14x14xf32>
    %354 = arith.addf %341, %353 : vector<14x14xf32>
    %c53 = arith.constant 53 : index
    %355 = memref.load %arg2[%c53] : memref<81xf32, #tpu.memory_space<smem>>
    %356 = vector.broadcast %355 : f32 to vector<14x14xf32>
    %357 = arith.mulf %350, %356 : vector<14x14xf32>
    %358 = arith.addf %345, %357 : vector<14x14xf32>
    %c80 = arith.constant 80 : index
    %359 = memref.load %arg2[%c80] : memref<81xf32, #tpu.memory_space<smem>>
    %360 = vector.broadcast %359 : f32 to vector<14x14xf32>
    %361 = arith.mulf %350, %360 : vector<14x14xf32>
    %362 = arith.addf %349, %361 : vector<14x14xf32>
    %c0_15 = arith.constant 0 : index
    %363 = memref.load %arg5[%c0_15] : memref<3xf32, #tpu.memory_space<smem>>
    %364 = vector.broadcast %363 : f32 to vector<12x12xf32>
    %c1_16 = arith.constant 1 : index
    %365 = memref.load %arg5[%c1_16] : memref<3xf32, #tpu.memory_space<smem>>
    %366 = vector.broadcast %365 : f32 to vector<12x12xf32>
    %c2_17 = arith.constant 2 : index
    %367 = memref.load %arg5[%c2_17] : memref<3xf32, #tpu.memory_space<smem>>
    %368 = vector.broadcast %367 : f32 to vector<12x12xf32>
    %369 = vector.extract_strided_slice %354 {offsets = [0, 0], sizes = [12, 12], strides = [1, 1]} : vector<14x14xf32> to vector<12x12xf32>
    %c0_18 = arith.constant 0 : index
    %370 = memref.load %arg4[%c0_18] : memref<81xf32, #tpu.memory_space<smem>>
    %371 = vector.broadcast %370 : f32 to vector<12x12xf32>
    %372 = arith.mulf %369, %371 : vector<12x12xf32>
    %373 = arith.addf %364, %372 : vector<12x12xf32>
    %c27_19 = arith.constant 27 : index
    %374 = memref.load %arg4[%c27_19] : memref<81xf32, #tpu.memory_space<smem>>
    %375 = vector.broadcast %374 : f32 to vector<12x12xf32>
    %376 = arith.mulf %369, %375 : vector<12x12xf32>
    %377 = arith.addf %366, %376 : vector<12x12xf32>
    %c54_20 = arith.constant 54 : index
    %378 = memref.load %arg4[%c54_20] : memref<81xf32, #tpu.memory_space<smem>>
    %379 = vector.broadcast %378 : f32 to vector<12x12xf32>
    %380 = arith.mulf %369, %379 : vector<12x12xf32>
    %381 = arith.addf %368, %380 : vector<12x12xf32>
    %382 = vector.extract_strided_slice %354 {offsets = [0, 1], sizes = [12, 12], strides = [1, 1]} : vector<14x14xf32> to vector<12x12xf32>
    %c1_21 = arith.constant 1 : index
    %383 = memref.load %arg4[%c1_21] : memref<81xf32, #tpu.memory_space<smem>>
    %384 = vector.broadcast %383 : f32 to vector<12x12xf32>
    %385 = arith.mulf %382, %384 : vector<12x12xf32>
    %386 = arith.addf %373, %385 : vector<12x12xf32>
    %c28_22 = arith.constant 28 : index
    %387 = memref.load %arg4[%c28_22] : memref<81xf32, #tpu.memory_space<smem>>
    %388 = vector.broadcast %387 : f32 to vector<12x12xf32>
    %389 = arith.mulf %382, %388 : vector<12x12xf32>
    %390 = arith.addf %377, %389 : vector<12x12xf32>
    %c55_23 = arith.constant 55 : index
    %391 = memref.load %arg4[%c55_23] : memref<81xf32, #tpu.memory_space<smem>>
    %392 = vector.broadcast %391 : f32 to vector<12x12xf32>
    %393 = arith.mulf %382, %392 : vector<12x12xf32>
    %394 = arith.addf %381, %393 : vector<12x12xf32>
    %395 = vector.extract_strided_slice %354 {offsets = [0, 2], sizes = [12, 12], strides = [1, 1]} : vector<14x14xf32> to vector<12x12xf32>
    %c2_24 = arith.constant 2 : index
    %396 = memref.load %arg4[%c2_24] : memref<81xf32, #tpu.memory_space<smem>>
    %397 = vector.broadcast %396 : f32 to vector<12x12xf32>
    %398 = arith.mulf %395, %397 : vector<12x12xf32>
    %399 = arith.addf %386, %398 : vector<12x12xf32>
    %c29_25 = arith.constant 29 : index
    %400 = memref.load %arg4[%c29_25] : memref<81xf32, #tpu.memory_space<smem>>
    %401 = vector.broadcast %400 : f32 to vector<12x12xf32>
    %402 = arith.mulf %395, %401 : vector<12x12xf32>
    %403 = arith.addf %390, %402 : vector<12x12xf32>
    %c56_26 = arith.constant 56 : index
    %404 = memref.load %arg4[%c56_26] : memref<81xf32, #tpu.memory_space<smem>>
    %405 = vector.broadcast %404 : f32 to vector<12x12xf32>
    %406 = arith.mulf %395, %405 : vector<12x12xf32>
    %407 = arith.addf %394, %406 : vector<12x12xf32>
    %408 = vector.extract_strided_slice %354 {offsets = [1, 0], sizes = [12, 12], strides = [1, 1]} : vector<14x14xf32> to vector<12x12xf32>
    %c3_27 = arith.constant 3 : index
    %409 = memref.load %arg4[%c3_27] : memref<81xf32, #tpu.memory_space<smem>>
    %410 = vector.broadcast %409 : f32 to vector<12x12xf32>
    %411 = arith.mulf %408, %410 : vector<12x12xf32>
    %412 = arith.addf %399, %411 : vector<12x12xf32>
    %c30_28 = arith.constant 30 : index
    %413 = memref.load %arg4[%c30_28] : memref<81xf32, #tpu.memory_space<smem>>
    %414 = vector.broadcast %413 : f32 to vector<12x12xf32>
    %415 = arith.mulf %408, %414 : vector<12x12xf32>
    %416 = arith.addf %403, %415 : vector<12x12xf32>
    %c57_29 = arith.constant 57 : index
    %417 = memref.load %arg4[%c57_29] : memref<81xf32, #tpu.memory_space<smem>>
    %418 = vector.broadcast %417 : f32 to vector<12x12xf32>
    %419 = arith.mulf %408, %418 : vector<12x12xf32>
    %420 = arith.addf %407, %419 : vector<12x12xf32>
    %421 = vector.extract_strided_slice %354 {offsets = [1, 1], sizes = [12, 12], strides = [1, 1]} : vector<14x14xf32> to vector<12x12xf32>
    %c4_30 = arith.constant 4 : index
    %422 = memref.load %arg4[%c4_30] : memref<81xf32, #tpu.memory_space<smem>>
    %423 = vector.broadcast %422 : f32 to vector<12x12xf32>
    %424 = arith.mulf %421, %423 : vector<12x12xf32>
    %425 = arith.addf %412, %424 : vector<12x12xf32>
    %c31_31 = arith.constant 31 : index
    %426 = memref.load %arg4[%c31_31] : memref<81xf32, #tpu.memory_space<smem>>
    %427 = vector.broadcast %426 : f32 to vector<12x12xf32>
    %428 = arith.mulf %421, %427 : vector<12x12xf32>
    %429 = arith.addf %416, %428 : vector<12x12xf32>
    %c58_32 = arith.constant 58 : index
    %430 = memref.load %arg4[%c58_32] : memref<81xf32, #tpu.memory_space<smem>>
    %431 = vector.broadcast %430 : f32 to vector<12x12xf32>
    %432 = arith.mulf %421, %431 : vector<12x12xf32>
    %433 = arith.addf %420, %432 : vector<12x12xf32>
    %434 = vector.extract_strided_slice %354 {offsets = [1, 2], sizes = [12, 12], strides = [1, 1]} : vector<14x14xf32> to vector<12x12xf32>
    %c5_33 = arith.constant 5 : index
    %435 = memref.load %arg4[%c5_33] : memref<81xf32, #tpu.memory_space<smem>>
    %436 = vector.broadcast %435 : f32 to vector<12x12xf32>
    %437 = arith.mulf %434, %436 : vector<12x12xf32>
    %438 = arith.addf %425, %437 : vector<12x12xf32>
    %c32_34 = arith.constant 32 : index
    %439 = memref.load %arg4[%c32_34] : memref<81xf32, #tpu.memory_space<smem>>
    %440 = vector.broadcast %439 : f32 to vector<12x12xf32>
    %441 = arith.mulf %434, %440 : vector<12x12xf32>
    %442 = arith.addf %429, %441 : vector<12x12xf32>
    %c59_35 = arith.constant 59 : index
    %443 = memref.load %arg4[%c59_35] : memref<81xf32, #tpu.memory_space<smem>>
    %444 = vector.broadcast %443 : f32 to vector<12x12xf32>
    %445 = arith.mulf %434, %444 : vector<12x12xf32>
    %446 = arith.addf %433, %445 : vector<12x12xf32>
    %447 = vector.extract_strided_slice %354 {offsets = [2, 0], sizes = [12, 12], strides = [1, 1]} : vector<14x14xf32> to vector<12x12xf32>
    %c6_36 = arith.constant 6 : index
    %448 = memref.load %arg4[%c6_36] : memref<81xf32, #tpu.memory_space<smem>>
    %449 = vector.broadcast %448 : f32 to vector<12x12xf32>
    %450 = arith.mulf %447, %449 : vector<12x12xf32>
    %451 = arith.addf %438, %450 : vector<12x12xf32>
    %c33_37 = arith.constant 33 : index
    %452 = memref.load %arg4[%c33_37] : memref<81xf32, #tpu.memory_space<smem>>
    %453 = vector.broadcast %452 : f32 to vector<12x12xf32>
    %454 = arith.mulf %447, %453 : vector<12x12xf32>
    %455 = arith.addf %442, %454 : vector<12x12xf32>
    %c60_38 = arith.constant 60 : index
    %456 = memref.load %arg4[%c60_38] : memref<81xf32, #tpu.memory_space<smem>>
    %457 = vector.broadcast %456 : f32 to vector<12x12xf32>
    %458 = arith.mulf %447, %457 : vector<12x12xf32>
    %459 = arith.addf %446, %458 : vector<12x12xf32>
    %460 = vector.extract_strided_slice %354 {offsets = [2, 1], sizes = [12, 12], strides = [1, 1]} : vector<14x14xf32> to vector<12x12xf32>
    %c7_39 = arith.constant 7 : index
    %461 = memref.load %arg4[%c7_39] : memref<81xf32, #tpu.memory_space<smem>>
    %462 = vector.broadcast %461 : f32 to vector<12x12xf32>
    %463 = arith.mulf %460, %462 : vector<12x12xf32>
    %464 = arith.addf %451, %463 : vector<12x12xf32>
    %c34_40 = arith.constant 34 : index
    %465 = memref.load %arg4[%c34_40] : memref<81xf32, #tpu.memory_space<smem>>
    %466 = vector.broadcast %465 : f32 to vector<12x12xf32>
    %467 = arith.mulf %460, %466 : vector<12x12xf32>
    %468 = arith.addf %455, %467 : vector<12x12xf32>
    %c61_41 = arith.constant 61 : index
    %469 = memref.load %arg4[%c61_41] : memref<81xf32, #tpu.memory_space<smem>>
    %470 = vector.broadcast %469 : f32 to vector<12x12xf32>
    %471 = arith.mulf %460, %470 : vector<12x12xf32>
    %472 = arith.addf %459, %471 : vector<12x12xf32>
    %473 = vector.extract_strided_slice %354 {offsets = [2, 2], sizes = [12, 12], strides = [1, 1]} : vector<14x14xf32> to vector<12x12xf32>
    %c8_42 = arith.constant 8 : index
    %474 = memref.load %arg4[%c8_42] : memref<81xf32, #tpu.memory_space<smem>>
    %475 = vector.broadcast %474 : f32 to vector<12x12xf32>
    %476 = arith.mulf %473, %475 : vector<12x12xf32>
    %477 = arith.addf %464, %476 : vector<12x12xf32>
    %c35_43 = arith.constant 35 : index
    %478 = memref.load %arg4[%c35_43] : memref<81xf32, #tpu.memory_space<smem>>
    %479 = vector.broadcast %478 : f32 to vector<12x12xf32>
    %480 = arith.mulf %473, %479 : vector<12x12xf32>
    %481 = arith.addf %468, %480 : vector<12x12xf32>
    %c62_44 = arith.constant 62 : index
    %482 = memref.load %arg4[%c62_44] : memref<81xf32, #tpu.memory_space<smem>>
    %483 = vector.broadcast %482 : f32 to vector<12x12xf32>
    %484 = arith.mulf %473, %483 : vector<12x12xf32>
    %485 = arith.addf %472, %484 : vector<12x12xf32>
    %486 = vector.extract_strided_slice %358 {offsets = [0, 0], sizes = [12, 12], strides = [1, 1]} : vector<14x14xf32> to vector<12x12xf32>
    %c9_45 = arith.constant 9 : index
    %487 = memref.load %arg4[%c9_45] : memref<81xf32, #tpu.memory_space<smem>>
    %488 = vector.broadcast %487 : f32 to vector<12x12xf32>
    %489 = arith.mulf %486, %488 : vector<12x12xf32>
    %490 = arith.addf %477, %489 : vector<12x12xf32>
    %c36_46 = arith.constant 36 : index
    %491 = memref.load %arg4[%c36_46] : memref<81xf32, #tpu.memory_space<smem>>
    %492 = vector.broadcast %491 : f32 to vector<12x12xf32>
    %493 = arith.mulf %486, %492 : vector<12x12xf32>
    %494 = arith.addf %481, %493 : vector<12x12xf32>
    %c63_47 = arith.constant 63 : index
    %495 = memref.load %arg4[%c63_47] : memref<81xf32, #tpu.memory_space<smem>>
    %496 = vector.broadcast %495 : f32 to vector<12x12xf32>
    %497 = arith.mulf %486, %496 : vector<12x12xf32>
    %498 = arith.addf %485, %497 : vector<12x12xf32>
    %499 = vector.extract_strided_slice %358 {offsets = [0, 1], sizes = [12, 12], strides = [1, 1]} : vector<14x14xf32> to vector<12x12xf32>
    %c10_48 = arith.constant 10 : index
    %500 = memref.load %arg4[%c10_48] : memref<81xf32, #tpu.memory_space<smem>>
    %501 = vector.broadcast %500 : f32 to vector<12x12xf32>
    %502 = arith.mulf %499, %501 : vector<12x12xf32>
    %503 = arith.addf %490, %502 : vector<12x12xf32>
    %c37_49 = arith.constant 37 : index
    %504 = memref.load %arg4[%c37_49] : memref<81xf32, #tpu.memory_space<smem>>
    %505 = vector.broadcast %504 : f32 to vector<12x12xf32>
    %506 = arith.mulf %499, %505 : vector<12x12xf32>
    %507 = arith.addf %494, %506 : vector<12x12xf32>
    %c64_50 = arith.constant 64 : index
    %508 = memref.load %arg4[%c64_50] : memref<81xf32, #tpu.memory_space<smem>>
    %509 = vector.broadcast %508 : f32 to vector<12x12xf32>
    %510 = arith.mulf %499, %509 : vector<12x12xf32>
    %511 = arith.addf %498, %510 : vector<12x12xf32>
    %512 = vector.extract_strided_slice %358 {offsets = [0, 2], sizes = [12, 12], strides = [1, 1]} : vector<14x14xf32> to vector<12x12xf32>
    %c11_51 = arith.constant 11 : index
    %513 = memref.load %arg4[%c11_51] : memref<81xf32, #tpu.memory_space<smem>>
    %514 = vector.broadcast %513 : f32 to vector<12x12xf32>
    %515 = arith.mulf %512, %514 : vector<12x12xf32>
    %516 = arith.addf %503, %515 : vector<12x12xf32>
    %c38_52 = arith.constant 38 : index
    %517 = memref.load %arg4[%c38_52] : memref<81xf32, #tpu.memory_space<smem>>
    %518 = vector.broadcast %517 : f32 to vector<12x12xf32>
    %519 = arith.mulf %512, %518 : vector<12x12xf32>
    %520 = arith.addf %507, %519 : vector<12x12xf32>
    %c65_53 = arith.constant 65 : index
    %521 = memref.load %arg4[%c65_53] : memref<81xf32, #tpu.memory_space<smem>>
    %522 = vector.broadcast %521 : f32 to vector<12x12xf32>
    %523 = arith.mulf %512, %522 : vector<12x12xf32>
    %524 = arith.addf %511, %523 : vector<12x12xf32>
    %525 = vector.extract_strided_slice %358 {offsets = [1, 0], sizes = [12, 12], strides = [1, 1]} : vector<14x14xf32> to vector<12x12xf32>
    %c12_54 = arith.constant 12 : index
    %526 = memref.load %arg4[%c12_54] : memref<81xf32, #tpu.memory_space<smem>>
    %527 = vector.broadcast %526 : f32 to vector<12x12xf32>
    %528 = arith.mulf %525, %527 : vector<12x12xf32>
    %529 = arith.addf %516, %528 : vector<12x12xf32>
    %c39_55 = arith.constant 39 : index
    %530 = memref.load %arg4[%c39_55] : memref<81xf32, #tpu.memory_space<smem>>
    %531 = vector.broadcast %530 : f32 to vector<12x12xf32>
    %532 = arith.mulf %525, %531 : vector<12x12xf32>
    %533 = arith.addf %520, %532 : vector<12x12xf32>
    %c66_56 = arith.constant 66 : index
    %534 = memref.load %arg4[%c66_56] : memref<81xf32, #tpu.memory_space<smem>>
    %535 = vector.broadcast %534 : f32 to vector<12x12xf32>
    %536 = arith.mulf %525, %535 : vector<12x12xf32>
    %537 = arith.addf %524, %536 : vector<12x12xf32>
    %538 = vector.extract_strided_slice %358 {offsets = [1, 1], sizes = [12, 12], strides = [1, 1]} : vector<14x14xf32> to vector<12x12xf32>
    %c13_57 = arith.constant 13 : index
    %539 = memref.load %arg4[%c13_57] : memref<81xf32, #tpu.memory_space<smem>>
    %540 = vector.broadcast %539 : f32 to vector<12x12xf32>
    %541 = arith.mulf %538, %540 : vector<12x12xf32>
    %542 = arith.addf %529, %541 : vector<12x12xf32>
    %c40_58 = arith.constant 40 : index
    %543 = memref.load %arg4[%c40_58] : memref<81xf32, #tpu.memory_space<smem>>
    %544 = vector.broadcast %543 : f32 to vector<12x12xf32>
    %545 = arith.mulf %538, %544 : vector<12x12xf32>
    %546 = arith.addf %533, %545 : vector<12x12xf32>
    %c67_59 = arith.constant 67 : index
    %547 = memref.load %arg4[%c67_59] : memref<81xf32, #tpu.memory_space<smem>>
    %548 = vector.broadcast %547 : f32 to vector<12x12xf32>
    %549 = arith.mulf %538, %548 : vector<12x12xf32>
    %550 = arith.addf %537, %549 : vector<12x12xf32>
    %551 = vector.extract_strided_slice %358 {offsets = [1, 2], sizes = [12, 12], strides = [1, 1]} : vector<14x14xf32> to vector<12x12xf32>
    %c14_60 = arith.constant 14 : index
    %552 = memref.load %arg4[%c14_60] : memref<81xf32, #tpu.memory_space<smem>>
    %553 = vector.broadcast %552 : f32 to vector<12x12xf32>
    %554 = arith.mulf %551, %553 : vector<12x12xf32>
    %555 = arith.addf %542, %554 : vector<12x12xf32>
    %c41_61 = arith.constant 41 : index
    %556 = memref.load %arg4[%c41_61] : memref<81xf32, #tpu.memory_space<smem>>
    %557 = vector.broadcast %556 : f32 to vector<12x12xf32>
    %558 = arith.mulf %551, %557 : vector<12x12xf32>
    %559 = arith.addf %546, %558 : vector<12x12xf32>
    %c68_62 = arith.constant 68 : index
    %560 = memref.load %arg4[%c68_62] : memref<81xf32, #tpu.memory_space<smem>>
    %561 = vector.broadcast %560 : f32 to vector<12x12xf32>
    %562 = arith.mulf %551, %561 : vector<12x12xf32>
    %563 = arith.addf %550, %562 : vector<12x12xf32>
    %564 = vector.extract_strided_slice %358 {offsets = [2, 0], sizes = [12, 12], strides = [1, 1]} : vector<14x14xf32> to vector<12x12xf32>
    %c15_63 = arith.constant 15 : index
    %565 = memref.load %arg4[%c15_63] : memref<81xf32, #tpu.memory_space<smem>>
    %566 = vector.broadcast %565 : f32 to vector<12x12xf32>
    %567 = arith.mulf %564, %566 : vector<12x12xf32>
    %568 = arith.addf %555, %567 : vector<12x12xf32>
    %c42_64 = arith.constant 42 : index
    %569 = memref.load %arg4[%c42_64] : memref<81xf32, #tpu.memory_space<smem>>
    %570 = vector.broadcast %569 : f32 to vector<12x12xf32>
    %571 = arith.mulf %564, %570 : vector<12x12xf32>
    %572 = arith.addf %559, %571 : vector<12x12xf32>
    %c69_65 = arith.constant 69 : index
    %573 = memref.load %arg4[%c69_65] : memref<81xf32, #tpu.memory_space<smem>>
    %574 = vector.broadcast %573 : f32 to vector<12x12xf32>
    %575 = arith.mulf %564, %574 : vector<12x12xf32>
    %576 = arith.addf %563, %575 : vector<12x12xf32>
    %577 = vector.extract_strided_slice %358 {offsets = [2, 1], sizes = [12, 12], strides = [1, 1]} : vector<14x14xf32> to vector<12x12xf32>
    %c16_66 = arith.constant 16 : index
    %578 = memref.load %arg4[%c16_66] : memref<81xf32, #tpu.memory_space<smem>>
    %579 = vector.broadcast %578 : f32 to vector<12x12xf32>
    %580 = arith.mulf %577, %579 : vector<12x12xf32>
    %581 = arith.addf %568, %580 : vector<12x12xf32>
    %c43_67 = arith.constant 43 : index
    %582 = memref.load %arg4[%c43_67] : memref<81xf32, #tpu.memory_space<smem>>
    %583 = vector.broadcast %582 : f32 to vector<12x12xf32>
    %584 = arith.mulf %577, %583 : vector<12x12xf32>
    %585 = arith.addf %572, %584 : vector<12x12xf32>
    %c70_68 = arith.constant 70 : index
    %586 = memref.load %arg4[%c70_68] : memref<81xf32, #tpu.memory_space<smem>>
    %587 = vector.broadcast %586 : f32 to vector<12x12xf32>
    %588 = arith.mulf %577, %587 : vector<12x12xf32>
    %589 = arith.addf %576, %588 : vector<12x12xf32>
    %590 = vector.extract_strided_slice %358 {offsets = [2, 2], sizes = [12, 12], strides = [1, 1]} : vector<14x14xf32> to vector<12x12xf32>
    %c17_69 = arith.constant 17 : index
    %591 = memref.load %arg4[%c17_69] : memref<81xf32, #tpu.memory_space<smem>>
    %592 = vector.broadcast %591 : f32 to vector<12x12xf32>
    %593 = arith.mulf %590, %592 : vector<12x12xf32>
    %594 = arith.addf %581, %593 : vector<12x12xf32>
    %c44_70 = arith.constant 44 : index
    %595 = memref.load %arg4[%c44_70] : memref<81xf32, #tpu.memory_space<smem>>
    %596 = vector.broadcast %595 : f32 to vector<12x12xf32>
    %597 = arith.mulf %590, %596 : vector<12x12xf32>
    %598 = arith.addf %585, %597 : vector<12x12xf32>
    %c71_71 = arith.constant 71 : index
    %599 = memref.load %arg4[%c71_71] : memref<81xf32, #tpu.memory_space<smem>>
    %600 = vector.broadcast %599 : f32 to vector<12x12xf32>
    %601 = arith.mulf %590, %600 : vector<12x12xf32>
    %602 = arith.addf %589, %601 : vector<12x12xf32>
    %603 = vector.extract_strided_slice %362 {offsets = [0, 0], sizes = [12, 12], strides = [1, 1]} : vector<14x14xf32> to vector<12x12xf32>
    %c18_72 = arith.constant 18 : index
    %604 = memref.load %arg4[%c18_72] : memref<81xf32, #tpu.memory_space<smem>>
    %605 = vector.broadcast %604 : f32 to vector<12x12xf32>
    %606 = arith.mulf %603, %605 : vector<12x12xf32>
    %607 = arith.addf %594, %606 : vector<12x12xf32>
    %c45_73 = arith.constant 45 : index
    %608 = memref.load %arg4[%c45_73] : memref<81xf32, #tpu.memory_space<smem>>
    %609 = vector.broadcast %608 : f32 to vector<12x12xf32>
    %610 = arith.mulf %603, %609 : vector<12x12xf32>
    %611 = arith.addf %598, %610 : vector<12x12xf32>
    %c72_74 = arith.constant 72 : index
    %612 = memref.load %arg4[%c72_74] : memref<81xf32, #tpu.memory_space<smem>>
    %613 = vector.broadcast %612 : f32 to vector<12x12xf32>
    %614 = arith.mulf %603, %613 : vector<12x12xf32>
    %615 = arith.addf %602, %614 : vector<12x12xf32>
    %616 = vector.extract_strided_slice %362 {offsets = [0, 1], sizes = [12, 12], strides = [1, 1]} : vector<14x14xf32> to vector<12x12xf32>
    %c19_75 = arith.constant 19 : index
    %617 = memref.load %arg4[%c19_75] : memref<81xf32, #tpu.memory_space<smem>>
    %618 = vector.broadcast %617 : f32 to vector<12x12xf32>
    %619 = arith.mulf %616, %618 : vector<12x12xf32>
    %620 = arith.addf %607, %619 : vector<12x12xf32>
    %c46_76 = arith.constant 46 : index
    %621 = memref.load %arg4[%c46_76] : memref<81xf32, #tpu.memory_space<smem>>
    %622 = vector.broadcast %621 : f32 to vector<12x12xf32>
    %623 = arith.mulf %616, %622 : vector<12x12xf32>
    %624 = arith.addf %611, %623 : vector<12x12xf32>
    %c73_77 = arith.constant 73 : index
    %625 = memref.load %arg4[%c73_77] : memref<81xf32, #tpu.memory_space<smem>>
    %626 = vector.broadcast %625 : f32 to vector<12x12xf32>
    %627 = arith.mulf %616, %626 : vector<12x12xf32>
    %628 = arith.addf %615, %627 : vector<12x12xf32>
    %629 = vector.extract_strided_slice %362 {offsets = [0, 2], sizes = [12, 12], strides = [1, 1]} : vector<14x14xf32> to vector<12x12xf32>
    %c20_78 = arith.constant 20 : index
    %630 = memref.load %arg4[%c20_78] : memref<81xf32, #tpu.memory_space<smem>>
    %631 = vector.broadcast %630 : f32 to vector<12x12xf32>
    %632 = arith.mulf %629, %631 : vector<12x12xf32>
    %633 = arith.addf %620, %632 : vector<12x12xf32>
    %c47_79 = arith.constant 47 : index
    %634 = memref.load %arg4[%c47_79] : memref<81xf32, #tpu.memory_space<smem>>
    %635 = vector.broadcast %634 : f32 to vector<12x12xf32>
    %636 = arith.mulf %629, %635 : vector<12x12xf32>
    %637 = arith.addf %624, %636 : vector<12x12xf32>
    %c74_80 = arith.constant 74 : index
    %638 = memref.load %arg4[%c74_80] : memref<81xf32, #tpu.memory_space<smem>>
    %639 = vector.broadcast %638 : f32 to vector<12x12xf32>
    %640 = arith.mulf %629, %639 : vector<12x12xf32>
    %641 = arith.addf %628, %640 : vector<12x12xf32>
    %642 = vector.extract_strided_slice %362 {offsets = [1, 0], sizes = [12, 12], strides = [1, 1]} : vector<14x14xf32> to vector<12x12xf32>
    %c21_81 = arith.constant 21 : index
    %643 = memref.load %arg4[%c21_81] : memref<81xf32, #tpu.memory_space<smem>>
    %644 = vector.broadcast %643 : f32 to vector<12x12xf32>
    %645 = arith.mulf %642, %644 : vector<12x12xf32>
    %646 = arith.addf %633, %645 : vector<12x12xf32>
    %c48_82 = arith.constant 48 : index
    %647 = memref.load %arg4[%c48_82] : memref<81xf32, #tpu.memory_space<smem>>
    %648 = vector.broadcast %647 : f32 to vector<12x12xf32>
    %649 = arith.mulf %642, %648 : vector<12x12xf32>
    %650 = arith.addf %637, %649 : vector<12x12xf32>
    %c75_83 = arith.constant 75 : index
    %651 = memref.load %arg4[%c75_83] : memref<81xf32, #tpu.memory_space<smem>>
    %652 = vector.broadcast %651 : f32 to vector<12x12xf32>
    %653 = arith.mulf %642, %652 : vector<12x12xf32>
    %654 = arith.addf %641, %653 : vector<12x12xf32>
    %655 = vector.extract_strided_slice %362 {offsets = [1, 1], sizes = [12, 12], strides = [1, 1]} : vector<14x14xf32> to vector<12x12xf32>
    %c22_84 = arith.constant 22 : index
    %656 = memref.load %arg4[%c22_84] : memref<81xf32, #tpu.memory_space<smem>>
    %657 = vector.broadcast %656 : f32 to vector<12x12xf32>
    %658 = arith.mulf %655, %657 : vector<12x12xf32>
    %659 = arith.addf %646, %658 : vector<12x12xf32>
    %c49_85 = arith.constant 49 : index
    %660 = memref.load %arg4[%c49_85] : memref<81xf32, #tpu.memory_space<smem>>
    %661 = vector.broadcast %660 : f32 to vector<12x12xf32>
    %662 = arith.mulf %655, %661 : vector<12x12xf32>
    %663 = arith.addf %650, %662 : vector<12x12xf32>
    %c76_86 = arith.constant 76 : index
    %664 = memref.load %arg4[%c76_86] : memref<81xf32, #tpu.memory_space<smem>>
    %665 = vector.broadcast %664 : f32 to vector<12x12xf32>
    %666 = arith.mulf %655, %665 : vector<12x12xf32>
    %667 = arith.addf %654, %666 : vector<12x12xf32>
    %668 = vector.extract_strided_slice %362 {offsets = [1, 2], sizes = [12, 12], strides = [1, 1]} : vector<14x14xf32> to vector<12x12xf32>
    %c23_87 = arith.constant 23 : index
    %669 = memref.load %arg4[%c23_87] : memref<81xf32, #tpu.memory_space<smem>>
    %670 = vector.broadcast %669 : f32 to vector<12x12xf32>
    %671 = arith.mulf %668, %670 : vector<12x12xf32>
    %672 = arith.addf %659, %671 : vector<12x12xf32>
    %c50_88 = arith.constant 50 : index
    %673 = memref.load %arg4[%c50_88] : memref<81xf32, #tpu.memory_space<smem>>
    %674 = vector.broadcast %673 : f32 to vector<12x12xf32>
    %675 = arith.mulf %668, %674 : vector<12x12xf32>
    %676 = arith.addf %663, %675 : vector<12x12xf32>
    %c77_89 = arith.constant 77 : index
    %677 = memref.load %arg4[%c77_89] : memref<81xf32, #tpu.memory_space<smem>>
    %678 = vector.broadcast %677 : f32 to vector<12x12xf32>
    %679 = arith.mulf %668, %678 : vector<12x12xf32>
    %680 = arith.addf %667, %679 : vector<12x12xf32>
    %681 = vector.extract_strided_slice %362 {offsets = [2, 0], sizes = [12, 12], strides = [1, 1]} : vector<14x14xf32> to vector<12x12xf32>
    %c24_90 = arith.constant 24 : index
    %682 = memref.load %arg4[%c24_90] : memref<81xf32, #tpu.memory_space<smem>>
    %683 = vector.broadcast %682 : f32 to vector<12x12xf32>
    %684 = arith.mulf %681, %683 : vector<12x12xf32>
    %685 = arith.addf %672, %684 : vector<12x12xf32>
    %c51_91 = arith.constant 51 : index
    %686 = memref.load %arg4[%c51_91] : memref<81xf32, #tpu.memory_space<smem>>
    %687 = vector.broadcast %686 : f32 to vector<12x12xf32>
    %688 = arith.mulf %681, %687 : vector<12x12xf32>
    %689 = arith.addf %676, %688 : vector<12x12xf32>
    %c78_92 = arith.constant 78 : index
    %690 = memref.load %arg4[%c78_92] : memref<81xf32, #tpu.memory_space<smem>>
    %691 = vector.broadcast %690 : f32 to vector<12x12xf32>
    %692 = arith.mulf %681, %691 : vector<12x12xf32>
    %693 = arith.addf %680, %692 : vector<12x12xf32>
    %694 = vector.extract_strided_slice %362 {offsets = [2, 1], sizes = [12, 12], strides = [1, 1]} : vector<14x14xf32> to vector<12x12xf32>
    %c25_93 = arith.constant 25 : index
    %695 = memref.load %arg4[%c25_93] : memref<81xf32, #tpu.memory_space<smem>>
    %696 = vector.broadcast %695 : f32 to vector<12x12xf32>
    %697 = arith.mulf %694, %696 : vector<12x12xf32>
    %698 = arith.addf %685, %697 : vector<12x12xf32>
    %c52_94 = arith.constant 52 : index
    %699 = memref.load %arg4[%c52_94] : memref<81xf32, #tpu.memory_space<smem>>
    %700 = vector.broadcast %699 : f32 to vector<12x12xf32>
    %701 = arith.mulf %694, %700 : vector<12x12xf32>
    %702 = arith.addf %689, %701 : vector<12x12xf32>
    %c79_95 = arith.constant 79 : index
    %703 = memref.load %arg4[%c79_95] : memref<81xf32, #tpu.memory_space<smem>>
    %704 = vector.broadcast %703 : f32 to vector<12x12xf32>
    %705 = arith.mulf %694, %704 : vector<12x12xf32>
    %706 = arith.addf %693, %705 : vector<12x12xf32>
    %707 = vector.extract_strided_slice %362 {offsets = [2, 2], sizes = [12, 12], strides = [1, 1]} : vector<14x14xf32> to vector<12x12xf32>
    %c26_96 = arith.constant 26 : index
    %708 = memref.load %arg4[%c26_96] : memref<81xf32, #tpu.memory_space<smem>>
    %709 = vector.broadcast %708 : f32 to vector<12x12xf32>
    %710 = arith.mulf %707, %709 : vector<12x12xf32>
    %711 = arith.addf %698, %710 : vector<12x12xf32>
    %c53_97 = arith.constant 53 : index
    %712 = memref.load %arg4[%c53_97] : memref<81xf32, #tpu.memory_space<smem>>
    %713 = vector.broadcast %712 : f32 to vector<12x12xf32>
    %714 = arith.mulf %707, %713 : vector<12x12xf32>
    %715 = arith.addf %702, %714 : vector<12x12xf32>
    %c80_98 = arith.constant 80 : index
    %716 = memref.load %arg4[%c80_98] : memref<81xf32, #tpu.memory_space<smem>>
    %717 = vector.broadcast %716 : f32 to vector<12x12xf32>
    %718 = arith.mulf %707, %717 : vector<12x12xf32>
    %719 = arith.addf %706, %718 : vector<12x12xf32>
    %c0_99 = arith.constant 0 : index
    %720 = memref.load %arg7[%c0_99] : memref<1xf32, #tpu.memory_space<smem>>
    %721 = vector.broadcast %720 : f32 to vector<10x10xf32>
    %722 = vector.extract_strided_slice %711 {offsets = [0, 0], sizes = [10, 10], strides = [1, 1]} : vector<12x12xf32> to vector<10x10xf32>
    %c0_100 = arith.constant 0 : index
    %723 = memref.load %arg6[%c0_100] : memref<27xf32, #tpu.memory_space<smem>>
    %724 = vector.broadcast %723 : f32 to vector<10x10xf32>
    %725 = arith.mulf %722, %724 : vector<10x10xf32>
    %726 = arith.addf %721, %725 : vector<10x10xf32>
    %727 = vector.extract_strided_slice %711 {offsets = [0, 1], sizes = [10, 10], strides = [1, 1]} : vector<12x12xf32> to vector<10x10xf32>
    %c1_101 = arith.constant 1 : index
    %728 = memref.load %arg6[%c1_101] : memref<27xf32, #tpu.memory_space<smem>>
    %729 = vector.broadcast %728 : f32 to vector<10x10xf32>
    %730 = arith.mulf %727, %729 : vector<10x10xf32>
    %731 = arith.addf %726, %730 : vector<10x10xf32>
    %732 = vector.extract_strided_slice %711 {offsets = [0, 2], sizes = [10, 10], strides = [1, 1]} : vector<12x12xf32> to vector<10x10xf32>
    %c2_102 = arith.constant 2 : index
    %733 = memref.load %arg6[%c2_102] : memref<27xf32, #tpu.memory_space<smem>>
    %734 = vector.broadcast %733 : f32 to vector<10x10xf32>
    %735 = arith.mulf %732, %734 : vector<10x10xf32>
    %736 = arith.addf %731, %735 : vector<10x10xf32>
    %737 = vector.extract_strided_slice %711 {offsets = [1, 0], sizes = [10, 10], strides = [1, 1]} : vector<12x12xf32> to vector<10x10xf32>
    %c3_103 = arith.constant 3 : index
    %738 = memref.load %arg6[%c3_103] : memref<27xf32, #tpu.memory_space<smem>>
    %739 = vector.broadcast %738 : f32 to vector<10x10xf32>
    %740 = arith.mulf %737, %739 : vector<10x10xf32>
    %741 = arith.addf %736, %740 : vector<10x10xf32>
    %742 = vector.extract_strided_slice %711 {offsets = [1, 1], sizes = [10, 10], strides = [1, 1]} : vector<12x12xf32> to vector<10x10xf32>
    %c4_104 = arith.constant 4 : index
    %743 = memref.load %arg6[%c4_104] : memref<27xf32, #tpu.memory_space<smem>>
    %744 = vector.broadcast %743 : f32 to vector<10x10xf32>
    %745 = arith.mulf %742, %744 : vector<10x10xf32>
    %746 = arith.addf %741, %745 : vector<10x10xf32>
    %747 = vector.extract_strided_slice %711 {offsets = [1, 2], sizes = [10, 10], strides = [1, 1]} : vector<12x12xf32> to vector<10x10xf32>
    %c5_105 = arith.constant 5 : index
    %748 = memref.load %arg6[%c5_105] : memref<27xf32, #tpu.memory_space<smem>>
    %749 = vector.broadcast %748 : f32 to vector<10x10xf32>
    %750 = arith.mulf %747, %749 : vector<10x10xf32>
    %751 = arith.addf %746, %750 : vector<10x10xf32>
    %752 = vector.extract_strided_slice %711 {offsets = [2, 0], sizes = [10, 10], strides = [1, 1]} : vector<12x12xf32> to vector<10x10xf32>
    %c6_106 = arith.constant 6 : index
    %753 = memref.load %arg6[%c6_106] : memref<27xf32, #tpu.memory_space<smem>>
    %754 = vector.broadcast %753 : f32 to vector<10x10xf32>
    %755 = arith.mulf %752, %754 : vector<10x10xf32>
    %756 = arith.addf %751, %755 : vector<10x10xf32>
    %757 = vector.extract_strided_slice %711 {offsets = [2, 1], sizes = [10, 10], strides = [1, 1]} : vector<12x12xf32> to vector<10x10xf32>
    %c7_107 = arith.constant 7 : index
    %758 = memref.load %arg6[%c7_107] : memref<27xf32, #tpu.memory_space<smem>>
    %759 = vector.broadcast %758 : f32 to vector<10x10xf32>
    %760 = arith.mulf %757, %759 : vector<10x10xf32>
    %761 = arith.addf %756, %760 : vector<10x10xf32>
    %762 = vector.extract_strided_slice %711 {offsets = [2, 2], sizes = [10, 10], strides = [1, 1]} : vector<12x12xf32> to vector<10x10xf32>
    %c8_108 = arith.constant 8 : index
    %763 = memref.load %arg6[%c8_108] : memref<27xf32, #tpu.memory_space<smem>>
    %764 = vector.broadcast %763 : f32 to vector<10x10xf32>
    %765 = arith.mulf %762, %764 : vector<10x10xf32>
    %766 = arith.addf %761, %765 : vector<10x10xf32>
    %767 = vector.extract_strided_slice %715 {offsets = [0, 0], sizes = [10, 10], strides = [1, 1]} : vector<12x12xf32> to vector<10x10xf32>
    %c9_109 = arith.constant 9 : index
    %768 = memref.load %arg6[%c9_109] : memref<27xf32, #tpu.memory_space<smem>>
    %769 = vector.broadcast %768 : f32 to vector<10x10xf32>
    %770 = arith.mulf %767, %769 : vector<10x10xf32>
    %771 = arith.addf %766, %770 : vector<10x10xf32>
    %772 = vector.extract_strided_slice %715 {offsets = [0, 1], sizes = [10, 10], strides = [1, 1]} : vector<12x12xf32> to vector<10x10xf32>
    %c10_110 = arith.constant 10 : index
    %773 = memref.load %arg6[%c10_110] : memref<27xf32, #tpu.memory_space<smem>>
    %774 = vector.broadcast %773 : f32 to vector<10x10xf32>
    %775 = arith.mulf %772, %774 : vector<10x10xf32>
    %776 = arith.addf %771, %775 : vector<10x10xf32>
    %777 = vector.extract_strided_slice %715 {offsets = [0, 2], sizes = [10, 10], strides = [1, 1]} : vector<12x12xf32> to vector<10x10xf32>
    %c11_111 = arith.constant 11 : index
    %778 = memref.load %arg6[%c11_111] : memref<27xf32, #tpu.memory_space<smem>>
    %779 = vector.broadcast %778 : f32 to vector<10x10xf32>
    %780 = arith.mulf %777, %779 : vector<10x10xf32>
    %781 = arith.addf %776, %780 : vector<10x10xf32>
    %782 = vector.extract_strided_slice %715 {offsets = [1, 0], sizes = [10, 10], strides = [1, 1]} : vector<12x12xf32> to vector<10x10xf32>
    %c12_112 = arith.constant 12 : index
    %783 = memref.load %arg6[%c12_112] : memref<27xf32, #tpu.memory_space<smem>>
    %784 = vector.broadcast %783 : f32 to vector<10x10xf32>
    %785 = arith.mulf %782, %784 : vector<10x10xf32>
    %786 = arith.addf %781, %785 : vector<10x10xf32>
    %787 = vector.extract_strided_slice %715 {offsets = [1, 1], sizes = [10, 10], strides = [1, 1]} : vector<12x12xf32> to vector<10x10xf32>
    %c13_113 = arith.constant 13 : index
    %788 = memref.load %arg6[%c13_113] : memref<27xf32, #tpu.memory_space<smem>>
    %789 = vector.broadcast %788 : f32 to vector<10x10xf32>
    %790 = arith.mulf %787, %789 : vector<10x10xf32>
    %791 = arith.addf %786, %790 : vector<10x10xf32>
    %792 = vector.extract_strided_slice %715 {offsets = [1, 2], sizes = [10, 10], strides = [1, 1]} : vector<12x12xf32> to vector<10x10xf32>
    %c14_114 = arith.constant 14 : index
    %793 = memref.load %arg6[%c14_114] : memref<27xf32, #tpu.memory_space<smem>>
    %794 = vector.broadcast %793 : f32 to vector<10x10xf32>
    %795 = arith.mulf %792, %794 : vector<10x10xf32>
    %796 = arith.addf %791, %795 : vector<10x10xf32>
    %797 = vector.extract_strided_slice %715 {offsets = [2, 0], sizes = [10, 10], strides = [1, 1]} : vector<12x12xf32> to vector<10x10xf32>
    %c15_115 = arith.constant 15 : index
    %798 = memref.load %arg6[%c15_115] : memref<27xf32, #tpu.memory_space<smem>>
    %799 = vector.broadcast %798 : f32 to vector<10x10xf32>
    %800 = arith.mulf %797, %799 : vector<10x10xf32>
    %801 = arith.addf %796, %800 : vector<10x10xf32>
    %802 = vector.extract_strided_slice %715 {offsets = [2, 1], sizes = [10, 10], strides = [1, 1]} : vector<12x12xf32> to vector<10x10xf32>
    %c16_116 = arith.constant 16 : index
    %803 = memref.load %arg6[%c16_116] : memref<27xf32, #tpu.memory_space<smem>>
    %804 = vector.broadcast %803 : f32 to vector<10x10xf32>
    %805 = arith.mulf %802, %804 : vector<10x10xf32>
    %806 = arith.addf %801, %805 : vector<10x10xf32>
    %807 = vector.extract_strided_slice %715 {offsets = [2, 2], sizes = [10, 10], strides = [1, 1]} : vector<12x12xf32> to vector<10x10xf32>
    %c17_117 = arith.constant 17 : index
    %808 = memref.load %arg6[%c17_117] : memref<27xf32, #tpu.memory_space<smem>>
    %809 = vector.broadcast %808 : f32 to vector<10x10xf32>
    %810 = arith.mulf %807, %809 : vector<10x10xf32>
    %811 = arith.addf %806, %810 : vector<10x10xf32>
    %812 = vector.extract_strided_slice %719 {offsets = [0, 0], sizes = [10, 10], strides = [1, 1]} : vector<12x12xf32> to vector<10x10xf32>
    %c18_118 = arith.constant 18 : index
    %813 = memref.load %arg6[%c18_118] : memref<27xf32, #tpu.memory_space<smem>>
    %814 = vector.broadcast %813 : f32 to vector<10x10xf32>
    %815 = arith.mulf %812, %814 : vector<10x10xf32>
    %816 = arith.addf %811, %815 : vector<10x10xf32>
    %817 = vector.extract_strided_slice %719 {offsets = [0, 1], sizes = [10, 10], strides = [1, 1]} : vector<12x12xf32> to vector<10x10xf32>
    %c19_119 = arith.constant 19 : index
    %818 = memref.load %arg6[%c19_119] : memref<27xf32, #tpu.memory_space<smem>>
    %819 = vector.broadcast %818 : f32 to vector<10x10xf32>
    %820 = arith.mulf %817, %819 : vector<10x10xf32>
    %821 = arith.addf %816, %820 : vector<10x10xf32>
    %822 = vector.extract_strided_slice %719 {offsets = [0, 2], sizes = [10, 10], strides = [1, 1]} : vector<12x12xf32> to vector<10x10xf32>
    %c20_120 = arith.constant 20 : index
    %823 = memref.load %arg6[%c20_120] : memref<27xf32, #tpu.memory_space<smem>>
    %824 = vector.broadcast %823 : f32 to vector<10x10xf32>
    %825 = arith.mulf %822, %824 : vector<10x10xf32>
    %826 = arith.addf %821, %825 : vector<10x10xf32>
    %827 = vector.extract_strided_slice %719 {offsets = [1, 0], sizes = [10, 10], strides = [1, 1]} : vector<12x12xf32> to vector<10x10xf32>
    %c21_121 = arith.constant 21 : index
    %828 = memref.load %arg6[%c21_121] : memref<27xf32, #tpu.memory_space<smem>>
    %829 = vector.broadcast %828 : f32 to vector<10x10xf32>
    %830 = arith.mulf %827, %829 : vector<10x10xf32>
    %831 = arith.addf %826, %830 : vector<10x10xf32>
    %832 = vector.extract_strided_slice %719 {offsets = [1, 1], sizes = [10, 10], strides = [1, 1]} : vector<12x12xf32> to vector<10x10xf32>
    %c22_122 = arith.constant 22 : index
    %833 = memref.load %arg6[%c22_122] : memref<27xf32, #tpu.memory_space<smem>>
    %834 = vector.broadcast %833 : f32 to vector<10x10xf32>
    %835 = arith.mulf %832, %834 : vector<10x10xf32>
    %836 = arith.addf %831, %835 : vector<10x10xf32>
    %837 = vector.extract_strided_slice %719 {offsets = [1, 2], sizes = [10, 10], strides = [1, 1]} : vector<12x12xf32> to vector<10x10xf32>
    %c23_123 = arith.constant 23 : index
    %838 = memref.load %arg6[%c23_123] : memref<27xf32, #tpu.memory_space<smem>>
    %839 = vector.broadcast %838 : f32 to vector<10x10xf32>
    %840 = arith.mulf %837, %839 : vector<10x10xf32>
    %841 = arith.addf %836, %840 : vector<10x10xf32>
    %842 = vector.extract_strided_slice %719 {offsets = [2, 0], sizes = [10, 10], strides = [1, 1]} : vector<12x12xf32> to vector<10x10xf32>
    %c24_124 = arith.constant 24 : index
    %843 = memref.load %arg6[%c24_124] : memref<27xf32, #tpu.memory_space<smem>>
    %844 = vector.broadcast %843 : f32 to vector<10x10xf32>
    %845 = arith.mulf %842, %844 : vector<10x10xf32>
    %846 = arith.addf %841, %845 : vector<10x10xf32>
    %847 = vector.extract_strided_slice %719 {offsets = [2, 1], sizes = [10, 10], strides = [1, 1]} : vector<12x12xf32> to vector<10x10xf32>
    %c25_125 = arith.constant 25 : index
    %848 = memref.load %arg6[%c25_125] : memref<27xf32, #tpu.memory_space<smem>>
    %849 = vector.broadcast %848 : f32 to vector<10x10xf32>
    %850 = arith.mulf %847, %849 : vector<10x10xf32>
    %851 = arith.addf %846, %850 : vector<10x10xf32>
    %852 = vector.extract_strided_slice %719 {offsets = [2, 2], sizes = [10, 10], strides = [1, 1]} : vector<12x12xf32> to vector<10x10xf32>
    %c26_126 = arith.constant 26 : index
    %853 = memref.load %arg6[%c26_126] : memref<27xf32, #tpu.memory_space<smem>>
    %854 = vector.broadcast %853 : f32 to vector<10x10xf32>
    %855 = arith.mulf %852, %854 : vector<10x10xf32>
    %856 = arith.addf %851, %855 : vector<10x10xf32>
    %c0_127 = arith.constant 0 : index
    %c0_128 = arith.constant 0 : index
    %c0_129 = arith.constant 0 : index
    %c0_130 = arith.constant 0 : index
    %857 = vector.load %arg8[%c0_127, %c0_128, %c0_129, %c0_130] : memref<1x1x10x10xf32, #tpu.memory_space<vmem>>, vector<1x1x10x10xf32>
    %858 = vector.shape_cast %857 : vector<1x1x10x10xf32> to vector<10x10xf32>
    %859 = vector.shape_cast %856 : vector<10x10xf32> to vector<1x1x10x10xf32>
    tpu.vector_store %arg8[%c0_127, %c0_128, %c0_129, %c0_130], %859 {strides = array<i32>} : memref<1x1x10x10xf32, #tpu.memory_space<vmem>>, vector<1x1x10x10xf32>,
    return
  }
  func.func @transform_0(%arg0: i32) -> (i32, i32, i32, i32) {
    %c0_i32 = arith.constant 0 : i32
    %c0_i32_0 = arith.constant 0 : i32
    %c0_i32_1 = arith.constant 0 : i32
    %c0_i32_2 = arith.constant 0 : i32
    return %arg0, %c0_i32, %c0_i32_0, %c0_i32_1 : i32, i32, i32, i32
  }
  func.func @transform_1(%arg0: i32) -> i32 {
    %c0_i32 = arith.constant 0 : i32
    %c0_i32_0 = arith.constant 0 : i32
    return %c0_i32 : i32
  }
  func.func @transform_2(%arg0: i32) -> i32 {
    %c0_i32 = arith.constant 0 : i32
    %c0_i32_0 = arith.constant 0 : i32
    return %c0_i32 : i32
  }
  func.func @transform_3(%arg0: i32) -> i32 {
    %c0_i32 = arith.constant 0 : i32
    %c0_i32_0 = arith.constant 0 : i32
    return %c0_i32 : i32
  }
  func.func @transform_4(%arg0: i32) -> i32 {
    %c0_i32 = arith.constant 0 : i32
    %c0_i32_0 = arith.constant 0 : i32
    return %c0_i32 : i32
  }
  func.func @transform_5(%arg0: i32) -> i32 {
    %c0_i32 = arith.constant 0 : i32
    %c0_i32_0 = arith.constant 0 : i32
    return %c0_i32 : i32
  }
  func.func @transform_6(%arg0: i32) -> i32 {
    %c0_i32 = arith.constant 0 : i32
    %c0_i32_0 = arith.constant 0 : i32
    return %c0_i32 : i32
  }
  func.func @transform_7(%arg0: i32) -> (i32, i32, i32, i32) {
    %c0_i32 = arith.constant 0 : i32
    %c0_i32_0 = arith.constant 0 : i32
    %c0_i32_1 = arith.constant 0 : i32
    %c0_i32_2 = arith.constant 0 : i32
    return %arg0, %c0_i32, %c0_i32_0, %c0_i32_1 : i32, i32, i32, i32
  }
}

</mosaic_0001>

<bundles_post_ra>
// kernel: tpu_custom_call.1
= control target key start
LH: loop header
LB: loop body
LE: loop exit
PB: predicated region body
PF: predicated region fallthrough
CT: control target
= control target key end

     0   :  { %s6570_s0 = inlined_call_operand.hbm [shape: f32[2,3,16,16], index: 0, kind: input, shape index: {}]   ;;  %s6571_s1 = inlined_call_operand.vmem [shape: f32[81], index: 1, kind: input, shape index: {}]   ;;  %s6572_s2 = inlined_call_operand.vmem [shape: f32[3], index: 2, kind: input, shape index: {}]   ;;  %s6573_s3 = inlined_call_operand.vmem [shape: f32[81], index: 3, kind: input, shape index: {}]   ;;  %s6574_s4 = inlined_call_operand.vmem [shape: f32[3], index: 4, kind: input, shape index: {}]   ;;  %s6575_s5 = inlined_call_operand.vmem [shape: f32[27], index: 5, kind: input, shape index: {}]   ;;  %s6576_s6 = inlined_call_operand.<no memory space> [shape: f32[1], index: 6, kind: input, shape index: {}]   ;;  %s6577_s7 = inlined_call_operand.vmem [shape: f32[2,1,10,10], index: 7, kind: output, shape index: {}]  }
   0x1   :  { %6657 = sst [smem:[#allocation59_spill]] %s6570_s0 }
   0x2   :  { %6658 = sst [smem:[#allocation60_spill]] %s6571_s1 }
   0x3   :  { %6659 = sst [smem:[#allocation61_spill]] %s6572_s2 }
   0x4   :  { %6660 = sst [smem:[#allocation62_spill]] %s6573_s3 }
   0x5   :  { %6661 = sst [smem:[#allocation63_spill]] %s6574_s4 }
   0x6   :  { %6662 = sst [smem:[#allocation64_spill]] %s6575_s5 }
   0x7   :  { %6663 = sst [smem:[#allocation65_spill]] %s6577_s7 }
   0x8   :  { %12 = sst [smem:[#allocation2]] %s6576_s6 }
   0x9   :  { %13 = vsyncpa [#allocation4], 0 }
   0xa   :  { %15 = vsyncpa [#allocation4 + $0x1], 0 }
   0xb   :  { %16 = vsyncpa [#allocation5], 0 }
   0xc   :  { %17 = vsyncpa [#allocation8], 0 }
   0xd   :  { %18 = vsyncpa [#allocation11], 0  ;;  %s3715_s26 = smov 0   ;;  %s3717_s27 = smov 0  }
   0xe   :  { %s3719_s28 = smov 0   ;;  %s3721_s29 = smov 0  }
   0xf LB: > { %6664 = sst [smem:[#allocation17_spill]] %s3652_s27  ;;  %s6666_s2 = sld [smem:[#allocation61_spill]]  ;;  %s3660_s29 = sphi %s3721_s29, %s6952_s29   ;;  %s3656_s28 = sphi %s3719_s28, %s6955_s28   ;;  %s3652_s27 = sphi %s3717_s27, %s6954_s27   ;;  %s3648_s26 = sphi %s3715_s26, %s6953_s26  }
  0x10   : > { %6665 = sst [smem:[#allocation18_spill]] %s3656_s28  ;;  %s3739_s9 = sadd.s32 4294967295, %s3660_s29  }
  0x11   : > { %6667 = sst [smem:[#allocation19_spill]] %s3739_s9  ;;  %p3198_p0 = scmp.ge.s32.totalorder %s3660_s29, 1 }
  0x12   : > { %p6578_p1 = scmp.eq.s32.totalorder %s3739_s9, 0  ;;  %p207_p2 = scmp.lt.s32.totalorder %s3660_s29, 3 }
  0x13   : > { %s6669_s4 = sld [smem:[#allocation63_spill]]  ;;  %s6670_s1 = sld [smem:[#allocation60_spill]] }
  0x14   : > { %p3744_p3 = pnand %p3198_p0, %p207_p2  ;;  %s6672_s3 = sld [smem:[#allocation62_spill]] }
  0x15   : > { %s231_s8 = sshll.u32 %s6666_s2, 4  ;;  %s232_s8 = int_to_ptr.vmem [resolvable:$true] %s231_s8 }
  0x16   : > { %s6668_s10 = scalar_select %p3744_p3, 1, 0 }
  0x17   : > { %p3436_p4 = pneg %p3744_p3  ;;  %s3509_s21 = scalar_lea.vmem %s232_s8, 16 }
  0x18   : > { %p3510_p6 = scmp.ne.s32.totalorder %s232_s8, %s3509_s21  ;;  %p3517_p10 = scmp.lt.s32.totalorder %s232_s8, %s232_s8 }
  0x19   : > { %s253_s13 = sshll.u32 %s6669_s4, 4  ;;  %s220_s16 = sshll.u32 %s6670_s1, 4  ;;  %s254_s13 = int_to_ptr.vmem [resolvable:$true] %s253_s13  ;;  %s3762_s16 = int_to_ptr.vmem [resolvable:$true] %s220_s16 }
  0x1a   : > { %p3758_p5 = pnand %p3436_p4, %p6578_p1  ;;  %s242_s20 = sshll.u32 %s6672_s3, 4  ;;  %s3767_s20 = int_to_ptr.vmem [resolvable:$true] %s242_s20 }
  0x1b   : > { %p3518_p11 = scmp.lt.s32.totalorder %s3509_s21, %s3509_s21 }
  0x1c   : > { %p3771_p7 = pneg %p3758_p5 }
  0x1d   : > { %p3519_p12 = por %p3518_p11, %p3517_p10 }
  0x1e   : > { %p3512_p8 = pnand %p3771_p7, %p3510_p6 }
  0x20   : > { %p3513_p9 = pneg %p3512_p8 }
  0x22   : > { %p3520_p13 = pnand %p3519_p12, %p3513_p9 }
  0x24   : > { %3523 = shalt.err (!%p3520_p13)
}
  0x25   : > { %s3662_s23 = smov [#allocation7]   ;;  %s3524_s24 = scalar_lea.vmem %s254_s13, 16 }
  0x26   : > { %3442 = dma.vmem_to_smem (!%p3758_p5), %s232_s8, 16, %s3662_s23, [#allocation8]  }
  0x27   : > { %p3525_p0 = scmp.ne.s32.totalorder %s254_s13, %s3524_s24  ;;  %p3532_p1 = scmp.lt.s32.totalorder %s254_s13, %s254_s13 }
  0x28   : > { %p3533_p3 = scmp.lt.s32.totalorder %s3524_s24, %s3524_s24 }
  0x29   : > { %p3527_p2 = pnand %p3525_p0, %p3771_p7 }
  0x2a   : > { %p3534_p6 = por %p3533_p3, %p3532_p1 }
  0x2b   : > { %p3528_p4 = pneg %p3527_p2 }
  0x2d   : > { %p3535_p8 = pnand %p3534_p6, %p3528_p4 }
  0x2f   : > { %3538 = shalt.err (!%p3535_p8)
}
  0x30   : > { %s3663_s25 = smov [#allocation10]   ;;  %s3539_s6 = scalar_lea.vmem %s3762_s16, 16 }
  0x31   : > { %3448 = dma.vmem_to_smem (!%p3758_p5), %s254_s13, 16, %s3663_s25, [#allocation11]  }
  0x32   : > { %p3540_p9 = scmp.ne.s32.totalorder %s3762_s16, %s3539_s6  ;;  %p3547_p12 = scmp.lt.s32.totalorder %s3762_s16, %s3762_s16 }
  0x33   : > { %p3548_p13 = scmp.lt.s32.totalorder %s3539_s6, %s3539_s6 }
  0x34   : > { %p3542_p10 = pnand %p3540_p9, %p3771_p7 }
  0x35   : > { %p3549_p0 = por %p3548_p13, %p3547_p12 }
  0x36   : > { %p3543_p11 = pneg %p3542_p10 }
  0x38   : > { %p3550_p1 = pnand %p3549_p0, %p3543_p11 }
  0x3a   : > { %3553 = shalt.err (!%p3550_p1)
}
  0x3b   : > { %s3664_s30 = smov [#allocation6]   ;;  %s3554_s8 = scalar_lea.vmem %s3767_s20, 16 }
  0x3c   : > { %3439 = dma.vmem_to_smem (!%p3758_p5), %s3762_s16, 16, %s3664_s30, [#allocation5]  }
  0x3d   : > { %p3555_p3 = scmp.ne.s32.totalorder %s3767_s20, %s3554_s8  ;;  %p3562_p6 = scmp.lt.s32.totalorder %s3767_s20, %s3767_s20 }
  0x3e   : > { %p3563_p8 = scmp.lt.s32.totalorder %s3554_s8, %s3554_s8 }
  0x3f   : > { %p3557_p2 = pnand %p3555_p3, %p3771_p7 }
  0x40   : > { %p3564_p9 = por %p3563_p8, %p3562_p6 }
  0x41   : > { %p3558_p4 = pneg %p3557_p2 }
  0x43   : > { %p3565_p10 = pnand %p3564_p9, %p3558_p4 }
  0x45   : > { %3568 = shalt.err (!%p3565_p10)
}
  0x46   : > { %s3665_s11 = smov [#allocation9]   ;;  %s6674_s5 = sld [smem:[#allocation64_spill]] }
  0x47   : > { %3445 = dma.vmem_to_smem (!%p3758_p5), %s3767_s20, 16, %s3665_s11, [#allocation8]  }
  0x4c   : > { %s264_s14 = sshll.u32 %s6674_s5, 4  ;;  %s265_s14 = int_to_ptr.vmem [resolvable:$true] %s264_s14 }
  0x4d   : > { %s3569_s15 = scalar_lea.vmem %s265_s14, 16  ;;  %p3577_p0 = scmp.lt.s32.totalorder %s265_s14, %s265_s14 }
  0x4e   : > { %p3570_p11 = scmp.ne.s32.totalorder %s265_s14, %s3569_s15  ;;  %p3578_p1 = scmp.lt.s32.totalorder %s3569_s15, %s3569_s15 }
  0x50   : > { %p3572_p12 = pnand %p3570_p11, %p3771_p7  ;;  %p3579_p3 = por %p3578_p1, %p3577_p0 }
  0x52   : > { %p3573_p13 = pneg %p3572_p12 }
  0x54   : > { %p3580_p2 = pnand %p3579_p3, %p3573_p13 }
  0x56   : > { %3583 = shalt.err (!%p3580_p2)
}
  0x57   : > { %s3666_s16 = smov [#allocation12]   ;;  %s3809_s18 = sadd.s32 1, %s3660_s29  }
  0x58   : > { %3451 = dma.vmem_to_smem (!%p3758_p5), %s265_s14, 16, %s3666_s16, [#allocation11]  }
  0x59   : > { %6675 = sst [smem:[#allocation20_spill]] %s3809_s18  ;;  %s28_s19 = ssub.s32 %s3660_s29, %s3809_s18 }
  0x5a   : > { %s31_s20 = sadd.s32 1, %s3656_s28  ;;  %p29_p7 = scmp.eq.s32.totalorder %s28_s19, 0 }
  0x5b   : > { %p38_p4 = scmp.ne.s32.totalorder %s3656_s28, %s3652_s27  ;;  %p39_p6 = scmp.eq.s32.totalorder %s3660_s29, 0 }
  0x5c   : > { %p44_p8 = scmp.ne.s32.totalorder %s3652_s27, %s3648_s26  ;;  %p6677_p10 = scmp.eq.s32.totalorder %s3739_s9, 0 }
  0x5d   : > { %s3820_s17 = scalar_select %p29_p7, %s3656_s28, %s31_s20  }
  0x5e   : > { %p40_p9 = por %p39_p6, %p38_p4  ;;  %p3824_p11 = por %p6677_p10, %p44_p8 }
  0x5f   : > { %6676 = sst [smem:[#allocation21_spill]] %s3820_s17  ;;  %p3461_p12 = scmp.lt.s32.totalorder %s3660_s29, 2 }
  0x60   : > { %s278_s22 = sand.u32 1, %s3656_s28   ;;  %s3412_s24 = smul.u32 768, %s3660_s29 }
  0x61   : > { %s3411_s23 = smul.u32 48, %s278_s22  ;;  %p3831_p5 = pnand %p3461_p12, %p40_p9 }
  0x62   : > { %s6680_s0 = sld [smem:[#allocation59_spill]]  ;;  %s3842_s29 = scalar_lea.sflag [#allocation4], %s278_s22 }
  0x63   : > { %s282_s8 = scalar_lea.vmem [#allocation3], %s3411_s23  ;;  %p3586_p0 = pneg %p3831_p5 }
  0x64   : > { %s289_s11 = sshll.u32 %s282_s8, 4  ;;  %s3840_s11 = int_to_ptr.vmem [resolvable:$true] %s289_s11 }
  0x68   : > { %s3838_s26 = scalar_lea.hbm %s6680_s0, %s3412_s24  ;;  %s3589_s15 = scalar_lea.hbm %s6680_s0, 1536 }
  0x69   : > { %s3584_s12 = scalar_lea.hbm %s3838_s26, 768  ;;  %p3590_p2 = scmp.lt.u32.totalorder %s3838_s26, %s6680_s0 }
  0x6a   : > { %p3585_p13 = scmp.ne.s32.totalorder %s3838_s26, %s3584_s12  ;;  %p3591_p7 = scmp.lt.u32.totalorder %s3589_s15, %s3584_s12 }
  0x6b   : > { %p3593_p6 = scmp.lt.u32.totalorder %s3584_s12, %s3838_s26 }
  0x6c   : > { %p3587_p1 = pnand %p3586_p0, %p3585_p13  ;;  %p3592_p4 = por %p3591_p7, %p3590_p2 }
  0x6e   : > { %p3588_p3 = pneg %p3587_p1  ;;  %p3594_p8 = por %p3593_p6, %p3592_p4 }
  0x70   : > { %p3595_p9 = pnand %p3594_p8, %p3588_p3 }
  0x72   : > { %3598 = shalt.err (!%p3595_p9)
}
  0x73   : > { %s3599_s20 = scalar_lea.vmem %s3840_s11, 768  ;;  %s3667_s22 = smov [#allocation3]  }
  0x74   : > { %p3600_p10 = scmp.ne.s32.totalorder %s3840_s11, %s3599_s20  ;;  %s3604_s23 = sshll.u32 %s3667_s22, 4  ;;  %s3605_s23 = int_to_ptr.vmem [resolvable:$false] %s3604_s23 }
  0x75   : > { %s3606_s24 = scalar_lea.vmem %s3605_s23, 1536  ;;  %p3607_p1 = scmp.lt.s32.totalorder %s3840_s11, %s3605_s23 }
  0x76   : > { %p3602_p12 = pnand %p3600_p10, %p3586_p0  ;;  %p3608_p2 = scmp.lt.s32.totalorder %s3606_s24, %s3599_s20 }
  0x78   : > { %p3603_p13 = pneg %p3602_p12  ;;  %p3609_p7 = por %p3608_p2, %p3607_p1 }
  0x7a   : > { %p3610_p4 = pnand %p3609_p7, %p3603_p13 }
  0x7c   : > { %3613 = shalt.err (!%p3610_p4)
}
  0x7d   : > { %s3668_s6 = smov 128   ;;  %s3669_s30 = smov 8  }
  0x7e   : > { %3455 = dma.hbm_to_vmem [thread:$0]  (!%p3831_p5), %s3838_s26, 768, %s3840_s11, %s3842_s29, %s3668_s6, %s3668_s6, %s3669_s30  }
  0x7f   : > { %p6681_p0 = scmp.ne.s32.totalorder %s6668_s10, 0 }
  0x81   : > { %301 = sbr.rel (%p6681_p0) target bundleno = 964 (0x3c4), region = 48 }
  0x88   : > { %s303_s8 = sand.u32 1, %s3652_s27  }
  0x89   : > { %s3413_s12 = smul.u32 48, %s303_s8  ;;  %s304_s13 = scalar_lea.sflag [#allocation4], %s303_s8 }
  0x8b   : > { %s3873_s14 = scalar_lea.vmem [#allocation3], %s3413_s12 }
  0x8c   : > { %3631 = dma.done.wait (%p3824_p11), %s304_s13, 768  }
  0x8d   : > { %3633 = vsyncadd (%p3824_p11), %s304_s13, 4294966528  ;;  %p6682_p3 = scmp.eq.s32.totalorder %s3739_s9, 0 }
  0x8f   : > { %3635 = dma.done.wait (%p6682_p3), [#allocation5], 16   ;;  %p6683_p5 = pmov %p6682_p3 }
  0x90   : > { %p6684_p6 = pmov %p6682_p3 }
  0x91   : > { %3637 = vsyncadd (%p6683_p5), [#allocation5], 4294967280 }
  0x92   : > { %3639 = dma.done.wait (%p6684_p6), [#allocation8], 32   ;;  %p6685_p8 = pmov %p6682_p3 }
  0x93   : > { %p6686_p9 = pmov %p6682_p3 }
  0x94   : > { %3641 = vsyncadd (%p6685_p8), [#allocation8], 4294967264 }
  0x95   : > { %3643 = dma.done.wait (%p6686_p9), [#allocation11], 32   ;;  %p6687_p10 = pmov %p6682_p3 }
  0x97   : > { %3645 = vsyncadd (%p6687_p10), [#allocation11], 4294967264 }
  0x98   : > { %332 = sfence }
  0x99   : > { %s3223_s10 = sld [smem:[#allocation6 + $0x1c]]  ;;  %s3222_s21 = sld [smem:[#allocation6 + $0x1]]  ;;  %v3892_v0 = vld [vmem:[%s3873_s14] sm:$0xff]  ;;  %v3895_v1 = vld [vmem:[%s3873_s14 + $0x8] sm:$0xff]  ;;  %vm486_vm0 = vcmask 1046528   ;;  %vm628_vm1 = vcmask 1045504  }
  0x9a   : > { %s3224_s25 = sld [smem:[#allocation6 + $0x37]]  ;;  %s3225_s26 = sld [smem:[#allocation6 + $0x2]]  ;;  %vm3078_vm2 = vcmask 74752   ;;  %vm3076_vm3 = vcmask 80896  }
  0x9b   : > { %s6594_s11 = smov 127   ;;  %s3226_s29 = sld [smem:[#allocation6 + $0x1d]] }
  0x9c   : > { %s3231_s15 = sld [smem:[#allocation6 + $0x4]]  ;;  %s3227_s16 = sld [smem:[#allocation6 + $0x38]] }
  0x9d   : > { %s3232_s19 = sld [smem:[#allocation6 + $0x1f]]  ;;  %s3233_s20 = sld [smem:[#allocation6 + $0x3a]] }
  0x9e   : > { %s6592_s22 = smov 126   ;;  %s3915_s23 = sld [smem:[#allocation6 + $0x5]] }
  0x9f   : > { %v411_v2 = vstv %s3223_s10  ;;  %v397_v4 = vstv %s3222_s21  ;;  %s3235_s24 = sld [smem:[#allocation6 + $0x20]]  ;;  %s3236_s6 = sld [smem:[#allocation6 + $0x3b]] }
  0xa0   : > { %v412_v3 = vmul.f32 %v411_v2, %v3892_v0  ;;  %v398_v5 = vmul.f32 %v397_v4, %v3892_v0  ;;  %v413_v6 = vmul.f32 %v411_v2, %v3895_v1  ;;  %v399_v7 = vmul.f32 %v397_v4, %v3895_v1  ;;  %s3240_s30 = sld [smem:[#allocation6 + $0x7]]  ;;  %s3241_s8 = sld [smem:[#allocation6 + $0x22]] }
  0xa1   : > { %v425_v8 = vstv %s3224_s25  ;;  %v439_v11 = vstv %s3225_s26  ;;  %v453_v14 = vstv %s3226_s29  ;;  %s3946_s12 = sld [smem:[#allocation6 + $0x3d]]  ;;  %s3949_s13 = sld [smem:[#allocation6 + $0x3]] }
  0xa2   : > { %416 = vrot.lane.b32.xlu1 %v412_v3, %s6594_s11  ;;  %402 = vrot.lane.b32.xlu0 %v398_v5, %s6594_s11  ;;  %v427_v9 = vmul.f32 %v425_v8, %v3895_v1  ;;  %v426_v10 = vmul.f32 %v425_v8, %v3892_v0  ;;  %v441_v12 = vmul.f32 %v439_v11, %v3895_v1  ;;  %v521_v15 = vstv %s3231_s15  ;;  %s3954_s10 = sld [smem:[#allocation6 + $0x8]]  ;;  %s3957_s21 = sld [smem:[#allocation6 + $0x1e]] }
  0xa3   : > { %v440_v13 = vmul.f32 %v439_v11, %v3892_v0  ;;  %v455_v16 = vmul.f32 %v453_v14, %v3895_v1  ;;  %v454_v17 = vmul.f32 %v453_v14, %v3892_v0  ;;  %v467_v18 = vstv %s3227_s16  ;;  %s3965_s25 = sld [smem:[#allocation6 + $0x23]]  ;;  %s3967_s26 = sld [smem:[#allocation6 + $0x39]] }
  0xa4   : > { %v522_v19 = vmul.f32 %v521_v15, %v3892_v0  ;;  %v523_v20 = vmul.f32 %v521_v15, %v3895_v1  ;;  %v538_v21 = vstv %s3232_s19  ;;  %v469_v22 = vmul.f32 %v467_v18, %v3895_v1  ;;  %s3970_s29 = sld [smem:[#allocation6 + $0x3e]]  ;;  %s3995_s16 = sld [smem:[#allocation6 + $0x21]] }
  0xa5   : > { %v468_v23 = vmul.f32 %v467_v18, %v3892_v0  ;;  %v540_v24 = vmul.f32 %v538_v21, %v3895_v1  ;;  %v539_v27 = vmul.f32 %v538_v21, %v3892_v0  ;;  %v555_v28 = vstv %s3233_s20  ;;  %s3983_s15 = sld [smem:[#allocation6 + $0x6]]  ;;  %s4011_s19 = sld [smem:[#allocation6 + $0x3c]] }
  0xa6   : > { %418 = vrot.lane.b32.xlu1 %v413_v6, %s6594_s11  ;;  %404 = vrot.lane.b32.xlu0 %v399_v7, %s6594_s11  ;;  %v527_v25 = vrot.slane %v523_v20, 1  ;;  %v526_v26 = vrot.slane %v522_v19, 1  ;;  %v572_v30 = vstv %s3915_s23  ;;  %v556_v33 = vmul.f32 %v555_v28, %v3892_v0  ;;  %s4035_s20 = sld [smem:[#allocation6 + $0xa]]  ;;  %s3250_s23 = sld [smem:[#allocation6 + $0x25]] }
  0xa7   : > { %v544_v29 = vrot.slane %v540_v24, 1  ;;  %v543_v32 = vrot.slane %v539_v27, 1  ;;  %v557_v34 = vmul.f32 %v555_v28, %v3895_v1  ;;  %v573_v35 = vmul.f32 %v572_v30, %v3892_v0  ;;  %s4896_s0 = sld [smem:[#allocation9 + $0x25]]  ;;  %s4898_s1 = sld [smem:[#allocation9 + $0x40]] }
  0xa8   : > { %v528_v31 = vsel %vm486_vm0, %v526_v26, %v527_v25  ;;  %v589_v36 = vstv %s3235_s24  ;;  %v560_v39 = vrot.slane %v556_v33, 1  ;;  %v574_v40 = vmul.f32 %v572_v30, %v3895_v1  ;;  %s3251_s24 = sld [smem:[#allocation6 + $0x40]]  ;;  %s4903_s2 = sld [smem:[#allocation9 + $0xd]] }
  0xa9   : > { %v545_v37 = vsel %vm486_vm0, %v543_v32, %v544_v29  ;;  %v561_v38 = vrot.slane %v557_v34, 1  ;;  %v590_v41 = vmul.f32 %v589_v36, %v3892_v0  ;;  %v591_v42 = vmul.f32 %v589_v36, %v3895_v1  ;;  %s4908_s3 = sld [smem:[#allocation9 + $0xe]]  ;;  %s4910_s4 = sld [smem:[#allocation9 + $0x10]] }
  0xaa   : > { %432 = vrot.lane.b32.xlu1 %v427_v9, %s6594_s11  ;;  %430 = vrot.lane.b32.xlu0 %v426_v10, %s6594_s11  ;;  %v578_v44 = vrot.slane %v574_v40, 1  ;;  %v577_v45 = vrot.slane %v573_v35, 1  ;;  %v606_v46 = vstv %s3236_s6  ;;  %v663_v52 = vstv %s3240_s30  ;;  %s3252_s6 = sld [smem:[#allocation6 + $0xb]]  ;;  %s3253_s30 = sld [smem:[#allocation6 + $0x26]] }
  0xab   : > { %v562_v43 = vsel %vm486_vm0, %v560_v39, %v561_v38  ;;  %v595_v47 = vrot.slane %v591_v42, 1  ;;  %v594_v48 = vrot.slane %v590_v41, 1  ;;  %v607_v50 = vmul.f32 %v606_v46, %v3892_v0  ;;  %s4916_s5 = sld [smem:[#allocation9 + $0x11]]  ;;  %s4918_s17 = sld [smem:[#allocation9 + $0x28]] }
  0xac   : > { %v579_v49 = vsel %vm486_vm0, %v577_v45, %v578_v44  ;;  %v608_v51 = vmul.f32 %v606_v46, %v3895_v1  ;;  %v664_v54 = vmul.f32 %v663_v52, %v3892_v0  ;;  %v665_v57 = vmul.f32 %v663_v52, %v3895_v1  ;;  %s4924_s28 = sld [smem:[#allocation9 + $0x29]]  ;;  %s4926_s27 = sld [smem:[#allocation9 + $0x3]] }
  0xad   : > { %v596_v53 = vsel %vm486_vm0, %v594_v48, %v595_v47  ;;  %v611_v56 = vrot.slane %v607_v50, 1  ;;  %v680_v58 = vstv %s3241_s8  ;;  %v697_v2 = vstv %s3946_s12  ;;  %s3258_s8 = sld [smem:[#allocation6 + $0xd]]  ;;  %s3254_s12 = sld [smem:[#allocation6 + $0x41]] }
  0xae   : > { %446 = vrot.lane.b32.xlu1 %v441_v12, %s6592_s22  ;;  %444 = vrot.lane.b32.xlu0 %v440_v13, %s6592_s22  ;;  %v612_v55 = vrot.slane %v608_v51, 1  ;;  %v681_v59 = vmul.f32 %v680_v58, %v3892_v0  ;;  %v682_v60 = vmul.f32 %v680_v58, %v3895_v1  ;;  %v669_v62 = vrot.slane %v665_v57, 2  ;;  %s4933_s18 = sld [smem:[#allocation9 + $0x2b]]  ;;  %s4940_s7 = sld [smem:[#allocation9 + $0x16]] }
  0xaf   : > { %v668_v63 = vrot.slane %v664_v54, 2  ;;  %v481_v3 = vstv %s3949_s13  ;;  %v698_v6 = vmul.f32 %v697_v2, %v3892_v0  ;;  %v714_v7 = vstv %s3954_s10  ;;  %s3259_s13 = sld [smem:[#allocation6 + $0x28]]  ;;  %s3260_s10 = sld [smem:[#allocation6 + $0x43]] }
  0xb0   : > { %v613_v61 = vsel %vm486_vm0, %v611_v56, %v612_v55  ;;  %v686_v4 = vrot.slane %v682_v60, 2  ;;  %v685_v5 = vrot.slane %v681_v59, 2  ;;  %v699_v9 = vmul.f32 %v697_v2, %v3895_v1  ;;  %v4069_v2 = vld [vmem:[%s3873_s14 + $0x18] sm:$0xff]  ;;  %s6762_s9 = smov 127  }
  0xb1   : > { %v670_v8 = vsel %vm628_vm1, %v668_v63, %v669_v62  ;;  %v3979_v10 = vmul.f32 %v481_v3, %v3895_v1  ;;  %v482_v11 = vmul.f32 %v481_v3, %v3892_v0  ;;  %v495_v12 = vstv %s3957_s21  ;;  %s3261_s21 = sld [smem:[#allocation6 + $0xe]] }
  0xb2   : > { %460 = vrot.lane.b32.xlu1 %v455_v16, %s6592_s22  ;;  %458 = vrot.lane.b32.xlu0 %v454_v17, %s6592_s22  ;;  %v715_v13 = vmul.f32 %v714_v7, %v3892_v0  ;;  %v687_v16 = vsel %vm628_vm1, %v685_v5, %v686_v4  ;;  %v716_v17 = vmul.f32 %v714_v7, %v3895_v1  ;;  %v703_v20 = vrot.slane %v699_v9, 2 }
  0xb3   : > { %v6585_v14 = vrot.slane %v3979_v10, 1  ;;  %v487_v15 = vrot.slane %v482_v11, 1  ;;  %v3992_v18 = vmul.f32 %v495_v12, %v3895_v1  ;;  %v496_v19 = vmul.f32 %v495_v12, %v3892_v0 }
  0xb4   : > { %v702_v21 = vrot.slane %v698_v6, 2  ;;  %v508_v26 = vstv %s3967_s26  ;;  %v748_v27 = vstv %s3970_s29  ;;  %v720_v30 = vrot.slane %v716_v17, 2  ;;  %s3263_s26 = sld [smem:[#allocation6 + $0x44]]  ;;  %s3267_s29 = sld [smem:[#allocation6 + $0x10]] }
  0xb5   : > { %v6584_v24 = vrot.slane %v3992_v18, 1  ;;  %v4008_v28 = vmul.f32 %v508_v26, %v3895_v1  ;;  %v749_v39 = vmul.f32 %v748_v27, %v3892_v0  ;;  %v637_v45 = vstv %s3995_s16  ;;  %s4128_s16 = sld [smem:[#allocation6]] }
  0xb6   : > { %474 = vrot.lane.b32.xlu1 %v469_v22, %s6592_s22  ;;  %472 = vrot.lane.b32.xlu0 %v468_v23, %s6592_s22  ;;  %v731_v22 = vstv %s3965_s25  ;;  %v4001_v23 = vsel %vm486_vm0, %v487_v15, %v6585_v14  ;;  %v704_v34 = vsel %vm628_vm1, %v702_v21, %v703_v20  ;;  %v4044_v51 = vmul.f32 %v637_v45, %v3895_v1  ;;  %s3262_s25 = sld [smem:[#allocation6 + $0x29]] }
  0xb7   : > { %v732_v32 = vmul.f32 %v731_v22, %v3892_v0  ;;  %v733_v35 = vmul.f32 %v731_v22, %v3895_v1  ;;  %v6583_v36 = vrot.slane %v4008_v28, 1  ;;  %v753_v58 = vrot.slane %v749_v39, 2 }
  0xb8   : > { %v6581_v56 = vrot.slane %v4044_v51, 2  ;;  %v783_v3 = vstv %s4035_s20  ;;  %v811_v12 = vstv %s3251_s24  ;;  %v906_v21 = vstv %s3258_s8  ;;  %s4136_s20 = sld [smem:[#allocation6 + $0x1b]]  ;;  %s4144_s24 = sld [smem:[#allocation6 + $0x11]] }
  0xb9   : > { %v737_v46 = vrot.slane %v733_v35, 2  ;;  %v785_v6 = vmul.f32 %v4069_v2, %v783_v3  ;;  %s4158_s8 = sld [smem:[#allocation6 + $0x2c]] }
  0xba   : > { %531 = vrot.lane.b32.xlu1 %v527_v25, %s6594_s11  ;;  %529 = vrot.lane.b32.xlu0 %v528_v31, %s6594_s11  ;;  %v500_v25 = vrot.slane %v496_v19, 1  ;;  %v719_v31 = vrot.slane %v715_v13, 2  ;;  %v813_v13 = vmul.f32 %v4069_v2, %v811_v12 }
  0xbc   : > { %v4018_v33 = vsel %vm486_vm0, %v500_v25, %v6584_v24  ;;  %v721_v42 = vsel %vm628_vm1, %v719_v31, %v720_v30 }
  0xbe   : > { %548 = vrot.lane.b32.xlu1 %v544_v29, %s6594_s11  ;;  %546 = vrot.lane.b32.xlu0 %v545_v37, %s6594_s11  ;;  %v509_v29 = vmul.f32 %v508_v26, %v3892_v0  ;;  %v853_v26 = vstv %s3254_s12  ;;  %s4162_s12 = sld [smem:[#allocation7 + $0x2]] }
  0xbf   : > { %v855_v31 = vmul.f32 %v4069_v2, %v853_v26 }
  0xc0   : > { %v513_v37 = vrot.slane %v509_v29, 1  ;;  %v908_v29 = vmul.f32 %v4069_v2, %v906_v21 }
  0xc2   : > { %565 = vrot.lane.b32.xlu1 %v561_v38, %s6594_s11  ;;  %563 = vrot.lane.b32.xlu0 %v562_v43, %s6594_s11  ;;  %v623_v38 = vstv %s3983_s15  ;;  %v4029_v40 = vsel %vm486_vm0, %v513_v37, %v6583_v36  ;;  %v750_v43 = vmul.f32 %v748_v27, %v3895_v1  ;;  %v912_v35 = vrot.slane %v908_v29, 1  ;;  %s4124_s15 = sld [smem:[#allocation6 + $0x2b]] }
  0xc3   : > { %v624_v41 = vmul.f32 %v623_v38, %v3892_v0 }
  0xc4   : > { %v754_v54 = vrot.slane %v750_v43, 2 }
  0xc5   : > { %v629_v48 = vrot.slane %v624_v41, 2 }
  0xc6   : > { %582 = vrot.lane.b32.xlu1 %v578_v44, %s6592_s22  ;;  %580 = vrot.lane.b32.xlu0 %v579_v49, %s6592_s22  ;;  %v4038_v44 = vmul.f32 %v623_v38, %v3895_v1  ;;  %v638_v49 = vmul.f32 %v637_v45, %v3892_v0 }
  0xc8   : > { %v6582_v50 = vrot.slane %v4038_v44, 2  ;;  %v642_v52 = vrot.slane %v638_v49, 2  ;;  %v974_v49 = vstv %s3262_s25  ;;  %s3278_s25 = sld [smem:[#allocation6 + $0x49]] }
  0xca   : > { %599 = vrot.lane.b32.xlu1 %v595_v47, %s6592_s22  ;;  %597 = vrot.lane.b32.xlu0 %v596_v53, %s6592_s22  ;;  %v736_v47 = vrot.slane %v732_v32, 2  ;;  %v650_v53 = vstv %s4011_s19  ;;  %s4133_s19 = sld [smem:[#allocation6 + $0x46]] }
  0xcb   : > { %v651_v59 = vmul.f32 %v650_v53, %v3892_v0  ;;  %v4058_v60 = vmul.f32 %v650_v53, %v3895_v1  ;;  %v4074_v1 = vld [vmem:[%s3873_s14 + $0x10] sm:$0xff] }
  0xcc   : > { %v738_v57 = vsel %vm628_vm1, %v736_v47, %v737_v46  ;;  %v784_v7 = vmul.f32 %v4074_v1, %v783_v3  ;;  %v812_v15 = vmul.f32 %v4074_v1, %v811_v12  ;;  %v907_v27 = vmul.f32 %v4074_v1, %v906_v21 }
  0xcd   : > { %v6580_v63 = vrot.slane %v4058_v60, 2  ;;  %v854_v32 = vmul.f32 %v4074_v1, %v853_v26  ;;  %v957_v47 = vstv %s3261_s21  ;;  %v1064_v21 = vstv %s4124_s15  ;;  %s3277_s21 = sld [smem:[#allocation6 + $0x2e]] }
  0xce   : > { %616 = vrot.lane.b32.xlu1 %v612_v55, %s6592_s22  ;;  %614 = vrot.lane.b32.xlu0 %v613_v61, %s6592_s22  ;;  %v4052_v55 = vsel %vm628_vm1, %v629_v48, %v6582_v50  ;;  %v4063_v61 = vsel %vm628_vm1, %v642_v52, %v6581_v56  ;;  %v911_v37 = vrot.slane %v907_v27, 1  ;;  %s4253_s15 = sld [smem:[#allocation6 + $0x16]] }
  0xd2   : > { %673 = vrot.lane.b32.xlu1 %v669_v62, %s6594_s11  ;;  %671 = vrot.lane.b32.xlu0 %v670_v8, %s6594_s11  ;;  %v655_v62 = vrot.slane %v651_v59, 2  ;;  %v797_v8 = vstv %s3250_s23  ;;  %v976_v59 = vmul.f32 %v4069_v2, %v974_v49  ;;  %s4139_s23 = sld [smem:[#allocation7]] }
  0xd3   : > { %v799_v9 = vmul.f32 %v4069_v2, %v797_v8  ;;  %v798_v11 = vmul.f32 %v4074_v1, %v797_v8 }
  0xd4   : > { %v4079_v5 = vsel %vm628_vm1, %v655_v62, %v6580_v63 }
  0xd6   : > { %690 = vrot.lane.b32.xlu1 %v686_v4, %s6594_s11  ;;  %688 = vrot.lane.b32.xlu0 %v687_v16, %s6594_s11  ;;  %v755_v4 = vsel %vm628_vm1, %v753_v58, %v754_v54  ;;  %v825_v16 = vstv %s3252_s6  ;;  %v975_v58 = vmul.f32 %v4074_v1, %v974_v49  ;;  %s4148_s6 = sld [smem:[#allocation7 + $0x1]] }
  0xd7   : > { %v827_v17 = vmul.f32 %v4069_v2, %v825_v16  ;;  %v826_v19 = vmul.f32 %v4074_v1, %v825_v16 }
  0xd8   : > { %v979_v8 = vrot.slane %v975_v58, 1 }
  0xda   : > { %707 = vrot.lane.b32.xlu1 %v703_v20, %s6594_s11  ;;  %705 = vrot.lane.b32.xlu0 %v704_v34, %s6594_s11  ;;  %v839_v20 = vstv %s3253_s30  ;;  %v940_v34 = vstv %s3260_s10  ;;  %s4152_s30 = sld [smem:[#allocation6 + $0x36]]  ;;  %s4214_s10 = sld [smem:[#allocation6 + $0x13]] }
  0xdb   : > { %v841_v22 = vmul.f32 %v4069_v2, %v839_v20  ;;  %v840_v25 = vmul.f32 %v4074_v1, %v839_v20  ;;  %v942_v41 = vmul.f32 %v4069_v2, %v940_v34 }
  0xdc   : > { %v6587_v49 = vstv %s4148_s6 }
  0xdd   : > { %v946_v48 = vrot.slane %v942_v41, 1 }
  0xde   : > { %724 = vrot.lane.b32.xlu1 %v720_v30, %s6592_s22  ;;  %722 = vrot.lane.b32.xlu0 %v721_v42, %s6592_s22  ;;  %v923_v30 = vstv %s3259_s13  ;;  %v913_v42 = vsel %vm486_vm0, %v911_v37, %v912_v35  ;;  %v6590_v37 = vstv %s4139_s23  ;;  %s4175_s13 = sld [smem:[#allocation6 + $0x47]] }
  0xdf   : > { %v924_v38 = vmul.f32 %v4074_v1, %v923_v30  ;;  %v925_v39 = vmul.f32 %v4069_v2, %v923_v30  ;;  %v1065_v30 = vmul.f32 %v4074_v1, %v1064_v21 }
  0xe1   : > { %v929_v43 = vrot.slane %v925_v39, 1  ;;  %v928_v45 = vrot.slane %v924_v38, 1 }
  0xe2   : > { %741 = vrot.lane.b32.xlu1 %v737_v46, %s6592_s22  ;;  %739 = vrot.lane.b32.xlu0 %v738_v57, %s6592_s22  ;;  %v941_v46 = vmul.f32 %v4074_v1, %v940_v34  ;;  %v959_v57 = vmul.f32 %v4069_v2, %v957_v47 }
  0xe3   : > { %v930_v52 = vsel %vm486_vm0, %v928_v45, %v929_v43  ;;  %v1069_v45 = vrot.slane %v1065_v30, 2 }
  0xe4   : > { %v945_v53 = vrot.slane %v941_v46, 1  ;;  %v963_v3 = vrot.slane %v959_v57, 1 }
  0xe6   : > { %758 = vrot.lane.b32.xlu1 %v754_v54, %s6592_s22  ;;  %756 = vrot.lane.b32.xlu0 %v755_v4, %s6592_s22  ;;  %v958_v54 = vmul.f32 %v4074_v1, %v957_v47  ;;  %v947_v62 = vsel %vm486_vm0, %v945_v53, %v946_v48  ;;  %v1098_v47 = vstv %s4144_s24  ;;  %s4263_s24 = sld [smem:[#allocation6 + $0x31]] }
  0xe7   : > { %v1099_v57 = vmul.f32 %v4074_v1, %v1098_v47  ;;  %v1100_v58 = vmul.f32 %v4069_v2, %v1098_v47 }
  0xe8   : > { %v962_v4 = vrot.slane %v958_v54, 1  ;;  %v6588_v54 = vstv %s4152_s30 }
  0xea   : > { %790 = vrot.lane.b32.xlu1 %v785_v6, %s6594_s11  ;;  %788 = vrot.lane.b32.xlu0 %v784_v7, %s6594_s11  ;;  %v991_v6 = vstv %s3263_s26  ;;  %v980_v7 = vrot.slane %v976_v59, 1  ;;  %s3279_s26 = sld [smem:[#allocation6 + $0x14]] }
  0xeb   : > { %v993_v12 = vmul.f32 %v4069_v2, %v991_v6 }
  0xee   : > { %804 = vrot.lane.b32.xlu1 %v799_v9, %s6594_s11  ;;  %802 = vrot.lane.b32.xlu0 %v798_v11, %s6594_s11  ;;  %v964_v9 = vsel %vm486_vm0, %v962_v4, %v963_v3  ;;  %v992_v11 = vmul.f32 %v4074_v1, %v991_v6  ;;  %v1115_v6 = vstv %s4158_s8  ;;  %s4270_s8 = sld [smem:[#allocation6 + $0x4c]] }
  0xf0   : > { %v996_v20 = vrot.slane %v992_v11, 1  ;;  %v392_v11 = vmul.f32 %v6588_v54, %v3892_v0 }
  0xf2   : > { %818 = vrot.lane.b32.xlu1 %v813_v13, %s6594_s11  ;;  %816 = vrot.lane.b32.xlu0 %v812_v15, %s6594_s11  ;;  %v1047_v13 = vstv %s3267_s29  ;;  %s4249_s29 = sld [smem:[#allocation6 + $0x2f]] }
  0xf3   : > { %v1048_v15 = vmul.f32 %v4074_v1, %v1047_v13  ;;  %v1049_v16 = vmul.f32 %v4069_v2, %v1047_v13  ;;  %v1103_v13 = vrot.slane %v1099_v57, 2 }
  0xf5   : > { %v1052_v26 = vrot.slane %v1048_v15, 2  ;;  %v1116_v15 = vmul.f32 %v4074_v1, %v1115_v6 }
  0xf6   : > { %832 = vrot.lane.b32.xlu1 %v827_v17, %s6592_s22  ;;  %830 = vrot.lane.b32.xlu0 %v826_v19, %s6592_s22  ;;  %v981_v17 = vsel %vm486_vm0, %v979_v8, %v980_v7  ;;  %v997_v19 = vrot.slane %v993_v12, 1  ;;  %v1104_v12 = vrot.slane %v1100_v58, 2 }
  0xf7   : > { %v1120_v30 = vrot.slane %v1116_v15, 2 }
  0xf8   : > { %v998_v29 = vsel %vm486_vm0, %v996_v20, %v997_v19  ;;  %v1117_v20 = vmul.f32 %v4069_v2, %v1115_v6 }
  0xfa   : > { %846 = vrot.lane.b32.xlu1 %v841_v22, %s6592_s22  ;;  %844 = vrot.lane.b32.xlu0 %v840_v25, %s6592_s22  ;;  %v6591_v22 = vstv %s4128_s16  ;;  %v1053_v25 = vrot.slane %v1049_v16, 2 }
  0xfb   : > { %v380_v38 = vmul.f32 %v6591_v22, %v3892_v0 }
  0xfc   : > { %v1054_v39 = vsel %vm628_vm1, %v1052_v26, %v1053_v25 }
  0xfd   : > { %v382_v53 = vadd.f32 %v380_v38, %v6590_v37  ;;  %v1121_v38 = vrot.slane %v1117_v20, 2  ;;  %v1195_v20 = vstv %s3278_s25  ;;  %s3294_s25 = sld [smem:[#allocation6 + $0x19]] }
  0xfe   : > { %860 = vrot.lane.b32.xlu1 %v855_v31, %s6592_s22  ;;  %858 = vrot.lane.b32.xlu0 %v854_v32, %s6592_s22  ;;  %v1066_v31 = vmul.f32 %v4069_v2, %v1064_v21  ;;  %v1081_v32 = vstv %s4133_s19  ;;  %v1132_v21 = vstv %s4175_s13  ;;  %s4259_s19 = sld [smem:[#allocation6 + $0x4a]]  ;;  %s4291_s13 = sld [smem:[#allocation6 + $0x17]] }
  0xff   : > { %v1082_v41 = vmul.f32 %v4074_v1, %v1081_v32  ;;  %v1083_v46 = vmul.f32 %v4069_v2, %v1081_v32 }
 0x101   : > { %v1086_v4 = vrot.slane %v1082_v41, 2  ;;  %v1134_v41 = vmul.f32 %v4069_v2, %v1132_v21 }
 0x102   : > { %916 = vrot.lane.b32.xlu1 %v912_v35, %s6594_s11  ;;  %914 = vrot.lane.b32.xlu0 %v913_v42, %s6594_s11  ;;  %v6589_v35 = vstv %s4136_s20 }
 0x106   : > { %933 = vrot.lane.b32.xlu1 %v929_v43, %s6594_s11  ;;  %931 = vrot.lane.b32.xlu0 %v930_v52, %s6594_s11  ;;  %v1070_v43 = vrot.slane %v1066_v31, 2  ;;  %v386_v52 = vmul.f32 %v6589_v35, %v3892_v0  ;;  %v1133_v31 = vmul.f32 %v4074_v1, %v1132_v21 }
 0x108   : > { %v388_v8 = vadd.f32 %v386_v52, %v6587_v49  ;;  %v1122_v52 = vsel %vm628_vm1, %v1120_v30, %v1121_v38 }
 0x10a   : > { %950 = vrot.lane.b32.xlu1 %v946_v48, %s6594_s11  ;;  %948 = vrot.lane.b32.xlu0 %v947_v62, %s6594_s11  ;;  %v1071_v62 = vsel %vm628_vm1, %v1069_v45, %v1070_v43 }
 0x10e   : > { %967 = vrot.lane.b32.xlu1 %v963_v3, %s6592_s22  ;;  %965 = vrot.lane.b32.xlu0 %v964_v9, %s6592_s22  ;;  %v1087_v3 = vrot.slane %v1083_v46, 2  ;;  %v6586_v9 = vstv %s4162_s12  ;;  %v1137_v46 = vrot.slane %v1133_v31, 2 }
 0x10f   : > { %v394_v0 = vadd.f32 %v392_v11, %v6586_v9 }
 0x112   : > { %984 = vrot.lane.b32.xlu1 %v980_v7, %s6592_s22  ;;  %982 = vrot.lane.b32.xlu0 %v981_v17, %s6592_s22 }
 0x114   : > { %v417_v27 = vpop.permute.xlu1 %416  ;;  %v403_v34 = vpop.permute.xlu0 %402 }
 0x115   : > { %v408_v16 = vadd.f32 %v403_v34, %v382_v53  ;;  %v422_v32 = vadd.f32 %v417_v27, %v388_v8  ;;  %v1138_v53 = vrot.slane %v1134_v41, 2 }
 0x116   : > { %1001 = vrot.lane.b32.xlu1 %v997_v19, %s6592_s22  ;;  %999 = vrot.lane.b32.xlu0 %v998_v29, %s6592_s22  ;;  %v1088_v19 = vsel %vm628_vm1, %v1086_v4, %v1087_v3  ;;  %v1105_v29 = vsel %vm628_vm1, %v1103_v13, %v1104_v12  ;;  %v1181_v13 = vstv %s3277_s21  ;;  %s3290_s21 = sld [smem:[#allocation6 + $0x4d]] }
 0x117   : > { %v1139_v6 = vsel %vm628_vm1, %v1137_v46, %v1138_v53 }
 0x118   : > { %v4171_v42 = vpop.permute.xlu1 %418  ;;  %v4177_v48 = vpop.permute.xlu0 %404 }
 0x11a   : > { %1057 = vrot.lane.b32.xlu1 %v1053_v25, %s6594_s11  ;;  %1055 = vrot.lane.b32.xlu0 %v1054_v39, %s6594_s11 }
 0x11c   : > { %v4190_v59 = vpop.permute.xlu1 %432  ;;  %v431_v7 = vpop.permute.xlu0 %430 }
 0x11d   : > { %v436_v47 = vadd.f32 %v431_v7, %v394_v0  ;;  %v4236_v7 = vld [vmem:[%s3873_s14 + $0x20] sm:$0xff] }
 0x11e   : > { %1074 = vrot.lane.b32.xlu1 %v1070_v43, %s6594_s11  ;;  %1072 = vrot.lane.b32.xlu0 %v1071_v62, %s6594_s11  ;;  %v4229_v62 = vld [vmem:[%s3873_s14 + $0x28] sm:$0xff]  ;;  %v1196_v0 = vmul.f32 %v4236_v7, %v1195_v20 }
 0x120   : > { %v4203_v17 = vpop.permute.xlu1 %446  ;;  %v445_v25 = vpop.permute.xlu0 %444 }
 0x121   : > { %v450_v26 = vadd.f32 %v445_v25, %v408_v16 }
 0x122   : > { %1091 = vrot.lane.b32.xlu1 %v1087_v3, %s6594_s11  ;;  %1089 = vrot.lane.b32.xlu0 %v1088_v19, %s6594_s11  ;;  %v1167_v3 = vstv %s4214_s10  ;;  %v1183_v19 = vmul.f32 %v4229_v62, %v1181_v13  ;;  %s4305_s10 = sld [smem:[#allocation6 + $0x32]] }
 0x123   : > { %v492_v39 = vadd.f32 %v4001_v23, %v450_v26  ;;  %v1197_v26 = vmul.f32 %v4229_v62, %v1195_v20 }
 0x124   : > { %v4216_v34 = vpop.permute.xlu1 %460  ;;  %v459_v43 = vpop.permute.xlu0 %458 }
 0x125   : > { %v464_v45 = vadd.f32 %v459_v43, %v422_v32 }
 0x126   : > { %1108 = vrot.lane.b32.xlu1 %v1104_v12, %s6592_s22  ;;  %1106 = vrot.lane.b32.xlu0 %v1105_v29, %s6592_s22  ;;  %v1168_v12 = vmul.f32 %v4236_v7, %v1167_v3  ;;  %v1209_v29 = vstv %s3279_s26  ;;  %s4338_s26 = sld [smem:[#allocation6 + $0x34]] }
 0x127   : > { %v505_v23 = vadd.f32 %v4018_v33, %v464_v45  ;;  %v1169_v33 = vmul.f32 %v4229_v62, %v1167_v3  ;;  %v1211_v41 = vmul.f32 %v4229_v62, %v1209_v29  ;;  %v1210_v43 = vmul.f32 %v4236_v7, %v1209_v29 }
 0x128   : > { %v4222_v27 = vpop.permute.xlu1 %474  ;;  %v473_v57 = vpop.permute.xlu0 %472  ;;  %v1223_v45 = vstv %s4249_s29  ;;  %s4344_s29 = sld [smem:[#allocation6 + $0x4f]] }
 0x129   : > { %v478_v58 = vadd.f32 %v473_v57, %v436_v47  ;;  %v1224_v3 = vmul.f32 %v4236_v7, %v1223_v45 }
 0x12a   : > { %1125 = vrot.lane.b32.xlu1 %v1121_v38, %s6592_s22  ;;  %1123 = vrot.lane.b32.xlu0 %v1122_v52, %s6592_s22  ;;  %v1290_v52 = vstv %s4253_s15  ;;  %s3297_s15 = sld [smem:[#allocation6 + $0x1a]] }
 0x12b   : > { %v518_v8 = vadd.f32 %v4029_v40, %v478_v58  ;;  %v1182_v40 = vmul.f32 %v4236_v7, %v1181_v13  ;;  %v1225_v58 = vmul.f32 %v4229_v62, %v1223_v45 }
 0x12c   : > { %v4232_v4 = vpop.permute.xlu1 %531  ;;  %v530_v11 = vpop.permute.xlu0 %529 }
 0x12d   : > { %v535_v30 = vadd.f32 %v530_v11, %v492_v39 }
 0x12e   : > { %1142 = vrot.lane.b32.xlu1 %v1138_v53, %s6592_s22  ;;  %1140 = vrot.lane.b32.xlu0 %v1139_v6, %s6592_s22  ;;  %v1237_v6 = vstv %s4259_s19  ;;  %s3298_s19 = sld [smem:[#allocation6 + $0x35]] }
 0x130   : > { %v4243_v15 = vpop.permute.xlu1 %548  ;;  %v547_v16 = vpop.permute.xlu0 %546  ;;  %v1482_v56 = vstv %s3297_s15  ;;  %s4654_s15 = sld [smem:[#allocation6 + $0x4b]] }
 0x131   : > { %v552_v46 = vadd.f32 %v547_v16, %v505_v23  ;;  %v1292_v23 = vmul.f32 %v4229_v62, %v1290_v52  ;;  %v1307_v16 = vstv %s4263_s24  ;;  %s3299_s24 = sld [smem:[#allocation6 + $0x50]] }
 0x132   : > { %1174 = vrot.lane.b32.xlu1 %v1169_v33, %s6594_s11  ;;  %1172 = vrot.lane.b32.xlu0 %v1168_v12, %s6594_s11  ;;  %v1291_v12 = vmul.f32 %v4236_v7, %v1290_v52  ;;  %v1308_v29 = vmul.f32 %v4236_v7, %v1307_v16 }
 0x133   : > { %v1296_v20 = vrot.slane %v1292_v23, 1 }
 0x134   : > { %v4251_v21 = vpop.permute.xlu1 %565  ;;  %v564_v25 = vpop.permute.xlu0 %563 }
 0x135   : > { %v569_v11 = vadd.f32 %v564_v25, %v518_v8  ;;  %v1238_v8 = vmul.f32 %v4236_v7, %v1237_v6  ;;  %v1324_v25 = vstv %s4270_s8  ;;  %s3255_s8 = sld [smem:[#allocation6 + $0xc]] }
 0x136   : > { %1188 = vrot.lane.b32.xlu1 %v1183_v19, %s6594_s11  ;;  %1186 = vrot.lane.b32.xlu0 %v1182_v40, %s6594_s11  ;;  %v1239_v40 = vmul.f32 %v4229_v62, %v1237_v6 }
 0x138   : > { %v4261_v31 = vpop.permute.xlu1 %582  ;;  %v581_v32 = vpop.permute.xlu0 %580 }
 0x139   : > { %v586_v38 = vadd.f32 %v581_v32, %v535_v30  ;;  %v1309_v30 = vmul.f32 %v4229_v62, %v1307_v16 }
 0x13a   : > { %1202 = vrot.lane.b32.xlu1 %v1197_v26, %s6594_s11  ;;  %1200 = vrot.lane.b32.xlu0 %v1196_v0, %s6594_s11 }
 0x13b   : > { %v4275_v47 = vadd.f32 %v4052_v55, %v586_v38  ;;  %v1325_v38 = vmul.f32 %v4236_v7, %v1324_v25  ;;  %v1313_v45 = vrot.slane %v1309_v30, 1 }
 0x13c   : > { %v4272_v39 = vpop.permute.xlu1 %599  ;;  %v598_v53 = vpop.permute.xlu0 %597 }
 0x13d   : > { %v603_v57 = vadd.f32 %v598_v53, %v552_v46  ;;  %v1312_v46 = vrot.slane %v1308_v29, 1  ;;  %v1341_v53 = vstv %s4291_s13  ;;  %s4472_s13 = sld [smem:[#allocation6 + $0x9]] }
 0x13e   : > { %1216 = vrot.lane.b32.xlu1 %v1211_v41, %s6592_s22  ;;  %1214 = vrot.lane.b32.xlu0 %v1210_v43, %s6592_s22  ;;  %v1326_v41 = vmul.f32 %v4229_v62, %v1324_v25  ;;  %v1342_v23 = vmul.f32 %v4236_v7, %v1341_v53 }
 0x13f   : > { %v4287_v55 = vadd.f32 %v4063_v61, %v603_v57  ;;  %v1295_v61 = vrot.slane %v1291_v12, 1  ;;  %v1314_v6 = vsel %vm486_vm0, %v1312_v46, %v1313_v45  ;;  %v1358_v12 = vstv %s4305_s10  ;;  %s4571_s10 = sld [smem:[#allocation6 + $0x12]] }
 0x140   : > { %v4284_v33 = vpop.permute.xlu1 %616  ;;  %v615_v13 = vpop.permute.xlu0 %614  ;;  %v1330_v57 = vrot.slane %v1326_v41, 1  ;;  %v1360_v25 = vmul.f32 %v4229_v62, %v1358_v12 }
 0x141   : > { %v620_v19 = vadd.f32 %v615_v13, %v569_v11  ;;  %v1343_v11 = vmul.f32 %v4229_v62, %v1341_v53 }
 0x142   : > { %1230 = vrot.lane.b32.xlu1 %v1225_v58, %s6592_s22  ;;  %1228 = vrot.lane.b32.xlu0 %v1224_v3, %s6592_s22  ;;  %v1329_v58 = vrot.slane %v1325_v38, 1 }
 0x143   : > { %v4301_v0 = vadd.f32 %v4079_v5, %v620_v19  ;;  %v1297_v5 = vsel %vm486_vm0, %v1295_v61, %v1296_v20  ;;  %v1359_v19 = vmul.f32 %v4236_v7, %v1358_v12  ;;  %v1375_v61 = vstv %s3290_s21  ;;  %s4584_s21 = sld [smem:[#allocation6 + $0x2d]] }
 0x144   : > { %v4298_v26 = vpop.permute.xlu1 %673  ;;  %v4307_v32 = vpop.permute.xlu0 %671  ;;  %v1331_v16 = vsel %vm486_vm0, %v1329_v58, %v1330_v57  ;;  %v1376_v30 = vmul.f32 %v4236_v7, %v1375_v61  ;;  %v1377_v38 = vmul.f32 %v4229_v62, %v1375_v61  ;;  %v1431_v58 = vstv %s3294_s25  ;;  %s4588_s25 = sld [smem:[#allocation6 + $0x15]] }
 0x145   : > { %v1363_v46 = vrot.slane %v1359_v19, 1  ;;  %v1432_v12 = vmul.f32 %v4236_v7, %v1431_v58 }
 0x146   : > { %1244 = vrot.lane.b32.xlu1 %v1239_v40, %s6592_s22  ;;  %1242 = vrot.lane.b32.xlu0 %v1238_v8, %s6592_s22  ;;  %v1347_v8 = vrot.slane %v1343_v11, 1 }
 0x148   : > { %v4313_v43 = vpop.permute.xlu1 %690  ;;  %v4316_v52 = vpop.permute.xlu0 %688 }
 0x14a   : > { %1300 = vrot.lane.b32.xlu1 %v1296_v20, %s6594_s11  ;;  %1298 = vrot.lane.b32.xlu0 %v1297_v5, %s6594_s11  ;;  %v1346_v20 = vrot.slane %v1342_v23, 1 }
 0x14c   : > { %v4321_v3 = vpop.permute.xlu1 %707  ;;  %v4327_v13 = vpop.permute.xlu0 %705  ;;  %v1348_v5 = vsel %vm486_vm0, %v1346_v20, %v1347_v8  ;;  %v1448_v20 = vstv %s4338_s26  ;;  %s4598_s26 = sld [smem:[#allocation6 + $0x30]] }
 0x14e   : > { %1317 = vrot.lane.b32.xlu1 %v1313_v45, %s6594_s11  ;;  %1315 = vrot.lane.b32.xlu0 %v1314_v6, %s6594_s11  ;;  %v1364_v45 = vrot.slane %v1360_v25, 1  ;;  %v1380_v6 = vrot.slane %v1376_v30, 1  ;;  %v1465_v25 = vstv %s4344_s29  ;;  %s4611_s29 = sld [smem:[#allocation6 + $0x48]] }
 0x150   : > { %v4333_v40 = vpop.permute.xlu1 %724  ;;  %v4336_v29 = vpop.permute.xlu0 %722  ;;  %v1365_v11 = vsel %vm486_vm0, %v1363_v46, %v1364_v45  ;;  %v1449_v46 = vmul.f32 %v4236_v7, %v1448_v20 }
 0x152   : > { %1334 = vrot.lane.b32.xlu1 %v1330_v57, %s6594_s11  ;;  %1332 = vrot.lane.b32.xlu0 %v1331_v16, %s6594_s11  ;;  %v1381_v57 = vrot.slane %v1377_v38, 1  ;;  %v1433_v16 = vmul.f32 %v4229_v62, %v1431_v58  ;;  %v1436_v38 = vrot.slane %v1432_v12, 2  ;;  %v1453_v63 = vrot.slane %v1449_v46, 2 }
 0x153   : > { %v1499_v46 = vstv %s3298_s19  ;;  %s4662_s19 = sld [smem:[#allocation6 + $0x18]] }
 0x154   : > { %v4346_v41 = vpop.permute.xlu1 %741  ;;  %v4349_v53 = vpop.permute.xlu0 %739  ;;  %v1437_v30 = vrot.slane %v1433_v16, 2  ;;  %v1500_v9 = vmul.f32 %v4236_v7, %v1499_v46 }
 0x156   : > { %1351 = vrot.lane.b32.xlu1 %v1347_v8, %s6592_s22  ;;  %1349 = vrot.lane.b32.xlu0 %v1348_v5, %s6592_s22  ;;  %v1382_v8 = vsel %vm486_vm0, %v1380_v6, %v1381_v57  ;;  %v1450_v5 = vmul.f32 %v4229_v62, %v1448_v20  ;;  %v1466_v6 = vmul.f32 %v4236_v7, %v1465_v25 }
 0x157   : > { %v1438_v16 = vsel %vm628_vm1, %v1436_v38, %v1437_v30  ;;  %v1483_v20 = vmul.f32 %v4236_v7, %v1482_v56 }
 0x158   : > { %v4353_v23 = vpop.permute.xlu1 %758  ;;  %v4358_v19 = vpop.permute.xlu0 %756  ;;  %v1454_v12 = vrot.slane %v1450_v5, 2  ;;  %v1470_v38 = vrot.slane %v1466_v6, 2 }
 0x159   : > { %v1487_v24 = vrot.slane %v1483_v20, 2  ;;  %v1504_v20 = vrot.slane %v1500_v9, 2 }
 0x15a   : > { %1368 = vrot.lane.b32.xlu1 %v1364_v45, %s6592_s22  ;;  %1366 = vrot.lane.b32.xlu0 %v1365_v11, %s6592_s22  ;;  %v1467_v45 = vmul.f32 %v4229_v62, %v1465_v25  ;;  %v1455_v25 = vsel %vm628_vm1, %v1453_v63, %v1454_v12 }
 0x15c   : > { %v4365_v61 = vpop.permute.xlu1 %790  ;;  %v4369_v58 = vpop.permute.xlu0 %788  ;;  %v1471_v36 = vrot.slane %v1467_v45, 2  ;;  %v1516_v45 = vstv %s3299_s24  ;;  %s4688_s24 = sld [smem:[#allocation6 + $0x33]] }
 0x15e   : > { %1385 = vrot.lane.b32.xlu1 %v1381_v57, %s6592_s22  ;;  %1383 = vrot.lane.b32.xlu0 %v1382_v8, %s6592_s22  ;;  %v1484_v57 = vmul.f32 %v4229_v62, %v1482_v56  ;;  %v1472_v14 = vsel %vm628_vm1, %v1470_v38, %v1471_v36  ;;  %v1501_v56 = vmul.f32 %v4229_v62, %v1499_v46 }
 0x15f   : > { %v1517_v38 = vmul.f32 %v4236_v7, %v1516_v45 }
 0x160   : > { %v4375_v11 = vpop.permute.xlu1 %804  ;;  %v4378_v50 = vpop.permute.xlu0 %802 }
 0x162   : > { %1441 = vrot.lane.b32.xlu1 %v1437_v30, %s6594_s11  ;;  %1439 = vrot.lane.b32.xlu0 %v1438_v16, %s6594_s11  ;;  %v1488_v30 = vrot.slane %v1484_v57, 2  ;;  %v1505_v57 = vrot.slane %v1501_v56, 2 }
 0x164   : > { %v4384_v8 = vpop.permute.xlu1 %818  ;;  %v4387_v5 = vpop.permute.xlu0 %816  ;;  %v1489_v6 = vsel %vm628_vm1, %v1487_v24, %v1488_v30  ;;  %v1521_v24 = vrot.slane %v1517_v38, 2 }
 0x166   : > { %1458 = vrot.lane.b32.xlu1 %v1454_v12, %s6594_s11  ;;  %1456 = vrot.lane.b32.xlu0 %v1455_v25, %s6594_s11  ;;  %v1518_v25 = vmul.f32 %v4229_v62, %v1516_v45 }
 0x168   : > { %v4391_v16 = vpop.permute.xlu1 %832  ;;  %v4396_v63 = vpop.permute.xlu0 %830 }
 0x16a   : > { %1475 = vrot.lane.b32.xlu1 %v1471_v36, %s6594_s11  ;;  %1473 = vrot.lane.b32.xlu0 %v1472_v14, %s6594_s11  ;;  %v1506_v14 = vsel %vm628_vm1, %v1504_v20, %v1505_v57  ;;  %v1522_v36 = vrot.slane %v1518_v25, 2  ;;  %s4889_s11 = sld [smem:[#allocation9 + $0xa]] }
 0x16c   : > { %v4401_v12 = vpop.permute.xlu1 %846  ;;  %v4405_v49 = vpop.permute.xlu0 %844  ;;  %v1523_v56 = vsel %vm628_vm1, %v1521_v24, %v1522_v36 }
 0x16e   : > { %1492 = vrot.lane.b32.xlu1 %v1488_v30, %s6592_s22  ;;  %1490 = vrot.lane.b32.xlu0 %v1489_v6, %s6592_s22 }
 0x170   : > { %v4409_v46 = vpop.permute.xlu1 %860  ;;  %v4412_v54 = vpop.permute.xlu0 %858 }
 0x171   : > { %6688 = vst [vmem:[#allocation22_spill] sm:$0xff] %v4412_v54 }
 0x172   : > { %1509 = vrot.lane.b32.xlu1 %v1505_v57, %s6592_s22  ;;  %1507 = vrot.lane.b32.xlu0 %v1506_v14, %s6592_s22 }
 0x174   : > { %v4416_v9 = vpop.permute.xlu1 %916  ;;  %v4419_v45 = vpop.permute.xlu0 %914 }
 0x176   : > { %1526 = vrot.lane.b32.xlu1 %v1522_v36, %s6592_s22  ;;  %1524 = vrot.lane.b32.xlu0 %v1523_v56, %s6592_s22  ;;  %s4887_s22 = sld [smem:[#allocation9 + $0x3e]] }
 0x178   : > { %v4423_v30 = vpop.permute.xlu1 %933  ;;  %v4425_v6 = vpop.permute.xlu0 %931 }
 0x179   : > { %6689 = vst [vmem:[#allocation23_spill] sm:$0xff] %v4423_v30  ;;  %6690 = vst [vmem:[#allocation24_spill] sm:$0xff] %v4425_v6 }
 0x17c   : > { %v4427_v20 = vpop.permute.xlu1 %950  ;;  %v4429_v57 = vpop.permute.xlu0 %948 }
 0x17d   : > { %6691 = vst [vmem:[#allocation25_spill] sm:$0xff] %v4427_v20  ;;  %6692 = vst [vmem:[#allocation26_spill] sm:$0xff] %v4429_v57 }
 0x180   : > { %v4431_v25 = vpop.permute.xlu1 %967  ;;  %v4433_v38 = vpop.permute.xlu0 %965 }
 0x181   : > { %6693 = vst [vmem:[#allocation27_spill] sm:$0xff] %v4431_v25  ;;  %6694 = vst [vmem:[#allocation28_spill] sm:$0xff] %v4433_v38 }
 0x184   : > { %v4435_v14 = vpop.permute.xlu1 %984  ;;  %v4437_v36 = vpop.permute.xlu0 %982 }
 0x185   : > { %6695 = vst [vmem:[#allocation29_spill] sm:$0xff] %v4435_v14  ;;  %6696 = vst [vmem:[#allocation30_spill] sm:$0xff] %v4437_v36  ;;  %v3508_v14 = vld [vmem:[%s3873_s14 + $0x8] sm:$0xff]  ;;  %v6705_v36 = vstv %s4128_s16  ;;  %s4474_s14 = sld [smem:[#allocation6 + $0x24]]  ;;  %s4479_s16 = sld [smem:[#allocation6 + $0x27]] }
 0x188   : > { %v4439_v24 = vpop.permute.xlu1 %1001  ;;  %v4441_v56 = vpop.permute.xlu0 %999 }
 0x189   : > { %6697 = vst [vmem:[#allocation31_spill] sm:$0xff] %v4439_v24  ;;  %6698 = vst [vmem:[#allocation32_spill] sm:$0xff] %v4441_v56  ;;  %v381_v24 = vmul.f32 %v3508_v14, %v6705_v36 }
 0x18c   : > { %v4443_v35 = vpop.permute.xlu1 %1057  ;;  %v4445_v37 = vpop.permute.xlu0 %1055 }
 0x18d   : > { %6699 = vst [vmem:[#allocation33_spill] sm:$0xff] %v4443_v35  ;;  %6700 = vst [vmem:[#allocation34_spill] sm:$0xff] %v4445_v37  ;;  %v6708_v35 = vstv %s4139_s23  ;;  %v6709_v37 = vstv %s4136_s20  ;;  %s4488_s20 = sld [smem:[#allocation6 + $0x3f]]  ;;  %s4490_s23 = sld [smem:[#allocation6 + $0x42]] }
 0x18e   : > { %v383_v54 = vadd.f32 %v381_v24, %v6708_v35  ;;  %v387_v38 = vmul.f32 %v3508_v14, %v6709_v37  ;;  %v6715_v37 = vstv %s4162_s12  ;;  %s4502_s12 = sld [smem:[#allocation6 + $0x45]] }
 0x190   : > { %v4447_v22 = vpop.permute.xlu1 %1074  ;;  %v4449_v57 = vpop.permute.xlu0 %1072  ;;  %v409_v36 = vadd.f32 %v4177_v48, %v383_v54  ;;  %v867_v54 = vstv %s3255_s8  ;;  %s4695_s8 = sld [smem:[#allocation6 + $0x4e]] }
 0x191   : > { %6701 = vst [vmem:[#allocation35_spill] sm:$0xff] %v4447_v22  ;;  %6702 = vst [vmem:[#allocation36_spill] sm:$0xff] %v4449_v57  ;;  %v6711_v57 = vstv %s4152_s30  ;;  %s4492_s30 = sld [smem:[#allocation6 + $0xf]] }
 0x192   : > { %v393_v25 = vmul.f32 %v3508_v14, %v6711_v57  ;;  %v451_v57 = vadd.f32 %v4203_v17, %v409_v36  ;;  %v6718_v17 = vrot.slane %v3979_v10, 1  ;;  %v4515_v10 = vmul.f32 %v4069_v2, %v867_v54 }
 0x194   : > { %v4451_v20 = vpop.permute.xlu1 %1091  ;;  %v4453_v6 = vpop.permute.xlu0 %1089  ;;  %v395_v24 = vadd.f32 %v393_v25, %v6715_v37 }
 0x195   : > { %6703 = vst [vmem:[#allocation37_spill] sm:$0xff] %v4451_v20  ;;  %6704 = vst [vmem:[#allocation38_spill] sm:$0xff] %v4453_v6  ;;  %v6713_v6 = vstv %s4148_s6  ;;  %s4495_s6 = sld [smem:[#allocation6 + $0x2a]] }
 0x196   : > { %v437_v25 = vadd.f32 %v4190_v59, %v395_v24  ;;  %v880_v59 = vstv %s4479_s16  ;;  %s4785_s16 = sld [smem:[#allocation9 + $0x37]] }
 0x198   : > { %v4458_v30 = vpop.permute.xlu1 %1108  ;;  %v4460_v56 = vpop.permute.xlu0 %1106 }
 0x199   : > { %6706 = vst [vmem:[#allocation39_spill] sm:$0xff] %v4458_v30  ;;  %6707 = vst [vmem:[#allocation40_spill] sm:$0xff] %v4460_v56  ;;  %v389_v30 = vadd.f32 %v387_v38, %v6713_v6  ;;  %v493_v38 = vadd.f32 %v6718_v17, %v451_v57 }
 0x19b   : > { %v423_v48 = vadd.f32 %v4171_v42, %v389_v30  ;;  %v771_v42 = vstv %s4474_s14  ;;  %v479_v30 = vadd.f32 %v4222_v27, %v437_v25  ;;  %v6722_v25 = vrot.slane %v3992_v18, 1  ;;  %s4783_s14 = sld [smem:[#allocation9 + $0x1c]] }
 0x19c   : > { %v4466_v22 = vpop.permute.xlu1 %1125  ;;  %v4470_v20 = vpop.permute.xlu0 %1123  ;;  %v4526_v27 = vmul.f32 %v4069_v2, %v771_v42  ;;  %v4533_v17 = vmul.f32 %v4074_v1, %v771_v42  ;;  %v4545_v18 = vmul.f32 %v4069_v2, %v880_v59 }
 0x19d   : > { %6710 = vst [vmem:[#allocation41_spill] sm:$0xff] %v4466_v22  ;;  %6712 = vst [vmem:[#allocation42_spill] sm:$0xff] %v4470_v20  ;;  %v465_v37 = vadd.f32 %v4216_v34, %v423_v48  ;;  %v1008_v20 = vstv %s4492_s30  ;;  %s4801_s30 = sld [smem:[#allocation9 + $0x38]] }
 0x1a0   : > { %v4481_v35 = vpop.permute.xlu1 %1142  ;;  %v4486_v14 = vpop.permute.xlu0 %1140 }
 0x1a1   : > { %6714 = vst [vmem:[#allocation43_spill] sm:$0xff] %v4481_v35  ;;  %6716 = vst [vmem:[#allocation44_spill] sm:$0xff] %v4486_v14  ;;  %v765_v14 = vstv %s4472_s13  ;;  %v536_v35 = vadd.f32 %v4232_v4, %v493_v38  ;;  %v777_v38 = vstv %s4488_s20  ;;  %s4777_s13 = sld [smem:[#allocation9 + $0x1]]  ;;  %s4792_s20 = sld [smem:[#allocation9 + $0x2]] }
 0x1a2   : > { %v767_v57 = vmul.f32 %v4069_v2, %v765_v14  ;;  %v4523_v48 = vmul.f32 %v4074_v1, %v765_v14 }
 0x1a3   : > { %v587_v34 = vadd.f32 %v4261_v31, %v536_v35  ;;  %v893_v31 = vstv %s4490_s23  ;;  %v6723_v35 = vrot.slane %v4008_v28, 1  ;;  %v6725_v28 = vrot.slane %v4038_v44, 2  ;;  %s4794_s23 = sld [smem:[#allocation9 + $0x1d]] }
 0x1a4   : > { %v4497_v6 = vpop.permute.xlu1 %1174  ;;  %v4504_v36 = vpop.permute.xlu0 %1172 }
 0x1a5   : > { %6717 = vst [vmem:[#allocation45_spill] sm:$0xff] %v4497_v6  ;;  %6719 = vst [vmem:[#allocation46_spill] sm:$0xff] %v4504_v36  ;;  %v4512_v6 = vmul.f32 %v4074_v1, %v867_v54  ;;  %v506_v54 = vadd.f32 %v6722_v25, %v465_v37  ;;  %v881_v36 = vmul.f32 %v4074_v1, %v880_v59  ;;  %v1021_v37 = vstv %s4495_s6  ;;  %s4803_s6 = sld [smem:[#allocation9 + $0x4]] }
 0x1a6   : > { %v1009_v59 = vmul.f32 %v4074_v1, %v1008_v20 }
 0x1a7   : > { %v872_v14 = vrot.slane %v4512_v6, 1  ;;  %v553_v22 = vadd.f32 %v4243_v15, %v506_v54  ;;  %v894_v6 = vmul.f32 %v4074_v1, %v893_v31  ;;  %v4559_v54 = vmul.f32 %v4069_v2, %v893_v31 }
 0x1a8   : > { %v4518_v24 = vpop.permute.xlu1 %1188  ;;  %v4528_v4 = vpop.permute.xlu0 %1186 }
 0x1a9   : > { %6720 = vst [vmem:[#allocation47_spill] sm:$0xff] %v4518_v24  ;;  %6721 = vst [vmem:[#allocation48_spill] sm:$0xff] %v4528_v4  ;;  %v519_v24 = vadd.f32 %v6723_v35, %v479_v30  ;;  %v635_v30 = vadd.f32 %v6725_v28, %v587_v34  ;;  %v1034_v35 = vstv %s4502_s12  ;;  %v604_v15 = vadd.f32 %v4272_v39, %v553_v22  ;;  %s4811_s12 = sld [smem:[#allocation9 + $0x1f]] }
 0x1aa   : > { %v4563_v4 = vmul.f32 %v4069_v2, %v1008_v20  ;;  %v4569_v34 = vmul.f32 %v4069_v2, %v1021_v37  ;;  %v677_v22 = vadd.f32 %v4307_v32, %v4275_v47  ;;  %v885_v39 = vrot.slane %v881_v36, 1 }
 0x1ab   : > { %v570_v25 = vadd.f32 %v4251_v21, %v519_v24  ;;  %v678_v44 = vadd.f32 %v4298_v26, %v635_v30  ;;  %v1022_v24 = vmul.f32 %v4074_v1, %v1021_v37  ;;  %v1035_v31 = vmul.f32 %v4074_v1, %v1034_v35 }
 0x1ac   : > { %v4548_v42 = vpop.permute.xlu1 %1202  ;;  %v4555_v56 = vpop.permute.xlu0 %1200  ;;  %v4577_v20 = vmul.f32 %v4069_v2, %v1034_v35  ;;  %v779_v26 = vmul.f32 %v4069_v2, %v777_v38  ;;  %v6727_v47 = vrot.slane %v4044_v51, 2  ;;  %v728_v36 = vadd.f32 %v4336_v29, %v677_v22 }
 0x1ad   : > { %6724 = vst [vmem:[#allocation49_spill] sm:$0xff] %v4548_v42  ;;  %6726 = vst [vmem:[#allocation50_spill] sm:$0xff] %v4555_v56  ;;  %v621_v21 = vadd.f32 %v4284_v33, %v570_v25  ;;  %v729_v33 = vadd.f32 %v4333_v40, %v678_v44  ;;  %v898_v25 = vrot.slane %v894_v6, 1  ;;  %v899_v35 = vrot.slane %v4559_v54, 1 }
 0x1ae   : > { %v648_v32 = vadd.f32 %v6727_v47, %v604_v15  ;;  %v1013_v56 = vrot.slane %v1009_v59, 2  ;;  %v6728_v40 = vrot.slane %v4058_v60, 2  ;;  %v1014_v44 = vrot.slane %v4563_v4, 2 }
 0x1af   : > { %v1026_v6 = vrot.slane %v1022_v24, 2  ;;  %v1027_v37 = vrot.slane %v4569_v34, 2  ;;  %v694_v51 = vadd.f32 %v4316_v52, %v4287_v55  ;;  %v1039_v15 = vrot.slane %v1035_v31, 2  ;;  %v6748_v34 = vld [vmem:[#allocation35_spill] sm:$0xff] }
 0x1b0   : > { %v4579_v28 = vpop.permute.xlu1 %1216  ;;  %v4586_v30 = vpop.permute.xlu0 %1214  ;;  %v661_v2 = vadd.f32 %v6728_v40, %v621_v21  ;;  %v695_v42 = vadd.f32 %v4313_v43, %v648_v32  ;;  %v1040_v29 = vrot.slane %v4577_v20, 2  ;;  %v769_v21 = vadd.f32 %v767_v57, %v729_v33  ;;  %v6750_v20 = vld [vmem:[#allocation37_spill] sm:$0xff] }
 0x1b1   : > { %v778_v24 = vmul.f32 %v4074_v1, %v777_v38  ;;  %v6729_v22 = vrot.slane %v4515_v10, 1  ;;  %v745_v52 = vadd.f32 %v4349_v53, %v694_v51  ;;  %v768_v31 = vadd.f32 %v4523_v48, %v728_v36 }
 0x1b2   : > { %v712_v60 = vadd.f32 %v4321_v3, %v661_v2  ;;  %v746_v55 = vadd.f32 %v4346_v41, %v695_v42  ;;  %v6730_v3 = vrot.slane %v4545_v18, 1  ;;  %v795_v38 = vadd.f32 %v4365_v61, %v769_v21 }
 0x1b3   : > { %v874_v47 = vsel %vm486_vm0, %v872_v14, %v6729_v22  ;;  %v4626_v14 = vsel %vm486_vm0, %v898_v25, %v899_v35  ;;  %v1149_v33 = vstv %s4571_s10  ;;  %v794_v41 = vadd.f32 %v4369_v58, %v768_v31  ;;  %s4821_s10 = sld [smem:[#allocation9 + $0x3a]] }
 0x1b4   : > { %v4604_v59 = vpop.permute.xlu1 %1230  ;;  %v4613_v43 = vpop.permute.xlu0 %1228  ;;  %v887_v1 = vsel %vm486_vm0, %v885_v39, %v6730_v3  ;;  %v763_v57 = vadd.f32 %v4353_v23, %v712_v60  ;;  %v4633_v53 = vsel %vm628_vm1, %v1013_v56, %v1014_v44  ;;  %v4638_v48 = vsel %vm628_vm1, %v1026_v6, %v1027_v37 }
 0x1b5   : > { %v4643_v23 = vsel %vm628_vm1, %v1039_v15, %v1040_v29  ;;  %v711_v58 = vadd.f32 %v4327_v13, %v4301_v0  ;;  %v837_v42 = vadd.f32 %v4391_v16, %v795_v38  ;;  %v1155_v56 = vstv %s4584_s21  ;;  %s4823_s21 = sld [smem:[#allocation9 + $0x5]] }
 0x1b6   : > { %v1251_v25 = vstv %s4588_s25  ;;  %v775_v32 = vadd.f32 %v4526_v27, %v746_v55  ;;  %v774_v36 = vadd.f32 %v4533_v17, %v745_v52  ;;  %v836_v40 = vadd.f32 %v4396_v63, %v794_v41  ;;  %s4845_s25 = sld [smem:[#allocation9 + $0x20]] }
 0x1b7   : > { %v4660_v2 = vmul.f32 %v4229_v62, %v1149_v33  ;;  %v762_v0 = vadd.f32 %v4358_v19, %v711_v58  ;;  %v781_v13 = vadd.f32 %v779_v26, %v763_v57  ;;  %v4666_v16 = vmul.f32 %v4236_v7, %v1149_v33  ;;  %v6732_v33 = vld [vmem:[#allocation27_spill] sm:$0xff] }
 0x1b8   : > { %v4645_v61 = vpop.permute.xlu1 %1244  ;;  %v4651_v39 = vpop.permute.xlu0 %1242  ;;  %v1264_v6 = vstv %s4598_s26  ;;  %v809_v51 = vadd.f32 %v4375_v11, %v775_v32  ;;  %v808_v27 = vadd.f32 %v4378_v50, %v774_v36  ;;  %v4672_v17 = vmul.f32 %v4229_v62, %v1155_v56  ;;  %v6734_v32 = vld [vmem:[#allocation28_spill] sm:$0xff]  ;;  %s4847_s26 = sld [smem:[#allocation9 + $0x3b]] }
 0x1b9   : > { %v4675_v63 = vmul.f32 %v4236_v7, %v1251_v25  ;;  %v823_v60 = vadd.f32 %v4384_v8, %v781_v13  ;;  %v6731_v19 = vmov %v6729_v22  ;;  %v1161_v21 = vstv %s4611_s29  ;;  %s4863_s29 = sld [smem:[#allocation9 + $0x7]] }
 0x1ba   : > { %v878_v26 = vadd.f32 %v6731_v19, %v837_v42  ;;  %v4684_v22 = vmul.f32 %v4229_v62, %v1251_v25  ;;  %v851_v50 = vadd.f32 %v4401_v12, %v809_v51  ;;  %v850_v55 = vadd.f32 %v4405_v49, %v808_v27  ;;  %v6736_v27 = vld [vmem:[#allocation23_spill] sm:$0xff]  ;;  %v6737_v19 = vld [vmem:[#allocation24_spill] sm:$0xff] }
 0x1bb   : > { %v877_v52 = vadd.f32 %v874_v47, %v836_v40  ;;  %v4693_v8 = vmul.f32 %v4236_v7, %v1264_v6  ;;  %v780_v10 = vadd.f32 %v778_v24, %v762_v0  ;;  %v865_v31 = vadd.f32 %v4409_v46, %v823_v60  ;;  %v6735_v0 = vld [vmem:[#allocation22_spill] sm:$0xff] }
 0x1bc   : > { %v4677_v15 = vpop.permute.xlu1 %1300  ;;  %v4686_v11 = vpop.permute.xlu0 %1298  ;;  %v921_v3 = vadd.f32 %v4416_v9, %v878_v26  ;;  %v4700_v57 = vmul.f32 %v4229_v62, %v1264_v6  ;;  %v4704_v49 = vmul.f32 %v4236_v7, %v1155_v56  ;;  %v4709_v47 = vmul.f32 %v4229_v62, %v1161_v21 }
 0x1bd   : > { %v920_v12 = vadd.f32 %v4419_v45, %v877_v52  ;;  %v1256_v38 = vrot.slane %v4675_v63, 1  ;;  %v822_v46 = vadd.f32 %v4387_v5, %v780_v10  ;;  %v1257_v41 = vrot.slane %v4684_v22, 1 }
 0x1be   : > { %v972_v9 = vadd.f32 %v6732_v33, %v921_v3  ;;  %v1277_v45 = vstv %s4654_s15  ;;  %v6733_v42 = vrot.slane %v4545_v18, 1  ;;  %v890_v25 = vadd.f32 %v887_v1, %v850_v55  ;;  %v6738_v55 = vld [vmem:[#allocation25_spill] sm:$0xff]  ;;  %s4865_s15 = sld [smem:[#allocation9 + $0x22]] }
 0x1bf   : > { %v971_v36 = vadd.f32 %v6734_v32, %v920_v12  ;;  %v1392_v40 = vstv %s4662_s19  ;;  %v864_v13 = vadd.f32 %v6735_v0, %v822_v46  ;;  %v904_v5 = vadd.f32 %v899_v35, %v865_v31  ;;  %v6739_v3 = vld [vmem:[#allocation29_spill] sm:$0xff]  ;;  %v6740_v46 = vld [vmem:[#allocation30_spill] sm:$0xff]  ;;  %s4871_s19 = sld [smem:[#allocation9 + $0x3d]] }
 0x1c0   : > { %v4712_v24 = vpop.permute.xlu1 %1317  ;;  %v4717_v58 = vpop.permute.xlu0 %1315  ;;  %v891_v56 = vadd.f32 %v6733_v42, %v851_v50  ;;  %v1269_v6 = vrot.slane %v4693_v8, 1  ;;  %v1270_v51 = vrot.slane %v4700_v57, 1  ;;  %v937_v18 = vadd.f32 %v6737_v19, %v890_v25  ;;  %v6741_v25 = vld [vmem:[#allocation31_spill] sm:$0xff]  ;;  %v6742_v0 = vld [vmem:[#allocation33_spill] sm:$0xff]  ;;  %v6756_v8 = vld [vmem:[#allocation38_spill] sm:$0xff] }
 0x1c1   : > { %v4732_v1 = vmul.f32 %v4236_v7, %v1277_v45  ;;  %v4735_v26 = vmul.f32 %v4229_v62, %v1277_v45  ;;  %v955_v54 = vadd.f32 %v6738_v55, %v904_v5  ;;  %v1019_v35 = vadd.f32 %v1014_v44, %v972_v9  ;;  %v6743_v44 = vld [vmem:[#allocation34_spill] sm:$0xff] }
 0x1c2   : > { %v938_v60 = vadd.f32 %v6736_v27, %v891_v56  ;;  %v1393_v10 = vmul.f32 %v4236_v7, %v1392_v40  ;;  %v1405_v31 = vstv %s4688_s24  ;;  %v988_v33 = vadd.f32 %v6740_v46, %v937_v18  ;;  %s4877_s24 = sld [smem:[#allocation9 + $0x8]] }
 0x1c3   : > { %v1018_v42 = vadd.f32 %v4633_v53, %v971_v36  ;;  %v1418_v45 = vstv %s4695_s8  ;;  %v903_v56 = vadd.f32 %v4626_v14, %v864_v13  ;;  %v1006_v32 = vadd.f32 %v6741_v25, %v955_v54  ;;  %v6744_v36 = vld [vmem:[#allocation26_spill] sm:$0xff]  ;;  %v6745_v13 = vld [vmem:[#allocation39_spill] sm:$0xff]  ;;  %s4879_s8 = sld [smem:[#allocation9 + $0x23]] }
 0x1c4   : > { %v4737_v50 = vpop.permute.xlu1 %1334  ;;  %v4742_v52 = vpop.permute.xlu0 %1332  ;;  %v989_v12 = vadd.f32 %v6739_v3, %v938_v60  ;;  %v1062_v5 = vadd.f32 %v6742_v0, %v1019_v35  ;;  %v4754_v4 = vmul.f32 %v4229_v62, %v1392_v40  ;;  %v1282_v27 = vrot.slane %v4732_v1, 1  ;;  %v6746_v3 = vld [vmem:[#allocation40_spill] sm:$0xff] }
 0x1c5   : > { %v1061_v9 = vadd.f32 %v6743_v44, %v1018_v42  ;;  %v1406_v60 = vmul.f32 %v4236_v7, %v1405_v31  ;;  %v4762_v53 = vmul.f32 %v4229_v62, %v1405_v31  ;;  %v954_v14 = vadd.f32 %v6744_v36, %v903_v56  ;;  %v6747_v42 = vld [vmem:[#allocation32_spill] sm:$0xff] }
 0x1c6   : > { %v1113_v18 = vadd.f32 %v6745_v13, %v1062_v5  ;;  %v1419_v40 = vmul.f32 %v4236_v7, %v1418_v45  ;;  %v4770_v54 = vmul.f32 %v4229_v62, %v1418_v45  ;;  %v1032_v1 = vadd.f32 %v1027_v37, %v989_v12 }
 0x1c7   : > { %v1031_v35 = vadd.f32 %v4638_v48, %v988_v33  ;;  %v1112_v46 = vadd.f32 %v6746_v3, %v1061_v9  ;;  %v1283_v31 = vrot.slane %v4735_v26, 1  ;;  %v1005_v56 = vadd.f32 %v6747_v42, %v954_v14  ;;  %v6749_v48 = vld [vmem:[#allocation36_spill] sm:$0xff]  ;;  %v6752_v14 = vld [vmem:[#allocation42_spill] sm:$0xff]  ;;  %v6754_v3 = vld [vmem:[#allocation45_spill] sm:$0xff] }
 0x1c8   : > { %v4758_v19 = vpop.permute.xlu1 %1351  ;;  %v4766_v55 = vpop.permute.xlu0 %1349  ;;  %v1045_v25 = vadd.f32 %v1040_v29, %v1006_v32  ;;  %v1397_v0 = vrot.slane %v1393_v10, 2  ;;  %v1398_v62 = vrot.slane %v4754_v4, 2  ;;  %v1079_v37 = vadd.f32 %v6748_v34, %v1032_v1 }
 0x1c9   : > { %v1078_v12 = vadd.f32 %v6749_v48, %v1031_v35  ;;  %v1410_v45 = vrot.slane %v1406_v60, 2  ;;  %v1411_v5 = vrot.slane %v4762_v53, 2  ;;  %v1153_v10 = vadd.f32 %v4660_v2, %v1113_v18  ;;  %v6751_v60 = vld [vmem:[#allocation41_spill] sm:$0xff]  ;;  %v6753_v18 = vld [vmem:[#allocation43_spill] sm:$0xff] }
 0x1ca   : > { %v1096_v29 = vadd.f32 %v6750_v20, %v1045_v25  ;;  %v1423_v44 = vrot.slane %v1419_v40, 2  ;;  %v1424_v9 = vrot.slane %v4770_v54, 2  ;;  %v1130_v36 = vadd.f32 %v6751_v60, %v1079_v37 }
 0x1cb   : > { %v1129_v13 = vadd.f32 %v6752_v14, %v1078_v12  ;;  %v1152_v1 = vadd.f32 %v4666_v16, %v1112_v46  ;;  %v1162_v35 = vmul.f32 %v4236_v7, %v1161_v21  ;;  %v1044_v2 = vadd.f32 %v4643_v23, %v1005_v56  ;;  %v6755_v16 = vld [vmem:[#allocation46_spill] sm:$0xff]  ;;  %v6757_v12 = vld [vmem:[#allocation44_spill] sm:$0xff] }
 0x1cc   : > { %v4789_v33 = vpop.permute.xlu1 %1368  ;;  %v4798_v32 = vpop.permute.xlu0 %1366  ;;  %v1147_v40 = vadd.f32 %v6753_v18, %v1096_v29  ;;  %v1179_v42 = vadd.f32 %v6754_v3, %v1153_v10  ;;  %v1258_v25 = vsel %vm486_vm0, %v1256_v38, %v1257_v41  ;;  %v4831_v23 = vsel %vm486_vm0, %v1269_v6, %v1270_v51 }
 0x1cd   : > { %v1178_v7 = vadd.f32 %v6755_v16, %v1152_v1  ;;  %v4836_v63 = vsel %vm486_vm0, %v1282_v27, %v1283_v31  ;;  %v4843_v38 = vsel %vm628_vm1, %v1397_v0, %v1398_v62  ;;  %v1095_v6 = vadd.f32 %v6756_v8, %v1044_v2 }
 0x1ce   : > { %v1221_v46 = vadd.f32 %v4579_v28, %v1179_v42  ;;  %v4856_v27 = vsel %vm628_vm1, %v1410_v45, %v1411_v5  ;;  %v4861_v0 = vsel %vm628_vm1, %v1423_v44, %v1424_v9  ;;  %v1159_v28 = vadd.f32 %v4672_v17, %v1130_v36  ;;  %v6758_v17 = vld [vmem:[#allocation47_spill] sm:$0xff] }
 0x1cf   : > { %v1158_v34 = vadd.f32 %v4704_v49, %v1129_v13  ;;  %v1220_v37 = vadd.f32 %v4586_v30, %v1178_v7  ;;  %v1557_v48 = vstv %s4777_s13  ;;  %v1146_v45 = vadd.f32 %v6757_v12, %v1095_v6  ;;  %v6759_v49 = vld [vmem:[#allocation48_spill] sm:$0xff]  ;;  %s5105_s13 = sld [smem:[#allocation9 + $0x17]] }
 0x1d0   : > { %v4838_v21 = vpop.permute.xlu1 %1385  ;;  %v4851_v56 = vpop.permute.xlu0 %1383  ;;  %v1165_v20 = vadd.f32 %v4709_v47, %v1147_v40  ;;  %v1571_v29 = vstv %s4783_s14  ;;  %v1585_v10 = vstv %s4785_s16  ;;  %v1193_v44 = vadd.f32 %v6758_v17, %v1159_v28  ;;  %v6760_v47 = vld [vmem:[#allocation49_spill] sm:$0xff]  ;;  %s5107_s14 = sld [smem:[#allocation9 + $0x1e]]  ;;  %s5117_s16 = sld [smem:[#allocation9 + $0x19]] }
 0x1d1   : > { %v1192_v60 = vadd.f32 %v6759_v49, %v1158_v34  ;;  %v1599_v36 = vstv %s4792_s20  ;;  %v1613_v14 = vstv %s4794_s23  ;;  %v1262_v1 = vadd.f32 %v1257_v41, %v1221_v46  ;;  %s6763_s20 = smov 126   ;;  %s5188_s23 = sld [smem:[#allocation9 + $0x2c]] }
 0x1d2   : > { %v1207_v13 = vadd.f32 %v6760_v47, %v1165_v20  ;;  %v1627_v18 = vstv %s4801_s30  ;;  %v1680_v40 = vstv %s4803_s6  ;;  %v1235_v3 = vadd.f32 %v4604_v59, %v1193_v44  ;;  %s5190_s6 = sld [smem:[#allocation9 + $0x39]]  ;;  %s5270_s30 = sld [smem:[#allocation9 + $0x47]] }
 0x1d3   : > { %v1234_v42 = vadd.f32 %v4613_v43, %v1192_v60  ;;  %v1261_v16 = vadd.f32 %v1258_v25, %v1220_v37  ;;  %v1697_v7 = vstv %s4811_s12  ;;  %v1164_v22 = vadd.f32 %v1162_v35, %v1146_v45  ;;  %s5203_s12 = sld [smem:[#allocation9 + $0x6]] }
 0x1d4   : > { %v4883_v30 = vpop.permute.xlu1 %1441  ;;  %v1440_v2 = vpop.permute.xlu0 %1439  ;;  %v1249_v41 = vadd.f32 %v4645_v61, %v1207_v13  ;;  %v1305_v8 = vadd.f32 %v4677_v15, %v1262_v1  ;;  %v1714_v6 = vstv %s4821_s10  ;;  %v1731_v43 = vstv %s4823_s21  ;;  %v6761_v61 = vld [vmem:[#allocation50_spill] sm:$0xff]  ;;  %s5214_s10 = sld [smem:[#allocation9 + $0x1a]]  ;;  %s5216_s21 = sld [smem:[#allocation9 + $0x21]] }
 0x1d5   : > { %v1304_v59 = vadd.f32 %v4686_v11, %v1261_v16  ;;  %v1748_v25 = vstv %s4845_s25  ;;  %v1765_v28 = vstv %s4847_s26  ;;  %v1206_v15 = vadd.f32 %v6761_v61, %v1164_v22  ;;  %s5229_s25 = sld [smem:[#allocation9 + $0x44]] }
 0x1d6   : > { %v1356_v35 = vadd.f32 %v4758_v19, %v1305_v8  ;;  %v1821_v37 = vstv %s4863_s29  ;;  %v1838_v12 = vstv %s4865_s15  ;;  %v1275_v11 = vadd.f32 %v1270_v51, %v1235_v3  ;;  %s5231_s26 = sld [smem:[#allocation9 + $0x3c]]  ;;  %s5247_s29 = sld [smem:[#allocation9 + $0x31]] }
 0x1d7   : > { %v1274_v45 = vadd.f32 %v4831_v23, %v1234_v42  ;;  %v1355_v20 = vadd.f32 %v4766_v55, %v1304_v59  ;;  %v1855_v17 = vstv %s4871_s19  ;;  %v1248_v19 = vadd.f32 %v4651_v39, %v1206_v15  ;;  %s5249_s15 = sld [smem:[#allocation9 + $0x46]]  ;;  %s5426_s19 = sld [smem:[#allocation9 + $0x27]] }
 0x1d8   : > { %v1459_v46 = vpop.permute.xlu1 %1458  ;;  %v1457_v34 = vpop.permute.xlu0 %1456  ;;  %v1288_v44 = vadd.f32 %v1283_v31, %v1249_v41  ;;  %v1872_v49 = vstv %s4877_s24  ;;  %v1889_v60 = vstv %s4879_s8  ;;  %v1322_v57 = vadd.f32 %v4712_v24, %v1275_v11  ;;  %s5434_s24 = sld [smem:[#allocation9 + $0x2a]] }
 0x1d9   : > { %v1321_v51 = vadd.f32 %v4717_v58, %v1274_v45  ;;  %v1906_v23 = vstv %s4887_s22  ;;  %v1403_v26 = vadd.f32 %v1398_v62, %v1356_v35  ;;  %v1402_v3 = vadd.f32 %v4843_v38, %v1355_v20  ;;  %s5201_s22 = sld [smem:[#allocation9 + $0x43]]  ;;  %s5573_s8 = sld [smem:[#allocation9 + $0x42]] }
 0x1da   : > { %v1339_v39 = vadd.f32 %v4737_v50, %v1288_v44  ;;  %v1373_v24 = vadd.f32 %v4789_v33, %v1322_v57  ;;  %v2064_v42 = vstv %s4903_s2  ;;  %v1287_v50 = vadd.f32 %v4836_v63, %v1248_v19  ;;  %s5268_s2 = sld [smem:[#allocation9 + $0x32]] }
 0x1db   : > { %v1372_v58 = vadd.f32 %v4798_v32, %v1321_v51  ;;  %v1446_v62 = vadd.f32 %v4883_v30, %v1403_v26  ;;  %v2115_v16 = vstv %s4908_s3  ;;  %v1445_v22 = vadd.f32 %v1440_v2, %v1402_v3  ;;  %s5279_s3 = sld [smem:[#allocation9 + $0x34]] }
 0x1dc   : > { %v4944_v55 = vpop.permute.xlu1 %1475  ;;  %v4951_v31 = vpop.permute.xlu0 %1473  ;;  %v1390_v4 = vadd.f32 %v4838_v21, %v1339_v39  ;;  %v2205_v33 = vstv %s4910_s4  ;;  %v2256_v8 = vstv %s4916_s5  ;;  %v2081_v59 = vstv %s4918_s17  ;;  %s5293_s4 = sld [smem:[#allocation9 + $0x35]]  ;;  %s5295_s5 = sld [smem:[#allocation9 + $0xc]] }
 0x1dd   : > { %v1338_v32 = vadd.f32 %v4742_v52, %v1287_v50  ;;  %v2132_v61 = vstv %s4924_s28  ;;  %v1641_v21 = vstv %s4926_s27  ;;  %v1416_v30 = vadd.f32 %v1411_v5, %v1373_v24  ;;  %s5406_s28 = sld [smem:[#allocation9 + $0x4c]]  ;;  %s5408_s17 = sld [smem:[#allocation9 + $0x4d]] }
 0x1de   : > { %v1415_v2 = vadd.f32 %v4856_v27, %v1372_v58  ;;  %v2222_v35 = vstv %s4933_s18  ;;  %v4982_v11 = vadd.f32 %v1424_v9, %v1390_v4  ;;  %v2448_v5 = vstv %s4940_s7  ;;  %s5391_s7 = sld [smem:[#allocation9 + $0xf]]  ;;  %s5571_s27 = sld [smem:[#allocation9 + $0x50]] }
 0x1df   : > { %v4978_v52 = vadd.f32 %v4851_v56, %v1338_v32  ;;  %v1463_v27 = vadd.f32 %v1459_v46, %v1416_v30  ;;  %s5424_s18 = sld [smem:[#allocation9 + $0x4f]] }
 0x1e0   : > { %v1493_v41 = vpop.permute.xlu1 %1492  ;;  %v1491_v63 = vpop.permute.xlu0 %1490  ;;  %v4988_v45 = vadd.f32 %v1457_v34, %v1415_v2 }
 0x1e1   : > { %v4967_v38 = vadd.f32 %v1493_v41, %v1446_v62  ;;  %v4974_v15 = vadd.f32 %v1491_v63, %v1445_v22 }
 0x1e3   : > { %v1559_v53 = vmul.f32 %v1557_v48, %v4967_v38  ;;  %v1558_v54 = vmul.f32 %v1557_v48, %v4974_v15  ;;  %v1573_v9 = vmul.f32 %v1571_v29, %v4967_v38  ;;  %v1572_v56 = vmul.f32 %v1571_v29, %v4974_v15 }
 0x1e4   : > { %v1510_v20 = vpop.permute.xlu1 %1509  ;;  %v1587_v46 = vmul.f32 %v1585_v10, %v4967_v38  ;;  %v1586_v34 = vmul.f32 %v1585_v10, %v4974_v15  ;;  %v1601_v48 = vmul.f32 %v1599_v36, %v4967_v38  ;;  %v1600_v44 = vmul.f32 %v1599_v36, %v4974_v15 }
 0x1e5   : > { %1564 = vrot.lane.b32.xlu1 %v1559_v53, %s6762_s9  ;;  %v5009_v19 = vadd.f32 %v1510_v20, %v1463_v27  ;;  %1562 = vrot.lane.b32.xlu0 %v1558_v54, %s6762_s9  ;;  %v5018_v29 = vmul.f32 %v1680_v40, %v4967_v38  ;;  %v1681_v57 = vmul.f32 %v1680_v40, %v4974_v15 }
 0x1e6   : > { %v5026_v10 = vmul.f32 %v1697_v7, %v4967_v38  ;;  %v1698_v51 = vmul.f32 %v1697_v7, %v4974_v15  ;;  %v5034_v39 = vmul.f32 %v1714_v6, %v4967_v38  ;;  %v1715_v36 = vmul.f32 %v1714_v6, %v4974_v15 }
 0x1e7   : > { %v1686_v26 = vrot.slane %v5018_v29, 1  ;;  %v1685_v24 = vrot.slane %v1681_v57, 1  ;;  %v5043_v40 = vmul.f32 %v1731_v43, %v4967_v38  ;;  %v1732_v58 = vmul.f32 %v1731_v43, %v4974_v15 }
 0x1e8   : > { %v1615_v7 = vmul.f32 %v1613_v14, %v4967_v38  ;;  %v1703_v6 = vrot.slane %v5026_v10, 1  ;;  %v1702_v3 = vrot.slane %v1698_v51, 1  ;;  %v1720_v50 = vrot.slane %v5034_v39, 1 }
 0x1e9   : > { %1578 = vrot.lane.b32.xlu1 %v1573_v9, %s6762_s9  ;;  %1576 = vrot.lane.b32.xlu0 %v1572_v56, %s6762_s9  ;;  %v1614_v4 = vmul.f32 %v1613_v14, %v4974_v15  ;;  %v5061_v43 = vsel %vm486_vm0, %v1685_v24, %v1686_v26  ;;  %v1719_v62 = vrot.slane %v1715_v36, 1  ;;  %v1737_v22 = vrot.slane %v5043_v40, 1 }
 0x1ea   : > { %v5067_v41 = vsel %vm486_vm0, %v1702_v3, %v1703_v6  ;;  %v1736_v32 = vrot.slane %v1732_v58, 1  ;;  %v5072_v63 = vmul.f32 %v1748_v25, %v4967_v38  ;;  %v1749_v14 = vmul.f32 %v1748_v25, %v4974_v15 }
 0x1eb   : > { %v5080_v30 = vsel %vm486_vm0, %v1719_v62, %v1720_v50  ;;  %v5085_v2 = vmul.f32 %v1765_v28, %v4967_v38  ;;  %v1766_v53 = vmul.f32 %v1765_v28, %v4974_v15  ;;  %v5093_v27 = vmul.f32 %v1821_v37, %v4967_v38  ;;  %v1508_v62 = vpop.permute.xlu0 %1507 }
 0x1ec   : > { %v5099_v25 = vsel %vm486_vm0, %v1736_v32, %v1737_v22  ;;  %v1754_v20 = vrot.slane %v5072_v63, 1  ;;  %v1753_v54 = vrot.slane %v1749_v14, 1  ;;  %v1822_v28 = vmul.f32 %v1821_v37, %v4974_v15 }
 0x1ed   : > { %1592 = vrot.lane.b32.xlu1 %v1587_v46, %s6762_s9  ;;  %1590 = vrot.lane.b32.xlu0 %v1586_v34, %s6762_s9  ;;  %v1771_v9 = vrot.slane %v5085_v2, 1  ;;  %v1770_v56 = vrot.slane %v1766_v53, 1  ;;  %v6611_v46 = vrot.slane %v5093_v27, 2  ;;  %v5115_v57 = vmul.f32 %v1838_v12, %v4967_v38 }
 0x1ee   : > { %v5122_v37 = vsel %vm486_vm0, %v1753_v54, %v1754_v20  ;;  %v1826_v51 = vrot.slane %v1822_v28, 2  ;;  %v1839_v34 = vmul.f32 %v1838_v12, %v4974_v15  ;;  %v5130_v36 = vmul.f32 %v1855_v17, %v4967_v38 }
 0x1ef   : > { %v5135_v24 = vsel %vm486_vm0, %v1770_v56, %v1771_v9  ;;  %v6610_v58 = vrot.slane %v5115_v57, 2  ;;  %v1856_v3 = vmul.f32 %v1855_v17, %v4974_v15  ;;  %v5144_v12 = vmul.f32 %v1872_v49, %v4967_v38  ;;  %v1525_v1 = vpop.permute.xlu0 %1524 }
 0x1f0   : > { %v5150_v32 = vsel %vm628_vm1, %v1826_v51, %v6611_v46  ;;  %v1843_v14 = vrot.slane %v1839_v34, 2  ;;  %v6605_v53 = vrot.slane %v5130_v36, 2  ;;  %v1873_v54 = vmul.f32 %v1872_v49, %v4974_v15 }
 0x1f1   : > { %1606 = vrot.lane.b32.xlu1 %v1601_v48, %s6763_s20  ;;  %1604 = vrot.lane.b32.xlu0 %v1600_v44, %s6763_s20  ;;  %v1860_v17 = vrot.slane %v1856_v3, 2  ;;  %v6604_v28 = vrot.slane %v5144_v12, 2  ;;  %v5161_v56 = vmul.f32 %v1889_v60, %v4967_v38  ;;  %v1890_v48 = vmul.f32 %v1889_v60, %v4974_v15 }
 0x1f2   : > { %v5169_v51 = vsel %vm628_vm1, %v1843_v14, %v6610_v58  ;;  %v1877_v34 = vrot.slane %v1873_v54, 2  ;;  %v5174_v49 = vmul.f32 %v1906_v23, %v4967_v38  ;;  %v1907_v44 = vmul.f32 %v1906_v23, %v4974_v15 }
 0x1f3   : > { %v5180_v3 = vadd.f32 %v1508_v62, %v4988_v45  ;;  %v5185_v60 = vsel %vm628_vm1, %v1860_v17, %v6605_v53  ;;  %v6603_v14 = vrot.slane %v5161_v56, 2  ;;  %v1894_v54 = vrot.slane %v1890_v48, 2 }
 0x1f4   : > { %v1428_v23 = vadd.f32 %v4861_v0, %v4978_v52  ;;  %v5198_v45 = vsel %vm628_vm1, %v1877_v34, %v6604_v28  ;;  %v6602_v62 = vrot.slane %v5174_v49, 2  ;;  %v1911_v17 = vrot.slane %v1907_v44, 2 }
 0x1f5   : > { %1620 = vrot.lane.b32.xlu1 %v1615_v7, %s6763_s20  ;;  %1618 = vrot.lane.b32.xlu0 %v1614_v4, %s6763_s20  ;;  %v5209_v0 = vsel %vm628_vm1, %v1894_v54, %v6603_v14  ;;  %v2499_v52 = vstv %s5105_s13  ;;  %v2589_v7 = vstv %s5117_s16  ;;  %v1480_v34 = vadd.f32 %v4944_v55, %v4982_v11  ;;  %s5591_s13 = sld [smem:[#allocation9 + $0x15]] }
 0x1f6   : > { %v1654_v48 = vstv %s5107_s14  ;;  %v1479_v4 = vadd.f32 %v4951_v31, %v1428_v23  ;;  %v1629_v44 = vmul.f32 %v1627_v18, %v4967_v38  ;;  %v5227_v54 = vsel %vm628_vm1, %v1911_v17, %v6602_v62  ;;  %v1527_v17 = vpop.permute.xlu1 %1526  ;;  %s5609_s14 = sld [smem:[#allocation9 + $0x18]]  ;;  %s5611_s16 = sld [smem:[#allocation9 + $0x45]] }
 0x1f7   : > { %v1628_v55 = vmul.f32 %v1627_v18, %v4974_v15  ;;  %v2065_v31 = vmul.f32 %v2064_v42, %v5180_v3  ;;  %v5242_v11 = vmul.f32 %v2064_v42, %v5009_v19  ;;  %v2116_v23 = vmul.f32 %v2115_v16, %v5180_v3 }
 0x1f8   : > { %v5255_v18 = vmul.f32 %v2115_v16, %v5009_v19  ;;  %v2206_v42 = vmul.f32 %v2205_v33, %v5180_v3  ;;  %v5263_v13 = vmul.f32 %v2205_v33, %v5009_v19  ;;  %v2257_v62 = vmul.f32 %v2256_v8, %v5180_v3 }
 0x1f9   : > { %1634 = vrot.lane.b32.xlu1 %v1629_v44, %s6763_s20  ;;  %1632 = vrot.lane.b32.xlu0 %v1628_v55, %s6763_s20  ;;  %v2069_v44 = vrot.slane %v2065_v31, 1  ;;  %v6609_v16 = vrot.slane %v5242_v11, 1  ;;  %v2120_v47 = vrot.slane %v2116_v23, 1  ;;  %v5277_v14 = vmul.f32 %v2256_v8, %v5009_v19 }
 0x1fa   : > { %v6608_v33 = vrot.slane %v5255_v18, 1  ;;  %v2210_v28 = vrot.slane %v2206_v42, 2  ;;  %v6606_v53 = vrot.slane %v5263_v13, 2  ;;  %v2261_v55 = vrot.slane %v2257_v62, 2 }
 0x1fb   : > { %v5283_v31 = vadd.f32 %v1527_v17, %v1480_v34  ;;  %v5285_v23 = vadd.f32 %v1525_v1, %v1479_v4  ;;  %v5290_v8 = vsel %vm486_vm0, %v2069_v44, %v6609_v16  ;;  %v6607_v42 = vrot.slane %v5277_v14, 2 }
 0x1fc   : > { %v5303_v1 = vsel %vm486_vm0, %v2120_v47, %v6608_v33  ;;  %v5308_v62 = vsel %vm628_vm1, %v2210_v28, %v6606_v53  ;;  %v2273_v34 = vstv %s5188_s23  ;;  %v1667_v4 = vstv %s5190_s6  ;;  %s5622_s23 = sld [smem:[#allocation9 + $0x30]]  ;;  %s5624_s6 = sld [smem:[#allocation9 + $0x33]] }
 0x1fd   : > { %1690 = vrot.lane.b32.xlu1 %v1686_v26, %s6762_s9  ;;  %1688 = vrot.lane.b32.xlu0 %v5061_v43, %s6762_s9  ;;  %v5317_v29 = vsel %vm628_vm1, %v2261_v55, %v6607_v42  ;;  %v2640_v47 = vstv %s5214_s10  ;;  %v2098_v26 = vstv %s5201_s22  ;;  %v5325_v44 = vmul.f32 %v2081_v59, %v5009_v19  ;;  %s5635_s22 = sld [smem:[#allocation9 + $0x4b]]  ;;  %s3361_s10 = sld [smem:[#allocation9 + $0x14]] }
 0x1fe   : > { %v1782_v17 = vstv %s5203_s12  ;;  %v2082_v28 = vmul.f32 %v2081_v59, %v5180_v3  ;;  %v5335_v55 = vmul.f32 %v2448_v5, %v5283_v31  ;;  %v2449_v42 = vmul.f32 %v2448_v5, %v5285_v23  ;;  %s5637_s12 = sld [smem:[#allocation9 + $0x4e]] }
 0x1ff   : > { %v6612_v59 = vrot.slane %v5325_v44, 1  ;;  %v2223_v39 = vmul.f32 %v2222_v35, %v5180_v3  ;;  %v5441_v16 = vmul.f32 %v2273_v34, %v5009_v19 }
 0x200   : > { %v2086_v58 = vrot.slane %v2082_v28, 1  ;;  %v6613_v5 = vrot.slane %v5335_v55, 1  ;;  %v2453_v43 = vrot.slane %v2449_v42, 1  ;;  %v5369_v42 = vmul.f32 %v2499_v52, %v5283_v31 }
 0x201   : > { %1707 = vrot.lane.b32.xlu1 %v1703_v6, %s6762_s9  ;;  %1705 = vrot.lane.b32.xlu0 %v5067_v41, %s6762_s9  ;;  %v5361_v6 = vmul.f32 %v2132_v61, %v5009_v19  ;;  %v2133_v41 = vmul.f32 %v2132_v61, %v5180_v3 }
 0x202   : > { %v5356_v10 = vsel %vm486_vm0, %v2086_v58, %v6612_v59  ;;  %v5374_v28 = vsel %vm486_vm0, %v2453_v43, %v6613_v5  ;;  %v2500_v58 = vmul.f32 %v2499_v52, %v5285_v23  ;;  %v6619_v53 = vrot.slane %v5369_v42, 1 }
 0x203   : > { %v6614_v61 = vrot.slane %v5361_v6, 1  ;;  %v2137_v33 = vrot.slane %v2133_v41, 1  ;;  %v5389_v43 = vmul.f32 %v2222_v35, %v5009_v19  ;;  %v2590_v41 = vmul.f32 %v2589_v7, %v5285_v23 }
 0x204   : > { %v2504_v52 = vrot.slane %v2500_v58, 1  ;;  %v5419_v35 = vmul.f32 %v1641_v21, %v4967_v38  ;;  %v1642_v58 = vmul.f32 %v1641_v21, %v4974_v15 }
 0x205   : > { %1724 = vrot.lane.b32.xlu1 %v1720_v50, %s6762_s9  ;;  %1722 = vrot.lane.b32.xlu0 %v5080_v30, %s6762_s9  ;;  %v5401_v50 = vmul.f32 %v2589_v7, %v5283_v31  ;;  %v5413_v5 = vsel %vm486_vm0, %v2137_v33, %v6614_v61  ;;  %v6618_v30 = vrot.slane %v5389_v43, 2  ;;  %v2227_v33 = vrot.slane %v2223_v39, 2 }
 0x206   : > { %v5431_v7 = vsel %vm486_vm0, %v2504_v52, %v6619_v53  ;;  %v2594_v46 = vrot.slane %v2590_v41, 2  ;;  %v6616_v21 = vrot.slane %v5419_v35, 1  ;;  %v1646_v59 = vrot.slane %v1642_v58, 1 }
 0x207   : > { %v6615_v61 = vrot.slane %v5401_v50, 2  ;;  %v2274_v52 = vmul.f32 %v2273_v34, %v5180_v3  ;;  %v5449_v39 = vsel %vm628_vm1, %v2227_v33, %v6618_v30  ;;  %v1655_v34 = vmul.f32 %v1654_v48, %v4974_v15 }
 0x208   : > { %v6617_v41 = vrot.slane %v5441_v16, 2 }
 0x209   : > { %1741 = vrot.lane.b32.xlu1 %v1737_v22, %s6763_s20  ;;  %1739 = vrot.lane.b32.xlu0 %v5099_v25, %s6763_s20  ;;  %v5454_v40 = vsel %vm628_vm1, %v2594_v46, %v6615_v61  ;;  %v5459_v22 = vmul.f32 %v1654_v48, %v4967_v38  ;;  %v5467_v25 = vsel %vm486_vm0, %v1646_v59, %v6616_v21  ;;  %v2278_v58 = vrot.slane %v2274_v52, 2 }
 0x20a   : > { %v5473_v46 = vmul.f32 %v2640_v47, %v5283_v31  ;;  %v1659_v61 = vrot.slane %v1655_v34, 1  ;;  %v2641_v48 = vmul.f32 %v2640_v47, %v5285_v23  ;;  %v5482_v59 = vmul.f32 %v1667_v4, %v4967_v38 }
 0x20b   : > { %6764 = vst [vmem:[#allocation27_spill] sm:$0xff] %v5459_v22  ;;  %v6620_v33 = vrot.slane %v5459_v22, 1  ;;  %v5490_v52 = vsel %vm628_vm1, %v2278_v58, %v6617_v41  ;;  %v1668_v47 = vmul.f32 %v1667_v4, %v4974_v15  ;;  %v6770_v21 = vstv %s5216_s21  ;;  %s6014_s21 = sld [smem:[#allocation9]] }
 0x20c   : > { %6765 = vst [vmem:[#allocation28_spill] sm:$0xff] %v5482_v59  ;;  %v6621_v34 = vrot.slane %v5473_v46, 2  ;;  %v6622_v58 = vrot.slane %v5482_v59, 1  ;;  %v5553_v4 = vmul.f32 %v6770_v21, %v4967_v38  ;;  %v6772_v41 = vmov %v6770_v21 }
 0x20d   : > { %1758 = vrot.lane.b32.xlu1 %v1754_v20, %s6763_s20  ;;  %1756 = vrot.lane.b32.xlu0 %v5122_v37, %s6763_s20  ;;  %v5502_v63 = vsel %vm486_vm0, %v1659_v61, %v6620_v33  ;;  %v2645_v20 = vrot.slane %v2641_v48, 2  ;;  %v1672_v30 = vrot.slane %v1668_v47, 1  ;;  %v5517_v61 = vmul.f32 %v2098_v26, %v5009_v19 }
 0x20e   : > { %v2099_v48 = vmul.f32 %v2098_v26, %v5180_v3  ;;  %v6767_v26 = vstv %s5247_s29  ;;  %6771 = vst [vmem:[#allocation24_spill] sm:$0xff] %v5553_v4  ;;  %v6773_v21 = vstv %s5229_s25  ;;  %s6020_s25 = sld [smem:[#allocation10]]  ;;  %s6032_s29 = sld [smem:[#allocation10 + $0x1]] }
 0x20f   : > { %v5512_v37 = vsel %vm628_vm1, %v2645_v20, %v6621_v34  ;;  %v5529_v47 = vsel %vm486_vm0, %v1672_v30, %v6622_v58  ;;  %v5534_v20 = vmul.f32 %v1782_v17, %v4967_v38  ;;  %v1783_v34 = vmul.f32 %v1782_v17, %v4974_v15 }
 0x210   : > { %v5542_v33 = vmul.f32 %v6767_v26, %v5283_v31  ;;  %v6625_v2 = vrot.slane %v5517_v61, 1  ;;  %v6769_v30 = vmov %v6767_v26  ;;  %v5569_v22 = vmul.f32 %v6773_v21, %v5009_v19 }
 0x211   : > { %1775 = vrot.lane.b32.xlu1 %v1771_v9, %s6763_s20  ;;  %6766 = vst [vmem:[#allocation22_spill] sm:$0xff] %v5534_v20  ;;  %1773 = vrot.lane.b32.xlu0 %v5135_v24, %s6763_s20  ;;  %v2103_v9 = vrot.slane %v2099_v48, 1  ;;  %v2466_v58 = vmul.f32 %v6769_v30, %v5285_v23  ;;  %v6626_v17 = vrot.slane %v5534_v20, 2  ;;  %v1787_v53 = vrot.slane %v1783_v34, 2 }
 0x212   : > { %6768 = vst [vmem:[#allocation23_spill] sm:$0xff] %v5542_v33  ;;  %v6627_v26 = vrot.slane %v5542_v33, 1  ;;  %v1796_v24 = vmul.f32 %v6772_v41, %v4974_v15  ;;  %v6774_v41 = vrot.slane %v5093_v27, 2  ;;  %v6790_v20 = vstv %s5279_s3  ;;  %s3336_s3 = sld [smem:[#allocation9 + $0x41]] }
 0x213   : > { %v5563_v48 = vsel %vm486_vm0, %v2103_v9, %v6625_v2  ;;  %v2470_v30 = vrot.slane %v2466_v58, 1  ;;  %v5581_v34 = vsel %vm628_vm1, %v1787_v53, %v6626_v17  ;;  %v6775_v9 = vmov %v6773_v21 }
 0x214   : > { %v1800_v58 = vrot.slane %v1796_v24, 2  ;;  %v2150_v2 = vmul.f32 %v6775_v9, %v5180_v3  ;;  %v6776_v21 = vstv %s5231_s26  ;;  %v6780_v9 = vstv %s5268_s2  ;;  %s6022_s26 = sld [smem:[#allocation9 + $0x1b]]  ;;  %s6048_s2 = sld [smem:[#allocation10 + $0x2]] }
 0x215   : > { %1831 = vrot.lane.b32.xlu1 %v6774_v41, %s6762_s9  ;;  %v5589_v59 = vmul.f32 %v6776_v21, %v4967_v38  ;;  %1829 = vrot.lane.b32.xlu0 %v5150_v32, %s6762_s9  ;;  %v5598_v27 = vsel %vm486_vm0, %v2470_v30, %v6627_v26  ;;  %v6779_v24 = vmov %v6776_v21  ;;  %v5607_v21 = vmul.f32 %v6780_v9, %v5283_v31 }
 0x216   : > { %6778 = vst [vmem:[#allocation29_spill] sm:$0xff] %v5598_v27  ;;  %v1809_v41 = vmul.f32 %v6779_v24, %v4974_v15  ;;  %v6782_v32 = vrot.slane %v5553_v4, 2  ;;  %v2154_v30 = vrot.slane %v2150_v2, 1  ;;  %v6783_v24 = vmov %v6780_v9 }
 0x217   : > { %6777 = vst [vmem:[#allocation25_spill] sm:$0xff] %v5589_v59  ;;  %6781 = vst [vmem:[#allocation30_spill] sm:$0xff] %v5607_v21  ;;  %v2517_v53 = vmul.f32 %v6783_v24, %v5285_v23  ;;  %v6784_v4 = vstv %s5249_s15  ;;  %v6792_v26 = vmov %v6790_v20  ;;  %s6034_s15 = sld [smem:[#allocation9 + $0x36]] }
 0x218   : > { %v5616_v17 = vsel %vm628_vm1, %v1800_v58, %v6782_v32  ;;  %v1813_v9 = vrot.slane %v1809_v41, 2  ;;  %v5630_v27 = vmul.f32 %v6784_v4, %v5009_v19  ;;  %v6786_v58 = vmov %v6784_v4 }
 0x219   : > { %v2240_v2 = vmul.f32 %v6786_v58, %v5180_v3  ;;  %v6787_v32 = vrot.slane %v5115_v57, 2  ;;  %v6788_v41 = vrot.slane %v5569_v22, 1  ;;  %v2521_v4 = vrot.slane %v2517_v53, 1  ;;  %1846 = vrot.lane.b32.xlu0 %v5169_v51, %s6762_s9 }
 0x21a   : > { %6785 = vst [vmem:[#allocation31_spill] sm:$0xff] %v5630_v27  ;;  %v5650_v58 = vmul.f32 %v6790_v20, %v5283_v31  ;;  %v2607_v33 = vmul.f32 %v6792_v26, %v5285_v23  ;;  %v6793_v57 = vrot.slane %v5589_v59, 2  ;;  %v6796_v26 = vrot.slane %v5607_v21, 1 }
 0x21b   : > { %1848 = vrot.lane.b32.xlu1 %v6787_v32, %s6762_s9  ;;  %v5645_v24 = vsel %vm486_vm0, %v2154_v30, %v6788_v41  ;;  %v6633_v30 = vrot.slane %v5630_v27, 2  ;;  %v2244_v53 = vrot.slane %v2240_v2, 2  ;;  %v6794_v41 = vstv %s5270_s30  ;;  %s3359_s30 = sld [smem:[#allocation9 + $0x2e]] }
 0x21c   : > { %6789 = vst [vmem:[#allocation33_spill] sm:$0xff] %v5645_v24  ;;  %6791 = vst [vmem:[#allocation34_spill] sm:$0xff] %v5650_v58  ;;  %v5660_v32 = vsel %vm628_vm1, %v1813_v9, %v6793_v57  ;;  %v5666_v20 = vmul.f32 %v6794_v41, %v5009_v19  ;;  %v5671_v51 = vsel %vm486_vm0, %v2521_v4, %v6796_v26  ;;  %v6635_v59 = vrot.slane %v5650_v58, 2 }
 0x21d   : > { %6797 = vst [vmem:[#allocation39_spill] sm:$0xff] %v5671_v51  ;;  %v2611_v9 = vrot.slane %v2607_v33, 2  ;;  %v6798_v57 = vmov %v6794_v41  ;;  %v5680_v2 = vsel %vm628_vm1, %v2244_v53, %v6633_v30  ;;  %v2674_v21 = vstv %s5571_s27  ;;  %1863 = vrot.lane.b32.xlu0 %v5185_v60, %s6762_s9  ;;  %s6274_s27 = sld [smem:[#allocation12 + $0x1]] }
 0x21e   : > { %6795 = vst [vmem:[#allocation26_spill] sm:$0xff] %v5666_v20  ;;  %v2291_v24 = vmul.f32 %v6798_v57, %v5180_v3  ;;  %6799 = vst [vmem:[#allocation40_spill] sm:$0xff] %v5680_v2  ;;  %v6800_v26 = vrot.slane %v5130_v36, 2  ;;  %v6802_v57 = vstv %s5293_s4  ;;  %v2409_v36 = vstv %s5591_s13  ;;  %s3362_s4 = sld [smem:[#allocation9 + $0x2f]]  ;;  %s6278_s13 = sld [smem:[#allocation12 + $0x5]] }
 0x21f   : > { %v5691_v33 = vsel %vm628_vm1, %v2611_v9, %v6635_v59  ;;  %v5696_v30 = vmul.f32 %v6802_v57, %v5283_v31  ;;  %v6804_v41 = vmov %v6802_v57  ;;  %v6805_v9 = vrot.slane %v5666_v20, 2 }
 0x220   : > { %1865 = vrot.lane.b32.xlu1 %v6800_v26, %s6762_s9  ;;  %6801 = vst [vmem:[#allocation32_spill] sm:$0xff] %v5691_v33  ;;  %v2295_v53 = vrot.slane %v2291_v24, 2  ;;  %v2658_v4 = vmul.f32 %v6804_v41, %v5285_v23  ;;  %v6807_v33 = vstv %s5406_s28  ;;  %v6808_v20 = vrot.slane %v5144_v12, 2  ;;  %s6178_s28 = sld [smem:[#allocation9 + $0x3f]] }
 0x221   : > { %6803 = vst [vmem:[#allocation35_spill] sm:$0xff] %v5696_v30  ;;  %v6637_v57 = vrot.slane %v5696_v30, 2  ;;  %v5716_v2 = vmul.f32 %v6807_v33, %v5283_v31  ;;  %1880 = vrot.lane.b32.xlu0 %v5198_v45, %s6763_s20  ;;  %v6816_v60 = vstv %s5424_s18  ;;  %s3363_s18 = sld [smem:[#allocation9 + $0x4a]] }
 0x222   : > { %v5709_v24 = vsel %vm628_vm1, %v2295_v53, %v6805_v9  ;;  %v2662_v59 = vrot.slane %v2658_v4, 2  ;;  %v6810_v4 = vmov %v6807_v33  ;;  %v6811_v33 = vstv %s5295_s5  ;;  %s6154_s5 = sld [smem:[#allocation9 + $0x9]] }
 0x223   : > { %6806 = vst [vmem:[#allocation36_spill] sm:$0xff] %v5709_v24  ;;  %v2483_v9 = vmul.f32 %v6810_v4, %v5285_v23  ;;  %v5735_v41 = vmul.f32 %v6811_v33, %v5009_v19  ;;  %v6812_v26 = vmov %v6811_v33  ;;  %v5754_v33 = vmul.f32 %v6816_v60, %v5283_v31 }
 0x224   : > { %1882 = vrot.lane.b32.xlu1 %v6808_v20, %s6763_s20  ;;  %v5727_v53 = vsel %vm628_vm1, %v2662_v59, %v6637_v57  ;;  %v2026_v58 = vmul.f32 %v6812_v26, %v5180_v3  ;;  %v6813_v20 = vstv %s5408_s17  ;;  %v6818_v45 = vmov %v6816_v60  ;;  %s3360_s17 = sld [smem:[#allocation9 + $0x49]] }
 0x225   : > { %6809 = vst [vmem:[#allocation37_spill] sm:$0xff] %v5727_v53  ;;  %v5746_v59 = vmul.f32 %v6813_v20, %v5283_v31  ;;  %v6815_v57 = vmov %v6813_v20  ;;  %6817 = vst [vmem:[#allocation42_spill] sm:$0xff] %v5754_v33  ;;  %v2487_v53 = vrot.slane %v2483_v9, 1  ;;  %v6640_v26 = vrot.slane %v5735_v41, 1  ;;  %1897 = vrot.lane.b32.xlu0 %v5209_v0, %s6763_s20 }
 0x226   : > { %v2534_v4 = vmul.f32 %v6815_v57, %v5285_v23  ;;  %v2030_v30 = vrot.slane %v2026_v58, 1  ;;  %v2624_v12 = vmul.f32 %v6818_v45, %v5285_v23  ;;  %v6819_v57 = vstv %s5391_s7  ;;  %s6165_s7 = sld [smem:[#allocation9 + $0x24]] }
 0x227   : > { %6814 = vst [vmem:[#allocation41_spill] sm:$0xff] %v5746_v59  ;;  %v6642_v24 = vrot.slane %v5746_v59, 1  ;;  %v2167_v51 = vmul.f32 %v6819_v57, %v5180_v3  ;;  %v6820_v60 = vrot.slane %v5161_v56, 2  ;;  %v6821_v9 = vrot.slane %v5716_v2, 1 }
 0x228   : > { %v2538_v20 = vrot.slane %v2534_v4, 1  ;;  %v5776_v4 = vsel %vm486_vm0, %v2030_v30, %v6640_v26  ;;  %v2628_v45 = vrot.slane %v2624_v12, 2  ;;  %v6823_v27 = vmov %v6819_v57 }
 0x229   : > { %1899 = vrot.lane.b32.xlu1 %v6820_v60, %s6763_s20  ;;  %v5771_v58 = vsel %vm486_vm0, %v2487_v53, %v6821_v9  ;;  %6822 = vst [vmem:[#allocation43_spill] sm:$0xff] %v5776_v4  ;;  %v5781_v57 = vmul.f32 %v6823_v27, %v5009_v19  ;;  %v2171_v53 = vrot.slane %v2167_v51, 2  ;;  %v5791_v60 = vmul.f32 %v2674_v21, %v5283_v31 }
 0x22a   : > { %v5788_v56 = vsel %vm486_vm0, %v2538_v20, %v6642_v24  ;;  %v2675_v30 = vmul.f32 %v2674_v21, %v5285_v23  ;;  %v6827_v12 = vstv %s4889_s11  ;;  %v6829_v0 = vrot.slane %v5754_v33, 2  ;;  %1914 = vrot.lane.b32.xlu0 %v5227_v54, %s6763_s20  ;;  %s5832_s11 = sld [smem:[#allocation9 + $0xb]] }
 0x22b   : > { %6824 = vst [vmem:[#allocation45_spill] sm:$0xff] %v5781_v57  ;;  %6825 = vst [vmem:[#allocation46_spill] sm:$0xff] %v5788_v56  ;;  %v1943_v9 = vmul.f32 %v6827_v12, %v5009_v19  ;;  %v6828_v27 = vmov %v6827_v12  ;;  %v6643_v20 = vrot.slane %v5781_v57, 2  ;;  %v6831_v56 = vstv %s5426_s19  ;;  %s3355_s19 = sld [smem:[#allocation9 + $0x12]] }
 0x22c   : > { %6826 = vst [vmem:[#allocation38_spill] sm:$0xff] %v5791_v60  ;;  %v1942_v26 = vmul.f32 %v6828_v27, %v5180_v3  ;;  %v5803_v59 = vsel %vm628_vm1, %v2628_v45, %v6829_v0  ;;  %v2679_v24 = vrot.slane %v2675_v30, 2  ;;  %v5810_v21 = vmul.f32 %v6831_v56, %v5009_v19 }
 0x22d   : > { %6830 = vst [vmem:[#allocation44_spill] sm:$0xff] %v5803_v59  ;;  %v6833_v12 = vmov %v6831_v56  ;;  %v6834_v27 = vrot.slane %v5174_v49, 2  ;;  %v5821_v45 = vsel %vm628_vm1, %v2171_v53, %v6643_v20  ;;  %v2410_v30 = vmul.f32 %v2409_v36, %v5285_v23 }
 0x22e   : > { %6832 = vst [vmem:[#allocation47_spill] sm:$0xff] %v5810_v21  ;;  %v2039_v4 = vmul.f32 %v6833_v12, %v5180_v3  ;;  %6835 = vst [vmem:[#allocation48_spill] sm:$0xff] %v5821_v45  ;;  %v5825_v56 = vmul.f32 %v2409_v36, %v5283_v31  ;;  %v6837_v0 = vstv %s5434_s24  ;;  %v6838_v49 = vrot.slane %v5791_v60, 2  ;;  %1946 = vrot.lane.b32.xlu0 %v1942_v26, %s6762_s9  ;;  %s3356_s24 = sld [smem:[#allocation9 + $0x2d]] }
 0x22f   : > { %1916 = vrot.lane.b32.xlu1 %v6834_v27, %s6763_s20  ;;  %v2180_v51 = vmul.f32 %v6837_v0, %v5180_v3  ;;  %v6647_v12 = vrot.slane %v5810_v21, 1  ;;  %v6840_v36 = vmov %v6837_v0  ;;  %v2414_v0 = vrot.slane %v2410_v30, 1 }
 0x230   : > { %6836 = vst [vmem:[#allocation49_spill] sm:$0xff] %v5825_v56  ;;  %v5837_v53 = vsel %vm628_vm1, %v2679_v24, %v6838_v49  ;;  %v2043_v27 = vrot.slane %v2039_v4, 1  ;;  %v5843_v20 = vmul.f32 %v6840_v36, %v5009_v19  ;;  %v6842_v45 = vstv %s5609_s14  ;;  %s6280_s14 = sld [smem:[#allocation12 + $0x2]] }
 0x231   : > { %6839 = vst [vmem:[#allocation50_spill] sm:$0xff] %v5837_v53  ;;  %v2184_v54 = vrot.slane %v2180_v51, 2  ;;  %v2551_v60 = vmul.f32 %v6842_v45, %v5285_v23  ;;  %v6843_v24 = vstv %s4896_s0  ;;  %v6844_v36 = vmov %v6842_v45  ;;  %s5913_s0 = sld [smem:[#allocation9 + $0x26]] }
 0x232   : > { %6841 = vst [vmem:[#allocation51_spill] sm:$0xff] %v5843_v20  ;;  %v1957_v49 = vmul.f32 %v6843_v24, %v5009_v19  ;;  %v5855_v4 = vsel %vm486_vm0, %v2043_v27, %v6647_v12  ;;  %v6649_v30 = vrot.slane %v5843_v20, 2  ;;  %v5861_v57 = vmul.f32 %v6844_v36, %v5283_v31 }
 0x233   : > { %1948 = vrot.lane.b32.xlu1 %v1943_v9, %s6762_s9  ;;  %v6846_v51 = vmov %v6843_v24  ;;  %v6847_v24 = vrot.slane %v5825_v56, 1  ;;  %v2555_v27 = vrot.slane %v2551_v60, 2  ;;  %v6849_v12 = vstv %s5573_s8  ;;  %s6276_s8 = sld [smem:[#allocation12 + $0x4]] }
 0x234   : > { %6845 = vst [vmem:[#allocation52_spill] sm:$0xff] %v5861_v57  ;;  %v1956_v45 = vmul.f32 %v6846_v51, %v5180_v3  ;;  %v5875_v53 = vmul.f32 %v6849_v12, %v5009_v19  ;;  %v5881_v9 = vsel %vm628_vm1, %v2184_v54, %v6649_v30  ;;  %v6852_v51 = vmov %v6849_v12 }
 0x235   : > { %v5870_v21 = vsel %vm486_vm0, %v2414_v0, %v6847_v24  ;;  %6851 = vst [vmem:[#allocation55_spill] sm:$0xff] %v5881_v9  ;;  %v2052_v56 = vmul.f32 %v6852_v51, %v5180_v3  ;;  %v6853_v0 = vstv %s5622_s23  ;;  %v6855_v54 = vstv %s5611_s16  ;;  %s6282_s16 = sld [smem:[#allocation12 + $0x7]]  ;;  %s6284_s23 = sld [smem:[#allocation12 + $0x8]] }
 0x236   : > { %6848 = vst [vmem:[#allocation53_spill] sm:$0xff] %v5870_v21  ;;  %6850 = vst [vmem:[#allocation54_spill] sm:$0xff] %v5875_v53  ;;  %v2423_v60 = vmul.f32 %v6853_v0, %v5285_v23  ;;  %v6854_v24 = vmov %v6853_v0  ;;  %v2193_v30 = vmul.f32 %v6855_v54, %v5180_v3  ;;  %v6856_v36 = vmov %v6855_v54  ;;  %1960 = vrot.lane.b32.xlu0 %v1956_v45, %s6762_s9 }
 0x237   : > { %v5894_v26 = vmul.f32 %v6854_v24, %v5283_v31  ;;  %v5902_v9 = vmul.f32 %v6856_v36, %v5009_v19  ;;  %v6858_v51 = vrot.slane %v5861_v57, 2  ;;  %v2056_v0 = vrot.slane %v2052_v56, 1  ;;  %1962 = vrot.lane.b32.xlu1 %v1957_v49, %s6762_s9 }
 0x238   : > { %v2427_v21 = vrot.slane %v2423_v60, 1  ;;  %v6860_v12 = vstv %s5624_s6  ;;  %v2197_v24 = vrot.slane %v2193_v30, 2  ;;  %v1983_v49 = vstv %s5832_s11  ;;  %s6287_s6 = sld [smem:[#allocation12 + $0x3]]  ;;  %s6368_s11 = sld [smem:[#allocation12 + $0xa]] }
 0x239   : > { %6857 = vst [vmem:[#allocation56_spill] sm:$0xff] %v5902_v9  ;;  %v5907_v20 = vsel %vm628_vm1, %v2555_v27, %v6858_v51  ;;  %v2564_v59 = vmul.f32 %v6860_v12, %v5285_v23  ;;  %v6861_v56 = vmov %v6860_v12  ;;  %v6862_v12 = vstv %s4898_s1 }
 0x23a   : > { %6859 = vst [vmem:[#allocation57_spill] sm:$0xff] %v5907_v20  ;;  %v5920_v60 = vmul.f32 %v6861_v56, %v5283_v31  ;;  %v1971_v54 = vmul.f32 %v6862_v12, %v5009_v19  ;;  %v6863_v51 = vrot.slane %v5875_v53, 1  ;;  %v6864_v30 = vrot.slane %v5894_v26, 1 }
 0x23b   : > { %v2568_v36 = vrot.slane %v2564_v59, 2  ;;  %v6865_v56 = vrot.slane %v5902_v9, 2  ;;  %v6867_v12 = vstv %s5635_s22  ;;  %v6868_v53 = vstv %s4898_s1  ;;  %s3358_s1 = sld [smem:[#allocation9 + $0x13]]  ;;  %s6290_s22 = sld [smem:[#allocation12 + $0x6]] }
 0x23c   : > { %v5930_v20 = vsel %vm486_vm0, %v2056_v0, %v6863_v51  ;;  %v5935_v27 = vsel %vm486_vm0, %v2427_v21, %v6864_v30  ;;  %v2569_v45 = vrot.slane %v5920_v60, 2  ;;  %v2436_v33 = vmul.f32 %v6867_v12, %v5285_v23  ;;  %1976 = vrot.lane.b32.xlu1 %v1971_v54, %s6762_s9 }
 0x23d   : > { %v5940_v57 = vsel %vm628_vm1, %v2197_v24, %v6865_v56  ;;  %v1970_v0 = vmul.f32 %v6868_v53, %v5180_v3  ;;  %v6869_v59 = vmov %v6867_v12  ;;  %v6870_v21 = vstv %s5637_s12  ;;  %s3357_s12 = sld [smem:[#allocation9 + $0x48]] }
 0x23e   : > { %6866 = vst [vmem:[#allocation58_spill] sm:$0xff] %v5940_v57  ;;  %v5952_v51 = vmul.f32 %v6869_v59, %v5283_v31  ;;  %v2577_v30 = vmul.f32 %v6870_v21, %v5285_v23  ;;  %v6871_v9 = vmov %v6870_v21  ;;  %v5966_v56 = vsel %vm628_vm1, %v2568_v36, %v2569_v45 }
 0x23f   : > { %v5960_v24 = vmul.f32 %v6871_v9, %v5283_v31  ;;  %v2440_v53 = vrot.slane %v2436_v33, 1  ;;  %1974 = vrot.lane.b32.xlu0 %v1970_v0, %s6762_s9  ;;  %v1985_v21 = vmul.f32 %v1983_v49, %v5009_v19  ;;  %v1984_v9 = vmul.f32 %v1983_v49, %v5180_v3 }
 0x240   : > { %v6656_v12 = vrot.slane %v5952_v51, 1  ;;  %v2581_v59 = vrot.slane %v2577_v30, 2  ;;  %v1997_v36 = vstv %s5913_s0  ;;  %v6872_v49 = vrot.slane %v5242_v11, 1  ;;  %s6370_s0 = sld [smem:[#allocation12 + $0xd]] }
 0x241   : > { %v6655_v57 = vrot.slane %v5960_v24, 2  ;;  %1990 = vrot.lane.b32.xlu1 %v1985_v21, %s6763_s20  ;;  %v1998_v0 = vmul.f32 %v1997_v36, %v5180_v3  ;;  %v6873_v30 = vrot.slane %v5255_v18, 1  ;;  %v6875_v11 = vrot.slane %v5277_v14, 2 }
 0x242   : > { %v5976_v54 = vsel %vm486_vm0, %v2440_v53, %v6656_v12  ;;  %v2325_v53 = vstv %s3358_s1  ;;  %v1999_v18 = vmul.f32 %v1997_v36, %v5009_v19  ;;  %v1539_v36 = vstv %s6014_s21  ;;  %s6372_s1 = sld [smem:[#allocation12 + $0xe]]  ;;  %s6376_s21 = sld [smem:[#allocation12 + $0x10]] }
 0x243   : > { %v5981_v33 = vsel %vm628_vm1, %v2581_v59, %v6655_v57  ;;  %1988 = vrot.lane.b32.xlu0 %v1984_v9, %s6763_s20  ;;  %v2367_v59 = vstv %s3361_s10  ;;  %v6876_v9 = vrot.slane %v5325_v44, 1  ;;  %v6877_v44 = vrot.slane %v5335_v55, 1  ;;  %s6374_s10 = sld [smem:[#allocation12 + $0xb]] }
 0x244   : > { %v6878_v55 = vrot.slane %v5361_v6, 1  ;;  %v6879_v6 = vrot.slane %v5369_v42, 1 }
 0x245   : > { %2072 = vrot.lane.b32.xlu1 %v5290_v8, %s6762_s9  ;;  %v6874_v8 = vrot.slane %v5263_v13, 2  ;;  %v2369_v13 = vmul.f32 %v2367_v59, %v5283_v31 }
 0x247   : > { %2002 = vrot.lane.b32.xlu0 %v1998_v0, %s6763_s20 }
 0x249   : > { %2123 = vrot.lane.b32.xlu1 %v5303_v1, %s6763_s20  ;;  %v2326_v1 = vmul.f32 %v2325_v53, %v5285_v23 }
 0x24b   : > { %2074 = vrot.lane.b32.xlu0 %v6872_v49, %s6762_s9 }
 0x24d   : > { %2213 = vrot.lane.b32.xlu1 %v5308_v62, %s6762_s9  ;;  %v2327_v62 = vmul.f32 %v2325_v53, %v5283_v31  ;;  %v1533_v53 = vstv %s6020_s25  ;;  %s6378_s25 = sld [smem:[#allocation12 + $0x11]] }
 0x24f   : > { %2125 = vrot.lane.b32.xlu0 %v6873_v30, %s6763_s20  ;;  %v1540_v30 = vmul.f32 %v1539_v36, %v4974_v15 }
 0x251   : > { %2264 = vrot.lane.b32.xlu1 %v5317_v29, %s6763_s20  ;;  %v2368_v29 = vmul.f32 %v2367_v59, %v5285_v23  ;;  %v1551_v59 = vstv %s6034_s15  ;;  %s6438_s15 = sld [smem:[#allocation12 + $0x13]] }
 0x253   : > { %2215 = vrot.lane.b32.xlu0 %v6874_v8, %s6762_s9 }
 0x255   : > { %2330 = vrot.lane.b32.xlu1 %v2326_v1, %s6762_s9 }
 0x257   : > { %2266 = vrot.lane.b32.xlu0 %v6875_v11, %s6763_s20  ;;  %v6024_v14 = vpop.permute.xlu1 %1564  ;;  %v1563_v21 = vpop.permute.xlu0 %1562  ;;  %v1542_v11 = vadd.f32 %v1540_v30, %v1533_v53  ;;  %v1552_v30 = vmul.f32 %v1551_v59, %v4974_v15 }
 0x259   : > { %2004 = vrot.lane.b32.xlu1 %v1999_v18, %s6763_s20 }
 0x25b   : > { %2332 = vrot.lane.b32.xlu0 %v2327_v62, %s6762_s9  ;;  %v6036_v0 = vpop.permute.xlu1 %1578  ;;  %v1577_v49 = vpop.permute.xlu0 %1576  ;;  %v1535_v62 = vstv %s6032_s29  ;;  %s6382_s29 = sld [smem:[#allocation12 + $0xf]] }
 0x25d   : > { %2374 = vrot.lane.b32.xlu1 %v2369_v13, %s6763_s20 }
 0x25f   : > { %2372 = vrot.lane.b32.xlu0 %v2368_v29, %s6763_s20  ;;  %v6050_v8 = vpop.permute.xlu1 %1592  ;;  %v1591_v1 = vpop.permute.xlu0 %1590 }
 0x261   : > { %2091 = vrot.lane.b32.xlu1 %v6876_v9, %s6762_s9 }
 0x263   : > { %2089 = vrot.lane.b32.xlu0 %v5356_v10, %s6762_s9  ;;  %v1545_v10 = vstv %s6022_s26  ;;  %v6064_v13 = vpop.permute.xlu1 %1606  ;;  %v1605_v29 = vpop.permute.xlu0 %1604  ;;  %s6380_s26 = sld [smem:[#allocation12 + $0xc]] }
 0x264   : > { %v1546_v18 = vmul.f32 %v1545_v10, %v4974_v15  ;;  %v6880_v15 = vrot.slane %v5389_v43, 2 }
 0x265   : > { %2458 = vrot.lane.b32.xlu1 %v6877_v44, %s6762_s9 }
 0x266   : > { %v1548_v9 = vadd.f32 %v1546_v18, %v1535_v62 }
 0x267   : > { %2456 = vrot.lane.b32.xlu0 %v5374_v28, %s6762_s9  ;;  %v1568_v28 = vadd.f32 %v1563_v21, %v1542_v11  ;;  %v1619_v11 = vpop.permute.xlu0 %1618 }
 0x268   : > { %v1582_v57 = vadd.f32 %v1577_v49, %v1548_v9 }
 0x269   : > { %2142 = vrot.lane.b32.xlu1 %v6878_v55, %s6763_s20  ;;  %v1610_v44 = vadd.f32 %v1605_v29, %v1568_v28  ;;  %v1537_v55 = vstv %s6048_s2  ;;  %s6445_s2 = sld [smem:[#allocation12 + $0x16]] }
 0x26a   : > { %v1554_v18 = vadd.f32 %v1552_v30, %v1537_v55  ;;  %v1624_v12 = vadd.f32 %v1619_v11, %v1582_v57  ;;  %v2011_v30 = vstv %s3336_s3  ;;  %s6450_s3 = sld [smem:[#allocation12 + $0x14]] }
 0x26b   : > { %2140 = vrot.lane.b32.xlu0 %v5413_v5, %s6763_s20  ;;  %v6077_v5 = vpop.permute.xlu1 %1620  ;;  %v1651_v21 = vadd.f32 %v5467_v25, %v1610_v44  ;;  %v1633_v49 = vpop.permute.xlu0 %1632  ;;  %v6881_v25 = vrot.slane %v5401_v50, 2 }
 0x26c   : > { %v1596_v42 = vadd.f32 %v1591_v1, %v1554_v18  ;;  %v2012_v18 = vmul.f32 %v2011_v30, %v5180_v3 }
 0x26d   : > { %2509 = vrot.lane.b32.xlu1 %v6879_v6, %s6763_s20  ;;  %v2013_v6 = vmul.f32 %v2011_v30, %v5009_v19 }
 0x26e   : > { %v1638_v29 = vadd.f32 %v1633_v49, %v1596_v42 }
 0x26f   : > { %2507 = vrot.lane.b32.xlu0 %v5431_v7, %s6763_s20  ;;  %v6087_v28 = vpop.permute.xlu1 %1634  ;;  %v1664_v7 = vadd.f32 %v5502_v63, %v1624_v12  ;;  %v1689_v9 = vpop.permute.xlu0 %1688  ;;  %v2339_v12 = vstv %s3359_s30  ;;  %s6447_s30 = sld [smem:[#allocation12 + $0x17]] }
 0x270   : > { %v1677_v57 = vadd.f32 %v5529_v47, %v1638_v29  ;;  %v1694_v44 = vadd.f32 %v1689_v9, %v1651_v21 }
 0x271   : > { %2232 = vrot.lane.b32.xlu1 %v6880_v15, %s6762_s9  ;;  %v2381_v15 = vstv %s3362_s4  ;;  %s6453_s4 = sld [smem:[#allocation12 + $0x19]] }
 0x272   : > { %v2383_v21 = vmul.f32 %v2381_v15, %v5283_v31 }
 0x273   : > { %2230 = vrot.lane.b32.xlu0 %v5449_v39, %s6762_s9  ;;  %v1691_v43 = vpop.permute.xlu1 %1690  ;;  %v6882_v39 = vrot.slane %v5441_v16, 2  ;;  %v1706_v50 = vpop.permute.xlu0 %1705  ;;  %v2341_v16 = vmul.f32 %v2339_v12, %v5283_v31 }
 0x274   : > { %v1711_v49 = vadd.f32 %v1706_v50, %v1664_v7 }
 0x275   : > { %2599 = vrot.lane.b32.xlu1 %v6881_v25, %s6762_s9 }
 0x277   : > { %2597 = vrot.lane.b32.xlu0 %v5454_v40, %s6762_s9  ;;  %v6101_v63 = vpop.permute.xlu1 %1707  ;;  %v6883_v40 = vrot.slane %v5473_v46, 2  ;;  %v1723_v1 = vpop.permute.xlu0 %1722 }
 0x278   : > { %v1728_v50 = vadd.f32 %v1723_v1, %v1677_v57 }
 0x279   : > { %2283 = vrot.lane.b32.xlu1 %v6882_v39, %s6763_s20 }
 0x27b   : > { %2281 = vrot.lane.b32.xlu0 %v5490_v52, %s6763_s20  ;;  %v6108_v47 = vpop.permute.xlu1 %1724  ;;  %v2340_v52 = vmul.f32 %v2339_v12, %v5285_v23  ;;  %v1740_v11 = vpop.permute.xlu0 %1739  ;;  %v2382_v12 = vmul.f32 %v2381_v15, %v5285_v23 }
 0x27c   : > { %v1745_v42 = vadd.f32 %v1740_v11, %v1694_v44  ;;  %v6888_v11 = vld [vmem:[#allocation29_spill] sm:$0xff] }
 0x27d   : > { %2650 = vrot.lane.b32.xlu1 %v6883_v40, %s6763_s20 }
 0x27e   : > { %v1792_v25 = vadd.f32 %v5581_v34, %v1745_v42 }
 0x27f   : > { %2648 = vrot.lane.b32.xlu0 %v5512_v37, %s6763_s20  ;;  %v1742_v46 = vpop.permute.xlu1 %1741  ;;  %v1541_v37 = vmul.f32 %v1539_v36, %v4967_v38  ;;  %v1547_v36 = vmul.f32 %v1545_v10, %v4967_v38  ;;  %v1757_v39 = vpop.permute.xlu0 %1756  ;;  %v1553_v10 = vmul.f32 %v1551_v59, %v4967_v38  ;;  %v6885_v59 = vrot.slane %v5419_v35, 1 }
 0x280   : > { %v1762_v40 = vadd.f32 %v1757_v39, %v1711_v49  ;;  %v6891_v49 = vrot.slane %v5569_v22, 1 }
 0x281   : > { %2346 = vrot.lane.b32.xlu1 %v2341_v16, %s6762_s9  ;;  %v1543_v9 = vadd.f32 %v1541_v37, %v1533_v53  ;;  %v1549_v53 = vadd.f32 %v1547_v36, %v1535_v62  ;;  %v1555_v62 = vadd.f32 %v1553_v10, %v1537_v55  ;;  %v6886_v37 = vld [vmem:[#allocation23_spill] sm:$0xff] }
 0x282   : > { %v1805_v34 = vadd.f32 %v5616_v17, %v1762_v40 }
 0x283   : > { %2344 = vrot.lane.b32.xlu0 %v2340_v52, %s6762_s9  ;;  %v1759_v29 = vpop.permute.xlu1 %1758  ;;  %v1569_v7 = vadd.f32 %v6024_v14, %v1543_v9  ;;  %v1774_v30 = vpop.permute.xlu0 %1773  ;;  %v1583_v14 = vadd.f32 %v6036_v0, %v1549_v53  ;;  %v1597_v0 = vadd.f32 %v6050_v8, %v1555_v62  ;;  %v6893_v9 = vld [vmem:[#allocation28_spill] sm:$0xff]  ;;  %v1923_v53 = vstv %s6154_s5  ;;  %s6455_s5 = sld [smem:[#allocation12 + $0x1a]] }
 0x284   : > { %v1779_v44 = vadd.f32 %v1774_v30, %v1728_v50  ;;  %v6894_v36 = vrot.slane %v6893_v9, 1  ;;  %v6897_v50 = vld [vmem:[#allocation30_spill] sm:$0xff] }
 0x285   : > { %2018 = vrot.lane.b32.xlu1 %v2013_v6, %s6763_s20  ;;  %v1611_v52 = vadd.f32 %v6064_v13, %v1569_v7  ;;  %v6884_v6 = vrot.slane %v5517_v61, 1  ;;  %v1625_v38 = vadd.f32 %v6077_v5, %v1583_v14  ;;  %v6887_v61 = vrot.slane %v6886_v37, 1  ;;  %v6889_v5 = vld [vmem:[#allocation27_spill] sm:$0xff]  ;;  %v6907_v9 = vld [vmem:[#allocation34_spill] sm:$0xff] }
 0x286   : > { %v1818_v17 = vadd.f32 %v5660_v32, %v1779_v44  ;;  %v1639_v55 = vadd.f32 %v6087_v28, %v1597_v0  ;;  %v6890_v35 = vrot.slane %v6889_v5, 1  ;;  %v6898_v22 = vrot.slane %v6897_v50, 1  ;;  %v6905_v5 = vld [vmem:[#allocation25_spill] sm:$0xff] }
 0x287   : > { %2016 = vrot.lane.b32.xlu0 %v2012_v18, %s6763_s20  ;;  %v1776_v16 = vpop.permute.xlu1 %1775  ;;  %v1652_v13 = vadd.f32 %v6885_v59, %v1611_v52  ;;  %v1830_v1 = vpop.permute.xlu0 %1829  ;;  %v6899_v52 = vld [vmem:[#allocation39_spill] sm:$0xff] }
 0x288   : > { %v1665_v18 = vadd.f32 %v6890_v35, %v1625_v38  ;;  %v1678_v28 = vadd.f32 %v6894_v36, %v1639_v55  ;;  %v1835_v30 = vadd.f32 %v1830_v1, %v1792_v25  ;;  %v6904_v25 = vld [vmem:[#allocation40_spill] sm:$0xff]  ;;  %v6906_v35 = vrot.slane %v6905_v5, 2 }
 0x289   : > { %2388 = vrot.lane.b32.xlu1 %v2383_v21, %s6763_s20  ;;  %v6908_v36 = vrot.slane %v6907_v9, 2 }
 0x28a   : > { %v1712_v8 = vadd.f32 %v6101_v63, %v1665_v18  ;;  %v1729_v63 = vadd.f32 %v6108_v47, %v1678_v28  ;;  %v1924_v47 = vmul.f32 %v1923_v53, %v5180_v3  ;;  %v1935_v28 = vstv %s6178_s28  ;;  %s6462_s28 = sld [smem:[#allocation12 + $0x18]] }
 0x28b   : > { %2386 = vrot.lane.b32.xlu0 %v2382_v12, %s6763_s20  ;;  %v1832_v57 = vpop.permute.xlu1 %1831  ;;  %v1847_v42 = vpop.permute.xlu0 %1846  ;;  %v6895_v12 = vld [vmem:[#allocation22_spill] sm:$0xff] }
 0x28c   : > { %v1763_v39 = vadd.f32 %v1759_v29, %v1712_v8  ;;  %v6896_v40 = vrot.slane %v6895_v12, 2  ;;  %v1780_v44 = vadd.f32 %v1776_v16, %v1729_v63  ;;  %v1852_v1 = vadd.f32 %v1847_v42, %v1805_v34  ;;  %v6909_v34 = vld [vmem:[#allocation32_spill] sm:$0xff] }
 0x28d   : > { %2108 = vrot.lane.b32.xlu1 %v6884_v6, %s6762_s9  ;;  %v6900_v6 = vld [vmem:[#allocation24_spill] sm:$0xff] }
 0x28e   : > { %v6901_v14 = vrot.slane %v6900_v6, 2  ;;  %v1819_v18 = vadd.f32 %v6906_v35, %v1780_v44  ;;  %v2353_v6 = vstv %s3360_s17  ;;  %s2692_s17 = sld [smem:[#allocation12]] }
 0x28f   : > { %2106 = vrot.lane.b32.xlu0 %v5563_v48, %s6762_s9  ;;  %v1695_v48 = vadd.f32 %v1691_v43, %v1652_v13  ;;  %v1849_v32 = vpop.permute.xlu1 %1848  ;;  %v6892_v43 = vld [vmem:[#allocation33_spill] sm:$0xff]  ;;  %v1864_v7 = vpop.permute.xlu0 %1863  ;;  %v1925_v13 = vmul.f32 %v1923_v53, %v5009_v19  ;;  %v1937_v53 = vmul.f32 %v1935_v28, %v5009_v19 }
 0x290   : > { %v1806_v62 = vadd.f32 %v6901_v14, %v1763_v39  ;;  %v1869_v12 = vadd.f32 %v1864_v7, %v1818_v17 }
 0x291   : > { %2475 = vrot.lane.b32.xlu1 %v6887_v61, %s6762_s9  ;;  %v1746_v15 = vadd.f32 %v1742_v46, %v1695_v48  ;;  %v6902_v61 = vld [vmem:[#allocation31_spill] sm:$0xff] }
 0x292   : > { %v6903_v0 = vrot.slane %v6902_v61, 2  ;;  %v1853_v48 = vadd.f32 %v1849_v32, %v1806_v62  ;;  %v6915_v62 = vld [vmem:[#allocation37_spill] sm:$0xff] }
 0x293   : > { %2473 = vrot.lane.b32.xlu0 %v6888_v11, %s6762_s9  ;;  %v1866_v21 = vpop.permute.xlu1 %1865  ;;  %v1793_v46 = vadd.f32 %v6896_v40, %v1746_v15  ;;  %v1881_v59 = vpop.permute.xlu0 %1880 }
 0x294   : > { %v1886_v37 = vadd.f32 %v1881_v59, %v1835_v30  ;;  %v1870_v39 = vadd.f32 %v1866_v21, %v1819_v18  ;;  %v1936_v21 = vmul.f32 %v1935_v28, %v5180_v3  ;;  %v6912_v30 = vld [vmem:[#allocation36_spill] sm:$0xff]  ;;  %v6916_v18 = vrot.slane %v5716_v2, 1  ;;  %v6921_v2 = vld [vmem:[#allocation46_spill] sm:$0xff] }
 0x295   : > { %2159 = vrot.lane.b32.xlu1 %v6891_v49, %s6763_s20  ;;  %v1836_v10 = vadd.f32 %v1832_v57, %v1793_v46  ;;  %v1929_v57 = vstv %s6165_s7  ;;  %s6459_s7 = sld [smem:[#allocation12 + $0x15]] }
 0x296   : > { %v1926_v55 = vadd.f32 %v1924_v47, %v1886_v37  ;;  %v1931_v8 = vmul.f32 %v1929_v57, %v5009_v19  ;;  %v1930_v32 = vmul.f32 %v1929_v57, %v5180_v3  ;;  %v6913_v19 = vld [vmem:[#allocation35_spill] sm:$0xff]  ;;  %v2355_v3 = vmul.f32 %v2353_v6, %v5283_v31 }
 0x297   : > { %2157 = vrot.lane.b32.xlu0 %v6892_v43, %s6763_s20  ;;  %v1883_v29 = vpop.permute.xlu1 %1882  ;;  %v1898_v49 = vpop.permute.xlu0 %1897  ;;  %v6914_v14 = vrot.slane %v6913_v19, 2  ;;  %v2395_v37 = vstv %s3363_s18  ;;  %s2690_s18 = sld [smem:[#allocation2]] }
 0x298   : > { %v1887_v38 = vadd.f32 %v1883_v29, %v1836_v10  ;;  %v1903_v43 = vadd.f32 %v1898_v49, %v1852_v1  ;;  %v6910_v10 = vld [vmem:[#allocation26_spill] sm:$0xff]  ;;  %v2396_v57 = vmul.f32 %v2395_v37, %v5285_v23 }
 0x299   : > { %2526 = vrot.lane.b32.xlu1 %v6898_v22, %s6763_s20 }
 0x29a   : > { %v1927_v16 = vadd.f32 %v1925_v13, %v1887_v38  ;;  %v1932_v46 = vadd.f32 %v1930_v32, %v1903_v43  ;;  %v2354_v13 = vmul.f32 %v2353_v6, %v5285_v23  ;;  %v6919_v32 = vld [vmem:[#allocation41_spill] sm:$0xff]  ;;  %v6928_v6 = vld [vmem:[#allocation50_spill] sm:$0xff] }
 0x29b   : > { %2524 = vrot.lane.b32.xlu0 %v6899_v52, %s6763_s20  ;;  %v1900_v11 = vpop.permute.xlu1 %1899  ;;  %v6911_v52 = vrot.slane %v6910_v10, 2  ;;  %v6920_v28 = vrot.slane %v6919_v32, 1 }
 0x29c   : > { %v1904_v15 = vadd.f32 %v1900_v11, %v1853_v48  ;;  %v1915_v22 = vpop.permute.xlu0 %1914 }
 0x29d   : > { %2249 = vrot.lane.b32.xlu1 %v6903_v0, %s6762_s9  ;;  %v1920_v63 = vadd.f32 %v1915_v22, %v1869_v12  ;;  %v2397_v0 = vmul.f32 %v2395_v37, %v5283_v31  ;;  %v6925_v22 = vld [vmem:[#allocation48_spill] sm:$0xff] }
 0x29e   : > { %v6203_v42 = vadd.f32 %v1931_v8, %v1904_v15  ;;  %v6917_v15 = vrot.slane %v5735_v41, 1 }
 0x29f   : > { %2247 = vrot.lane.b32.xlu0 %v6904_v25, %s6762_s9  ;;  %v6214_v7 = vadd.f32 %v1936_v21, %v1920_v63 }
 0x2a0   : > { %v1947_v44 = vpop.permute.xlu0 %1946 }
 0x2a1   : > { %2616 = vrot.lane.b32.xlu1 %v6908_v36, %s6762_s9  ;;  %v1917_v40 = vpop.permute.xlu1 %1916  ;;  %v1952_v25 = vadd.f32 %v1947_v44, %v1926_v55 }
 0x2a2   : > { %v1921_v50 = vadd.f32 %v1917_v40, %v1870_v39  ;;  %v6922_v40 = vld [vmem:[#allocation42_spill] sm:$0xff] }
 0x2a3   : > { %2614 = vrot.lane.b32.xlu0 %v6909_v34, %s6762_s9 }
 0x2a4   : > { %v6212_v29 = vadd.f32 %v1937_v53, %v1921_v50  ;;  %v6924_v50 = vld [vmem:[#allocation44_spill] sm:$0xff] }
 0x2a5   : > { %2300 = vrot.lane.b32.xlu1 %v6911_v52, %s6763_s20  ;;  %v1949_v17 = vpop.permute.xlu1 %1948 }
 0x2a6   : > { %v1953_v48 = vadd.f32 %v1949_v17, %v1927_v16  ;;  %v6918_v16 = vld [vmem:[#allocation43_spill] sm:$0xff] }
 0x2a7   : > { %2298 = vrot.lane.b32.xlu0 %v6912_v30, %s6763_s20  ;;  %v6926_v30 = vld [vmem:[#allocation38_spill] sm:$0xff] }
 0x2a8   : > { %v1961_v59 = vpop.permute.xlu0 %1960  ;;  %v6927_v17 = vrot.slane %v6926_v30, 2 }
 0x2a9   : > { %2667 = vrot.lane.b32.xlu1 %v6914_v14, %s6763_s20  ;;  %v1963_v38 = vpop.permute.xlu1 %1962  ;;  %v1966_v8 = vadd.f32 %v1961_v59, %v1932_v46  ;;  %v6923_v46 = vrot.slane %v6922_v40, 2  ;;  %v6929_v14 = vld [vmem:[#allocation45_spill] sm:$0xff] }
 0x2aa   : > { %v6935_v40 = vld [vmem:[#allocation53_spill] sm:$0xff] }
 0x2ab   : > { %2665 = vrot.lane.b32.xlu0 %v6915_v62, %s6763_s20  ;;  %v6930_v62 = vrot.slane %v6929_v14, 2  ;;  %v6938_v14 = vld [vmem:[#allocation55_spill] sm:$0xff] }
 0x2ad   : > { %2360 = vrot.lane.b32.xlu1 %v2355_v3, %s6762_s9 }
 0x2ae   : > { %v6225_v61 = vpop.permute.xlu1 %1976 }
 0x2af   : > { %2358 = vrot.lane.b32.xlu0 %v2354_v13, %s6762_s9 }
 0x2b1   : > { %v6228_v47 = vpop.permute.xlu0 %1974  ;;  %2402 = vrot.lane.b32.xlu1 %v2397_v0, %s6763_s20 }
 0x2b3   : > { %2400 = vrot.lane.b32.xlu0 %v2396_v57, %s6763_s20  ;;  %v1991_v1 = vpop.permute.xlu1 %1990 }
 0x2b4   : > { %v1995_v11 = vadd.f32 %v1991_v1, %v1953_v48 }
 0x2b5   : > { %v1989_v5 = vpop.permute.xlu0 %1988  ;;  %2492 = vrot.lane.b32.xlu1 %v6916_v18, %s6762_s9 }
 0x2b6   : > { %v1994_v35 = vadd.f32 %v1989_v5, %v1952_v25  ;;  %v2036_v49 = vadd.f32 %v6917_v15, %v1995_v11  ;;  %v1967_v5 = vadd.f32 %v1963_v38, %v6203_v42 }
 0x2b7   : > { %2490 = vrot.lane.b32.xlu0 %v5771_v58, %s6762_s9  ;;  %v2073_v43 = vpop.permute.xlu1 %2072 }
 0x2b8   : > { %v2035_v9 = vadd.f32 %v6918_v16, %v1994_v35 }
 0x2b9   : > { %v2003_v36 = vpop.permute.xlu0 %2002  ;;  %2543 = vrot.lane.b32.xlu1 %v6920_v28, %s6763_s20 }
 0x2ba   : > { %v2008_v55 = vadd.f32 %v2003_v36, %v1966_v8  ;;  %v2078_v39 = vadd.f32 %v2073_v43, %v2035_v9  ;;  %v6931_v43 = vld [vmem:[#allocation47_spill] sm:$0xff] }
 0x2bb   : > { %2541 = vrot.lane.b32.xlu0 %v6921_v2, %s6763_s20  ;;  %v2124_v34 = vpop.permute.xlu1 %2123  ;;  %v6932_v16 = vrot.slane %v6931_v43, 1  ;;  %v6933_v2 = vld [vmem:[#allocation49_spill] sm:$0xff] }
 0x2bc   : > { %v2048_v58 = vadd.f32 %v5855_v4, %v2008_v55  ;;  %v2129_v41 = vadd.f32 %v2124_v34, %v2078_v39  ;;  %v2307_v4 = vstv %s3355_s19  ;;  %v6934_v34 = vrot.slane %v6933_v2, 1  ;;  %s6950_s19 = sld [smem:[#allocation19_spill]] }
 0x2bd   : > { %v2075_v12 = vpop.permute.xlu0 %2074  ;;  %2633 = vrot.lane.b32.xlu1 %v6923_v46, %s6762_s9  ;;  %v2308_v37 = vmul.f32 %v2307_v4, %v5285_v23  ;;  %v2309_v11 = vmul.f32 %v2307_v4, %v5283_v31 }
 0x2be   : > { %v2176_v53 = vadd.f32 %v6925_v22, %v2129_v41  ;;  %v2079_v63 = vadd.f32 %v2075_v12, %v2036_v49 }
 0x2bf   : > { %2631 = vrot.lane.b32.xlu0 %v6924_v50, %s6762_s9  ;;  %v2214_v10 = vpop.permute.xlu1 %2213 }
 0x2c0   : > { %v2219_v44 = vadd.f32 %v2214_v10, %v2176_v53 }
 0x2c1   : > { %v2126_v52 = vpop.permute.xlu0 %2125  ;;  %2684 = vrot.lane.b32.xlu1 %v6927_v17, %s6763_s20  ;;  %v6936_v17 = vld [vmem:[#allocation51_spill] sm:$0xff] }
 0x2c2   : > { %v2130_v21 = vadd.f32 %v2126_v52, %v2079_v63  ;;  %v6937_v4 = vrot.slane %v6936_v17, 2  ;;  %p359_p11 = scmp.lt.s32.totalorder %s6950_s19, 1 }
 0x2c3   : > { %2682 = vrot.lane.b32.xlu0 %v6928_v6, %s6763_s20  ;;  %v2265_v19 = vpop.permute.xlu1 %2264 }
 0x2c4   : > { %v2177_v3 = vadd.f32 %v6930_v62, %v2130_v21  ;;  %v2270_v59 = vadd.f32 %v2265_v19, %v2219_v44  ;;  %s6957_s19 = smov (!%p359_p11, %s6950_s19), 1 }
 0x2c5   : > { %v2216_v13 = vpop.permute.xlu0 %2215 }
 0x2c6   : > { %v2310_v0 = vadd.f32 %v2308_v37, %v2270_v59  ;;  %v2220_v57 = vadd.f32 %v2216_v13, %v2177_v3  ;;  %v6939_v37 = vld [vmem:[#allocation52_spill] sm:$0xff] }
 0x2c7   : > { %v2331_v48 = vpop.permute.xlu1 %2330 }
 0x2c8   : > { %v2336_v36 = vadd.f32 %v2331_v48, %v2310_v0  ;;  %v6940_v0 = vrot.slane %v6939_v37, 2  ;;  %v6941_v48 = vld [vmem:[#allocation57_spill] sm:$0xff] }
 0x2c9   : > { %v2267_v25 = vpop.permute.xlu0 %2266 }
 0x2ca   : > { %v2271_v1 = vadd.f32 %v2267_v25, %v2220_v57 }
 0x2cb   : > { %v2005_v35 = vpop.permute.xlu1 %2004 }
 0x2cc   : > { %v2311_v18 = vadd.f32 %v2309_v11, %v2271_v1  ;;  %v2009_v15 = vadd.f32 %v2005_v35, %v1967_v5  ;;  %v2313_v35 = vstv %s3356_s24  ;;  %s3410_s24 = sshll.u32 %s6957_s19, 4 }
 0x2cd   : > { %v2333_v49 = vpop.permute.xlu0 %2332 }
 0x2ce   : > { %v2337_v8 = vadd.f32 %v2333_v49, %v2311_v18  ;;  %v2049_v9 = vadd.f32 %v6932_v16, %v2009_v15  ;;  %v2315_v16 = vmul.f32 %v2313_v35, %v5283_v31 }
 0x2cf   : > { %v2375_v55 = vpop.permute.xlu1 %2374 }
 0x2d0   : > { %v2379_v32 = vadd.f32 %v2375_v55, %v2337_v8 }
 0x2d1   : > { %v2373_v28 = vpop.permute.xlu0 %2372 }
 0x2d2   : > { %v2378_v39 = vadd.f32 %v2373_v28, %v2336_v36  ;;  %v2420_v41 = vadd.f32 %v6934_v34, %v2379_v32  ;;  %v2314_v36 = vmul.f32 %v2313_v35, %v5285_v23  ;;  %v2699_v28 = vstv %s6274_s27 }
 0x2d3   : > { %v2092_v12 = vpop.permute.xlu1 %2091 }
 0x2d4   : > { %v2419_v46 = vadd.f32 %v6935_v40, %v2378_v39  ;;  %v2096_v22 = vadd.f32 %v2092_v12, %v2049_v9  ;;  %v2757_v12 = vstv %s6278_s13  ;;  %s6951_s13 = sld [smem:[#allocation65_spill]] }
 0x2d5   : > { %v2090_v42 = vpop.permute.xlu0 %2089 }
 0x2d6   : > { %v2095_v53 = vadd.f32 %v2090_v42, %v2048_v58 }
 0x2d7   : > { %v2459_v38 = vpop.permute.xlu1 %2458 }
 0x2d8   : > { %v2463_v30 = vadd.f32 %v2459_v38, %v2420_v41  ;;  %v2740_v41 = vstv %s6276_s8  ;;  %v2713_v38 = vstv %s6280_s14 }
 0x2d9   : > { %v2457_v50 = vpop.permute.xlu0 %2456 }
 0x2da   : > { %v2462_v6 = vadd.f32 %v2457_v50, %v2419_v46  ;;  %v2787_v50 = vstv %s6282_s16  ;;  %s363_s14 = scalar_lea.vmem %s6951_s13, %s3410_s24 }
 0x2db   : > { %v2143_v63 = vpop.permute.xlu1 %2142 }
 0x2dc   : > { %v2147_v10 = vadd.f32 %v2143_v63, %v2096_v22  ;;  %v2804_v22 = vstv %s6284_s23 }
 0x2dd   : > { %v2141_v52 = vpop.permute.xlu0 %2140 }
 0x2de   : > { %v2146_v21 = vadd.f32 %v2141_v52, %v2095_v53  ;;  %v2190_v44 = vadd.f32 %v6937_v4, %v2147_v10  ;;  %v1981_v53 = vadd.f32 %v6225_v61, %v6212_v29 }
 0x2df   : > { %v2510_v19 = vpop.permute.xlu1 %2509 }
 0x2e0   : > { %v2189_v62 = vadd.f32 %v6938_v14, %v2146_v21  ;;  %v2514_v3 = vadd.f32 %v2510_v19, %v2463_v30  ;;  %v1980_v21 = vadd.f32 %v6228_v47, %v6214_v7  ;;  %v2727_v14 = vstv %s6287_s6 }
 0x2e1   : > { %v2508_v59 = vpop.permute.xlu0 %2507  ;;  %v2774_v47 = vstv %s6290_s22 }
 0x2e2   : > { %v2513_v13 = vadd.f32 %v2508_v59, %v2462_v6  ;;  %v2561_v57 = vadd.f32 %v6940_v0, %v2514_v3 }
 0x2e3   : > { %v2233_v58 = vpop.permute.xlu1 %2232 }
 0x2e4   : > { %v2560_v25 = vadd.f32 %v6941_v48, %v2513_v13  ;;  %v2237_v18 = vadd.f32 %v2233_v58, %v2190_v44 }
 0x2e5   : > { %v2231_v1 = vpop.permute.xlu0 %2230 }
 0x2e6   : > { %v2236_v15 = vadd.f32 %v2231_v1, %v2189_v62 }
 0x2e7   : > { %v2600_v11 = vpop.permute.xlu1 %2599 }
 0x2e8   : > { %v2604_v55 = vadd.f32 %v2600_v11, %v2561_v57 }
 0x2e9   : > { %v2598_v5 = vpop.permute.xlu0 %2597 }
 0x2ea   : > { %v2603_v39 = vadd.f32 %v2598_v5, %v2560_v25 }
 0x2eb   : > { %v2284_v49 = vpop.permute.xlu1 %2283 }
 0x2ec   : > { %v2288_v8 = vadd.f32 %v2284_v49, %v2237_v18 }
 0x2ed   : > { %v2282_v43 = vpop.permute.xlu0 %2281 }
 0x2ee   : > { %v2287_v9 = vadd.f32 %v2282_v43, %v2236_v15  ;;  %v2317_v32 = vadd.f32 %v2315_v16, %v2288_v8  ;;  %v6942_v16 = vld [vmem:[#allocation54_spill] sm:$0xff] }
 0x2ef   : > { %v2651_v2 = vpop.permute.xlu1 %2650 }
 0x2f0   : > { %v2316_v34 = vadd.f32 %v2314_v36, %v2287_v9  ;;  %v6295_v40 = vadd.f32 %v2651_v2, %v2604_v55  ;;  %v6943_v9 = vrot.slane %v6942_v16, 1 }
 0x2f1   : > { %v2649_v46 = vpop.permute.xlu0 %2648 }
 0x2f2   : > { %v6297_v42 = vadd.f32 %v2649_v46, %v2603_v39  ;;  %v2701_v63 = vmul.f32 %v2699_v28, %v6295_v40  ;;  %v2742_v10 = vmul.f32 %v2740_v41, %v6295_v40  ;;  %v2759_v52 = vmul.f32 %v2757_v12, %v6295_v40 }
 0x2f3   : > { %v2347_v30 = vpop.permute.xlu1 %2346  ;;  %v2789_v19 = vmul.f32 %v2787_v50, %v6295_v40  ;;  %v2715_v59 = vmul.f32 %v2713_v38, %v6295_v40  ;;  %v2806_v37 = vmul.f32 %v2804_v22, %v6295_v40  ;;  %v6328_v43 = vmul.f32 %v2727_v14, %v6295_v40 }
 0x2f4   : > { %v2700_v17 = vmul.f32 %v2699_v28, %v6297_v42  ;;  %v2741_v4 = vmul.f32 %v2740_v41, %v6297_v42  ;;  %v2758_v44 = vmul.f32 %v2757_v12, %v6297_v42  ;;  %2706 = vrot.lane.b32.xlu1 %v2701_v63, %s6762_s9  ;;  %v2746_v29 = vrot.slane %v2742_v10, 1 }
 0x2f5   : > { %v2345_v6 = vpop.permute.xlu0 %2344  ;;  %v2763_v61 = vrot.slane %v2759_v52, 1  ;;  %v2788_v7 = vmul.f32 %v2787_v50, %v6297_v42  ;;  %v2793_v13 = vrot.slane %v2789_v19, 2  ;;  %v2805_v0 = vmul.f32 %v2804_v22, %v6297_v42 }
 0x2f6   : > { %2704 = vrot.lane.b32.xlu0 %v2700_v17, %s6762_s9  ;;  %v2745_v62 = vrot.slane %v2741_v4, 1  ;;  %v2762_v3 = vrot.slane %v2758_v44, 1  ;;  %v2714_v58 = vmul.f32 %v2713_v38, %v6297_v42  ;;  %v2810_v35 = vrot.slane %v2806_v37, 2 }
 0x2f7   : > { %v2019_v57 = vpop.permute.xlu1 %2018  ;;  %v2792_v1 = vrot.slane %v2788_v7, 2  ;;  %v2809_v18 = vrot.slane %v2805_v0, 2  ;;  %v2351_v15 = vadd.f32 %v2347_v30, %v2317_v32  ;;  %v2728_v28 = vmul.f32 %v2727_v14, %v6297_v42  ;;  %v6947_v0 = vld [vmem:[#allocation58_spill] sm:$0xff] }
 0x2f8   : > { %v2747_v48 = vsel %vm486_vm0, %v2745_v62, %v2746_v29  ;;  %v2764_v25 = vsel %vm486_vm0, %v2762_v3, %v2763_v61  ;;  %v2023_v11 = vadd.f32 %v2019_v57, %v1981_v53  ;;  %2720 = vrot.lane.b32.xlu1 %v2715_v59, %s6763_s20  ;;  %v6335_v39 = vmul.f32 %v2774_v47, %v6295_v40 }
 0x2f9   : > { %v2017_v5 = vpop.permute.xlu0 %2016  ;;  %v2794_v8 = vsel %vm628_vm1, %v2792_v1, %v2793_v13  ;;  %v2811_v55 = vsel %vm628_vm1, %v2809_v18, %v2810_v35  ;;  %v2350_v2 = vadd.f32 %v2345_v6, %v2316_v34  ;;  %v2733_v12 = vrot.slane %v6328_v43, 1 }
 0x2fa   : > { %v2022_v49 = vadd.f32 %v2017_v5, %v1980_v21  ;;  %2718 = vrot.lane.b32.xlu0 %v2714_v58, %s6763_s20  ;;  %v2062_v36 = vadd.f32 %v6943_v9, %v2023_v11  ;;  %v2775_v46 = vmul.f32 %v2774_v47, %v6297_v42  ;;  %v2732_v22 = vrot.slane %v2728_v28, 1 }
 0x2fb   : > { %v2389_v32 = vpop.permute.xlu1 %2388  ;;  %v2780_v53 = vrot.slane %v6335_v39, 2  ;;  %v6944_v34 = vrot.slane %v5894_v26, 1 }
 0x2fc   : > { %v2061_v41 = vadd.f32 %v5930_v20, %v2022_v49  ;;  %v2393_v38 = vadd.f32 %v2389_v32, %v2351_v15  ;;  %2750 = vrot.lane.b32.xlu1 %v2746_v29, %s6762_s9  ;;  %v2779_v10 = vrot.slane %v2775_v46, 2  ;;  %v6348_v20 = vsel %vm486_vm0, %v2732_v22, %v2733_v12 }
 0x2fd   : > { %v2387_v50 = vpop.permute.xlu0 %2386  ;;  %v2319_v15 = vstv %s3357_s12 }
 0x2fe   : > { %v2392_v63 = vadd.f32 %v2387_v50, %v2350_v2  ;;  %2748 = vrot.lane.b32.xlu0 %v2747_v48, %s6762_s9  ;;  %v2433_v52 = vadd.f32 %v6944_v34, %v2393_v38  ;;  %v6354_v17 = vsel %vm628_vm1, %v2779_v10, %v2780_v53  ;;  %v2321_v16 = vmul.f32 %v2319_v15, %v5283_v31 }
 0x2ff   : > { %v2109_v21 = vpop.permute.xlu1 %2108  ;;  %v2827_v2 = vstv %s6368_s11  ;;  %v2868_v38 = vstv %s6370_s0  ;;  %v2885_v50 = vstv %s6372_s1  ;;  %v2841_v31 = vstv %s6374_s10 }
 0x300   : > { %v2432_v30 = vadd.f32 %v5935_v27, %v2392_v63  ;;  %2767 = vrot.lane.b32.xlu1 %v2763_v61, %s6763_s20  ;;  %v2113_v6 = vadd.f32 %v2109_v21, %v2062_v36  ;;  %v6945_v61 = vld [vmem:[#allocation56_spill] sm:$0xff]  ;;  %v2320_v36 = vmul.f32 %v2319_v15, %v5285_v23  ;;  %v2915_v34 = vstv %s6376_s21 }
 0x301   : > { %v2107_v4 = vpop.permute.xlu0 %2106  ;;  %v6946_v7 = vrot.slane %v6945_v61, 2 }
 0x302   : > { %2765 = vrot.lane.b32.xlu0 %v2764_v25, %s6763_s20  ;;  %v2112_v29 = vadd.f32 %v2107_v4, %v2061_v41  ;;  %v2855_v4 = vstv %s6380_s26 }
 0x303   : > { %v2476_v26 = vpop.permute.xlu1 %2475 }
 0x304   : > { %2797 = vrot.lane.b32.xlu1 %v2793_v13, %s6762_s9  ;;  %v2480_v3 = vadd.f32 %v2476_v26, %v2433_v52  ;;  %v2932_v52 = vstv %s6378_s25 }
 0x305   : > { %v2474_v44 = vpop.permute.xlu0 %2473 }
 0x306   : > { %2795 = vrot.lane.b32.xlu0 %v2794_v8, %s6762_s9  ;;  %v2479_v59 = vadd.f32 %v2474_v44, %v2432_v30 }
 0x307   : > { %v2160_v19 = vpop.permute.xlu1 %2159 }
 0x308   : > { %v2164_v27 = vadd.f32 %v2160_v19, %v2113_v6  ;;  %2814 = vrot.lane.b32.xlu1 %v2810_v35, %s6763_s20  ;;  %v2902_v19 = vstv %s6382_s29 }
 0x309   : > { %v2158_v14 = vpop.permute.xlu0 %2157 }
 0x30a   : > { %v2163_v62 = vadd.f32 %v2158_v14, %v2112_v29  ;;  %2812 = vrot.lane.b32.xlu0 %v2811_v55, %s6763_s20  ;;  %v2203_v47 = vadd.f32 %v6946_v7, %v2164_v27 }
 0x30b   : > { %v2527_v37 = vpop.permute.xlu1 %2526 }
 0x30c   : > { %v2202_v13 = vadd.f32 %v6947_v0, %v2163_v62  ;;  %v2531_v57 = vadd.f32 %v2527_v37, %v2480_v3 }
 0x30d   : > { %v2525_v58 = vpop.permute.xlu0 %2524 }
 0x30e   : > { %v2530_v48 = vadd.f32 %v2525_v58, %v2479_v59  ;;  %v2574_v25 = vadd.f32 %v2569_v45, %v2531_v57 }
 0x30f   : > { %v2250_v1 = vpop.permute.xlu1 %2249 }
 0x310   : > { %v2573_v11 = vadd.f32 %v5966_v56, %v2530_v48  ;;  %v2254_v60 = vadd.f32 %v2250_v1, %v2203_v47 }
 0x311   : > { %v2248_v5 = vpop.permute.xlu0 %2247 }
 0x312   : > { %v2253_v45 = vadd.f32 %v2248_v5, %v2202_v13 }
 0x313   : > { %v2617_v35 = vpop.permute.xlu1 %2616 }
 0x314   : > { %v2621_v55 = vadd.f32 %v2617_v35, %v2574_v25 }
 0x315   : > { %v2615_v18 = vpop.permute.xlu0 %2614 }
 0x316   : > { %v2620_v32 = vadd.f32 %v2615_v18, %v2573_v11 }
 0x317   : > { %v2301_v56 = vpop.permute.xlu1 %2300 }
 0x318   : > { %v2305_v49 = vadd.f32 %v2301_v56, %v2254_v60 }
 0x319   : > { %v2299_v8 = vpop.permute.xlu0 %2298 }
 0x31a   : > { %v2304_v9 = vadd.f32 %v2299_v8, %v2253_v45  ;;  %v2323_v28 = vadd.f32 %v2321_v16, %v2305_v49 }
 0x31b   : > { %v2668_v41 = vpop.permute.xlu1 %2667 }
 0x31c   : > { %v2322_v46 = vadd.f32 %v2320_v36, %v2304_v9  ;;  %v6389_v22 = vadd.f32 %v2668_v41, %v2621_v55  ;;  %v6948_v9 = vrot.slane %v5952_v51, 1 }
 0x31d   : > { %v2666_v63 = vpop.permute.xlu0 %2665 }
 0x31e   : > { %v6391_v10 = vadd.f32 %v2666_v63, %v2620_v32  ;;  %v2829_v23 = vmul.f32 %v2827_v2, %v6389_v22  ;;  %v2870_v21 = vmul.f32 %v2868_v38, %v6389_v22  ;;  %v2887_v30 = vmul.f32 %v2885_v50, %v6389_v22 }
 0x31f   : > { %v2361_v26 = vpop.permute.xlu1 %2360  ;;  %v2843_v14 = vmul.f32 %v2841_v31, %v6389_v22  ;;  %v2917_v61 = vmul.f32 %v2915_v34, %v6389_v22  ;;  %v2934_v57 = vmul.f32 %v2932_v52, %v6389_v22  ;;  %v6416_v45 = vmul.f32 %v2855_v4, %v6389_v22 }
 0x320   : > { %v2828_v44 = vmul.f32 %v2827_v2, %v6391_v10  ;;  %v2869_v6 = vmul.f32 %v2868_v38, %v6391_v10  ;;  %v2886_v29 = vmul.f32 %v2885_v50, %v6391_v10  ;;  %2834 = vrot.lane.b32.xlu1 %v2829_v23, %s6762_s9  ;;  %v2874_v62 = vrot.slane %v2870_v21, 1 }
 0x321   : > { %v2359_v27 = vpop.permute.xlu0 %2358  ;;  %v2891_v3 = vrot.slane %v2887_v30, 1  ;;  %v2842_v7 = vmul.f32 %v2841_v31, %v6391_v10  ;;  %v2916_v37 = vmul.f32 %v2915_v34, %v6391_v10  ;;  %v2365_v0 = vadd.f32 %v2361_v26, %v2323_v28 }
 0x322   : > { %2832 = vrot.lane.b32.xlu0 %v2828_v44, %s6762_s9  ;;  %v2873_v47 = vrot.slane %v2869_v6, 1  ;;  %v2890_v59 = vrot.slane %v2886_v29, 1  ;;  %v2921_v13 = vrot.slane %v2917_v61, 2  ;;  %v2933_v58 = vmul.f32 %v2932_v52, %v6391_v10 }
 0x323   : > { %v2364_v48 = vadd.f32 %v2359_v27, %v2322_v46  ;;  %v2403_v25 = vpop.permute.xlu1 %2402  ;;  %v2920_v5 = vrot.slane %v2916_v37, 2  ;;  %v2938_v15 = vrot.slane %v2934_v57, 2  ;;  %v2856_v8 = vmul.f32 %v2855_v4, %v6391_v10 }
 0x324   : > { %v2875_v1 = vsel %vm486_vm0, %v2873_v47, %v2874_v62  ;;  %v2892_v11 = vsel %vm486_vm0, %v2890_v59, %v2891_v3  ;;  %v2407_v35 = vadd.f32 %v2403_v25, %v2365_v0  ;;  %2848 = vrot.lane.b32.xlu1 %v2843_v14, %s6763_s20  ;;  %v2937_v60 = vrot.slane %v2933_v58, 2 }
 0x325   : > { %v2401_v18 = vpop.permute.xlu0 %2400  ;;  %v2922_v49 = vsel %vm628_vm1, %v2920_v5, %v2921_v13  ;;  %v6422_v16 = vmul.f32 %v2902_v19, %v6389_v22  ;;  %v2861_v28 = vrot.slane %v6416_v45, 1  ;;  %v2903_v2 = vmul.f32 %v2902_v19, %v6391_v10 }
 0x326   : > { %v2406_v56 = vadd.f32 %v2401_v18, %v2364_v48  ;;  %2846 = vrot.lane.b32.xlu0 %v2842_v7, %s6763_s20  ;;  %v2446_v36 = vadd.f32 %v6948_v9, %v2407_v35  ;;  %v2939_v55 = vsel %vm628_vm1, %v2937_v60, %v2938_v15  ;;  %v2860_v46 = vrot.slane %v2856_v8, 1 }
 0x327   : > { %v2493_v32 = vpop.permute.xlu1 %2492  ;;  %v2908_v38 = vrot.slane %v6422_v16, 2  ;;  %v2907_v63 = vrot.slane %v2903_v2, 2  ;;  %v6949_v4 = vrot.slane %v5960_v24, 2  ;;  %v2955_v14 = vstv %s6438_s15 }
 0x328   : > { %v2445_v41 = vadd.f32 %v5976_v54, %v2406_v56  ;;  %2878 = vrot.lane.b32.xlu1 %v2874_v62, %s6762_s9  ;;  %v6436_v51 = vsel %vm486_vm0, %v2860_v46, %v2861_v28  ;;  %v2497_v31 = vadd.f32 %v2493_v32, %v2446_v36  ;;  %v2996_v62 = vstv %s6445_s2 }
 0x329   : > { %v2491_v50 = vpop.permute.xlu0 %2490  ;;  %v6443_v54 = vsel %vm628_vm1, %v2907_v63, %v2908_v38  ;;  %v2969_v47 = vstv %s6450_s3  ;;  %v3043_v59 = vstv %s6453_s4  ;;  %v3060_v37 = vstv %s6455_s5 }
 0x32a   : > { %2876 = vrot.lane.b32.xlu0 %v2875_v1, %s6762_s9  ;;  %v2496_v34 = vadd.f32 %v2491_v50, %v2445_v41  ;;  %v2983_v58 = vstv %s6459_s7 }
 0x32b   : > { %v2544_v52 = vpop.permute.xlu1 %2543 }
 0x32c   : > { %v2548_v23 = vadd.f32 %v2544_v52, %v2497_v31  ;;  %2895 = vrot.lane.b32.xlu1 %v2891_v3, %s6763_s20  ;;  %v3013_v3 = vstv %s6447_s30 }
 0x32d   : > { %v2542_v21 = vpop.permute.xlu0 %2541 }
 0x32e   : > { %v2547_v30 = vadd.f32 %v2542_v21, %v2496_v34  ;;  %2893 = vrot.lane.b32.xlu0 %v2892_v11, %s6763_s20  ;;  %v2587_v26 = vadd.f32 %v6949_v4, %v2548_v23  ;;  %v3030_v11 = vstv %s6462_s28 }
 0x32f   : > { %v2634_v44 = vpop.permute.xlu1 %2633 }
 0x330   : > { %v2586_v6 = vadd.f32 %v5981_v33, %v2547_v30  ;;  %2925 = vrot.lane.b32.xlu1 %v2921_v13, %s6762_s9  ;;  %v2638_v19 = vadd.f32 %v2634_v44, %v2587_v26 }
 0x331   : > { %v2632_v29 = vpop.permute.xlu0 %2631 }
 0x332   : > { %2923 = vrot.lane.b32.xlu0 %v2922_v49, %s6762_s9  ;;  %v2637_v27 = vadd.f32 %v2632_v29, %v2586_v6 }
 0x333   : > { %v2685_v24 = vpop.permute.xlu1 %2684 }
 0x334   : > { %v6469_v61 = vadd.f32 %v2685_v24, %v2638_v19  ;;  %2942 = vrot.lane.b32.xlu1 %v2938_v15, %s6763_s20  ;;  %v2693_v19 = vstv %s2692_s17  ;;  %v2691_v24 = vstv %s2690_s18 }
 0x335   : > { %v2683_v33 = vpop.permute.xlu0 %2682 }
 0x336   : > { %v6472_v7 = vadd.f32 %v2683_v33, %v2637_v27  ;;  %2940 = vrot.lane.b32.xlu0 %v2939_v55, %s6763_s20  ;;  %v2957_v0 = vmul.f32 %v2955_v14, %v6469_v61  ;;  %v2998_v13 = vmul.f32 %v2996_v62, %v6469_v61  ;;  %v3015_v57 = vmul.f32 %v3013_v3, %v6469_v61 }
 0x337   : > { %v3045_v18 = vmul.f32 %v3043_v59, %v6469_v61  ;;  %v3062_v49 = vmul.f32 %v3060_v37, %v6469_v61  ;;  %v2971_v9 = vmul.f32 %v2969_v47, %v6469_v61  ;;  %v6499_v31 = vmul.f32 %v2983_v58, %v6469_v61 }
 0x338   : > { %v2956_v48 = vmul.f32 %v2955_v14, %v6472_v7  ;;  %v2997_v25 = vmul.f32 %v2996_v62, %v6472_v7  ;;  %v3014_v1 = vmul.f32 %v3013_v3, %v6472_v7  ;;  %2962 = vrot.lane.b32.xlu1 %v2957_v0, %s6762_s9  ;;  %v3002_v5 = vrot.slane %v2998_v13, 1 }
 0x339   : > { %v3019_v35 = vrot.slane %v3015_v57, 1  ;;  %v3044_v15 = vmul.f32 %v3043_v59, %v6472_v7  ;;  %v3061_v8 = vmul.f32 %v3060_v37, %v6472_v7  ;;  %v2970_v36 = vmul.f32 %v2969_v47, %v6472_v7 }
 0x33a   : > { %2960 = vrot.lane.b32.xlu0 %v2956_v48, %s6762_s9  ;;  %v3001_v60 = vrot.slane %v2997_v25, 1  ;;  %v3018_v56 = vrot.slane %v3014_v1, 1  ;;  %v3049_v55 = vrot.slane %v3045_v18, 2  ;;  %v3066_v46 = vrot.slane %v3062_v49, 2 }
 0x33b   : > { %v3048_v2 = vrot.slane %v3044_v15, 2  ;;  %v3065_v50 = vrot.slane %v3061_v8, 2  ;;  %v2984_v34 = vmul.f32 %v2983_v58, %v6472_v7  ;;  %v6503_v52 = vmul.f32 %v3030_v11, %v6469_v61 }
 0x33c   : > { %v3003_v32 = vsel %vm486_vm0, %v3001_v60, %v3002_v5  ;;  %v3020_v41 = vsel %vm486_vm0, %v3018_v56, %v3019_v35  ;;  %2976 = vrot.lane.b32.xlu1 %v2971_v9, %s6763_s20  ;;  %v3031_v21 = vmul.f32 %v3030_v11, %v6472_v7  ;;  %v2989_v30 = vrot.slane %v6499_v31, 1 }
 0x33d   : > { %v3050_v63 = vsel %vm628_vm1, %v3048_v2, %v3049_v55  ;;  %v3067_v23 = vsel %vm628_vm1, %v3065_v50, %v3066_v46  ;;  %v2988_v4 = vrot.slane %v2984_v34, 1  ;;  %v3036_v26 = vrot.slane %v6503_v52, 2 }
 0x33e   : > { %2974 = vrot.lane.b32.xlu0 %v2970_v36, %s6763_s20  ;;  %v3035_v44 = vrot.slane %v3031_v21, 2  ;;  %v2695_v27 = vmul.f32 %v2693_v19, %v6295_v40  ;;  %v2694_v14 = vmul.f32 %v2693_v19, %v6297_v42 }
 0x33f   : > { %v6514_v6 = vsel %vm486_vm0, %v2988_v4, %v2989_v30 }
 0x340   : > { %3006 = vrot.lane.b32.xlu1 %v3002_v5, %s6762_s9  ;;  %v6520_v29 = vsel %vm628_vm1, %v3035_v44, %v3036_v26  ;;  %v2697_v3 = vadd.f32 %v2695_v27, %v2691_v24  ;;  %v2696_v47 = vadd.f32 %v2694_v14, %v2691_v24 }
 0x342   : > { %3004 = vrot.lane.b32.xlu0 %v3003_v32, %s6762_s9 }
 0x344   : > { %3023 = vrot.lane.b32.xlu1 %v3019_v35, %s6763_s20 }
 0x346   : > { %3021 = vrot.lane.b32.xlu0 %v3020_v41, %s6763_s20 }
 0x348   : > { %3053 = vrot.lane.b32.xlu1 %v3049_v55, %s6762_s9 }
 0x34a   : > { %3051 = vrot.lane.b32.xlu0 %v3050_v63, %s6762_s9  ;;  %s3390_s9 = sld [smem:[#allocation12 + $0x9]] }
 0x34c   : > { %3070 = vrot.lane.b32.xlu1 %v3066_v46, %s6763_s20 }
 0x34e   : > { %3068 = vrot.lane.b32.xlu0 %v3067_v23, %s6763_s20  ;;  %s3399_s20 = sld [smem:[#allocation12 + $0x12]] }
 0x350   : > { %v2821_v43 = vstv %s3390_s9 }
 0x351   : > { %v2823_v2 = vmul.f32 %v2821_v43, %v6389_v22  ;;  %v2822_v41 = vmul.f32 %v2821_v43, %v6391_v10 }
 0x354   : > { %v2949_v45 = vstv %s3399_s20 }
 0x366   : > { %v2707_v62 = vpop.permute.xlu1 %2706 }
 0x367   : > { %v2711_v59 = vadd.f32 %v2707_v62, %v2697_v3 }
 0x368   : > { %v2705_v33 = vpop.permute.xlu0 %2704 }
 0x369   : > { %v2710_v37 = vadd.f32 %v2705_v33, %v2696_v47 }
 0x36a   : > { %v2721_v0 = vpop.permute.xlu1 %2720 }
 0x36b   : > { %v2725_v13 = vadd.f32 %v2721_v0, %v2711_v59 }
 0x36c   : > { %v2719_v57 = vpop.permute.xlu0 %2718 }
 0x36d   : > { %v2724_v58 = vadd.f32 %v2719_v57, %v2710_v37  ;;  %v2738_v48 = vadd.f32 %v2733_v12, %v2725_v13 }
 0x36e   : > { %v2751_v25 = vpop.permute.xlu1 %2750 }
 0x36f   : > { %v2737_v1 = vadd.f32 %v6348_v20, %v2724_v58  ;;  %v2755_v11 = vadd.f32 %v2751_v25, %v2738_v48  ;;  %v2951_v48 = vmul.f32 %v2949_v45, %v6469_v61 }
 0x370   : > { %v2749_v40 = vpop.permute.xlu0 %2748 }
 0x371   : > { %v2754_v42 = vadd.f32 %v2749_v40, %v2737_v1  ;;  %v2950_v1 = vmul.f32 %v2949_v45, %v6472_v7 }
 0x372   : > { %v2768_v5 = vpop.permute.xlu1 %2767 }
 0x373   : > { %v2772_v35 = vadd.f32 %v2768_v5, %v2755_v11 }
 0x374   : > { %v2766_v18 = vpop.permute.xlu0 %2765 }
 0x375   : > { %v2771_v15 = vadd.f32 %v2766_v18, %v2754_v42  ;;  %v2785_v60 = vadd.f32 %v2780_v53, %v2772_v35 }
 0x376   : > { %v2798_v56 = vpop.permute.xlu1 %2797 }
 0x377   : > { %v2784_v49 = vadd.f32 %v6354_v17, %v2771_v15  ;;  %v2802_v12 = vadd.f32 %v2798_v56, %v2785_v60 }
 0x378   : > { %v2796_v8 = vpop.permute.xlu0 %2795 }
 0x379   : > { %v2801_v9 = vadd.f32 %v2796_v8, %v2784_v49 }
 0x37a   : > { %v2815_v36 = vpop.permute.xlu1 %2814 }
 0x37b   : > { %v2819_v20 = vadd.f32 %v2815_v36, %v2802_v12 }
 0x37c   : > { %v2813_v55 = vpop.permute.xlu0 %2812 }
 0x37d   : > { %v2818_v32 = vadd.f32 %v2813_v55, %v2801_v9  ;;  %v2825_v46 = vadd.f32 %v2823_v2, %v2819_v20 }
 0x37f   : > { %v2824_v50 = vadd.f32 %v2822_v41, %v2818_v32 }
 0x392   : > { %v2835_v63 = vpop.permute.xlu1 %2834 }
 0x393   : > { %v2839_v53 = vadd.f32 %v2835_v63, %v2825_v46 }
 0x394   : > { %v2833_v39 = vpop.permute.xlu0 %2832 }
 0x395   : > { %v2838_v34 = vadd.f32 %v2833_v39, %v2824_v50 }
 0x396   : > { %v2849_v23 = vpop.permute.xlu1 %2848 }
 0x397   : > { %v2853_v17 = vadd.f32 %v2849_v23, %v2839_v53 }
 0x398   : > { %v2847_v21 = vpop.permute.xlu0 %2846 }
 0x399   : > { %v2852_v4 = vadd.f32 %v2847_v21, %v2838_v34  ;;  %v2866_v44 = vadd.f32 %v2861_v28, %v2853_v17 }
 0x39a   : > { %v2879_v19 = vpop.permute.xlu1 %2878 }
 0x39b   : > { %v2865_v27 = vadd.f32 %v6436_v51, %v2852_v4  ;;  %v2883_v24 = vadd.f32 %v2879_v19, %v2866_v44 }
 0x39c   : > { %v2877_v22 = vpop.permute.xlu0 %2876 }
 0x39d   : > { %v2882_v10 = vadd.f32 %v2877_v22, %v2865_v27 }
 0x39e   : > { %v2896_v14 = vpop.permute.xlu1 %2895 }
 0x39f   : > { %v2900_v62 = vadd.f32 %v2896_v14, %v2883_v24 }
 0x3a0   : > { %v2894_v3 = vpop.permute.xlu0 %2893 }
 0x3a1   : > { %v2899_v33 = vadd.f32 %v2894_v3, %v2882_v10  ;;  %v2913_v47 = vadd.f32 %v2908_v38, %v2900_v62 }
 0x3a2   : > { %v2926_v59 = vpop.permute.xlu1 %2925 }
 0x3a3   : > { %v2912_v37 = vadd.f32 %v6443_v54, %v2899_v33  ;;  %v2930_v28 = vadd.f32 %v2926_v59, %v2913_v47 }
 0x3a4   : > { %v2924_v0 = vpop.permute.xlu0 %2923 }
 0x3a5   : > { %v2929_v13 = vadd.f32 %v2924_v0, %v2912_v37 }
 0x3a6   : > { %v2943_v57 = vpop.permute.xlu1 %2942 }
 0x3a7   : > { %v2947_v51 = vadd.f32 %v2943_v57, %v2930_v28 }
 0x3a8   : > { %v2941_v58 = vpop.permute.xlu0 %2940 }
 0x3a9   : > { %v2946_v25 = vadd.f32 %v2941_v58, %v2929_v13  ;;  %v2953_v40 = vadd.f32 %v2951_v48, %v2947_v51 }
 0x3aa   : > { %v2963_v11 = vpop.permute.xlu1 %2962 }
 0x3ab   : > { %v2952_v16 = vadd.f32 %v2950_v1, %v2946_v25  ;;  %v2967_v42 = vadd.f32 %v2963_v11, %v2953_v40 }
 0x3ac   : > { %v2961_v38 = vpop.permute.xlu0 %2960 }
 0x3ad   : > { %v2966_v54 = vadd.f32 %v2961_v38, %v2952_v16 }
 0x3ae   : > { %v2977_v5 = vpop.permute.xlu1 %2976 }
 0x3af   : > { %v2981_v35 = vadd.f32 %v2977_v5, %v2967_v42 }
 0x3b0   : > { %v2975_v18 = vpop.permute.xlu0 %2974 }
 0x3b1   : > { %v2980_v15 = vadd.f32 %v2975_v18, %v2966_v54  ;;  %v2994_v60 = vadd.f32 %v2989_v30, %v2981_v35 }
 0x3b2   : > { %v3007_v56 = vpop.permute.xlu1 %3006 }
 0x3b3   : > { %v2993_v61 = vadd.f32 %v6514_v6, %v2980_v15  ;;  %v3011_v7 = vadd.f32 %v3007_v56, %v2994_v60 }
 0x3b4   : > { %v3005_v49 = vpop.permute.xlu0 %3004 }
 0x3b5   : > { %v3010_v8 = vadd.f32 %v3005_v49, %v2993_v61 }
 0x3b6   : > { %v3024_v43 = vpop.permute.xlu1 %3023 }
 0x3b7   : > { %v3028_v12 = vadd.f32 %v3024_v43, %v3011_v7 }
 0x3b8   : > { %v3022_v9 = vpop.permute.xlu0 %3021 }
 0x3b9   : > { %v3027_v36 = vadd.f32 %v3022_v9, %v3010_v8  ;;  %v3041_v20 = vadd.f32 %v3036_v26, %v3028_v12 }
 0x3ba   : > { %v3054_v55 = vpop.permute.xlu1 %3053 }
 0x3bb   : > { %v3040_v2 = vadd.f32 %v6520_v29, %v3027_v36  ;;  %v3058_v30 = vadd.f32 %v3054_v55, %v3041_v20 }
 0x3bc   : > { %v3052_v31 = vpop.permute.xlu0 %3051 }
 0x3bd   : > { %v3057_v32 = vadd.f32 %v3052_v31, %v3040_v2 }
 0x3be   : > { %v3071_v6 = vpop.permute.xlu1 %3070 }
 0x3bf   : > { %v3075_v41 = vadd.f32 %v3071_v6, %v3058_v30 }
 0x3c0   : > { %v3069_v46 = vpop.permute.xlu0 %3068 }
 0x3c1   : > { %v3074_v50 = vadd.f32 %v3069_v46, %v3057_v32  ;;  %3079 = vst.msk [vmem:[%s363_s14 + $0x8] sm:$0x3] %vm3078_vm2, %v3075_v41 }
 0x3c3   : > { %3077 = vst.msk [vmem:[%s363_s14] sm:$0xff] %vm3076_vm3, %v3074_v50 }
 0x3c4 PF: > { %s6952_s29 = sld [smem:[#allocation20_spill]]  ;;  %s6953_s26 = sld [smem:[#allocation17_spill]] }
 0x3c5   : > { %s6954_s27 = sld [smem:[#allocation18_spill]]  ;;  %s6955_s28 = sld [smem:[#allocation21_spill]] }
 0x3ca   : > { %p21_p12 = scmp.ge.s32.totalorder %s6952_s29, 4  }
 0x3cc   :  { %23 = sbr.rel (!%p21_p12) target bundleno = 15 (0xf), region = 111 }
 0x3d3   :  { %3101 = vsyncpa [#allocation4], 1 }
 0x3d4   :  { %3103 = vsyncpa [#allocation4 + $0x1], 1 }
 0x3d5   :  { %3104 = vsyncpa [#allocation5], 1 }
 0x3d6   :  { %3106 = vsyncpa [#allocation5 + $0x1], 1 }
 0x3d7   :  { %3107 = vsyncpa [#allocation8], 1 }
 0x3d8   :  { %3108 = vsyncpa [#allocation11], 1 }

</bundles_post_ra>
